<compile_context>
chip_gen: v5e
topology: v5e:2x2
jax: 0.10.0
libtpu: 0.0.40
codegen_flags: <defaults>
</compile_context>

<pallas_src>
import functools

import jax
import jax.numpy as jnp
from jax.experimental import pallas as pl
from jax.experimental.pallas import tpu as pltpu


# ----------------------------------------------------------------------------
# Tiling configuration (sized against the smallest-VMEM generation, v7x 64 MiB)
# ----------------------------------------------------------------------------
TM_CAP = 256          # rows per output tile
TN_CAP = 256          # output channels per tile (multiple of 128 -> lane dense)
TK_CAP = 1024         # reduction slab (bf16: <=512 KiB per B tile, 2-deep buf)
VMEM_LIMIT = 32 * 1024 * 1024


def _round_up(x, m):
    return (x + m - 1) // m * m


def _cdiv(a, b):
    return (a + b - 1) // b


def _matmul_tiles(M, N, K):
    """Pick (tm, tn, tk) and padded (Mp, Np, Kp) for a tiled MXU matmul."""
    tm = min(TM_CAP, _round_up(M, 16))
    Mp = _round_up(M, tm)
    if N < 128:
        tn, Np = N, N                    # accept narrow store for this layer only
    else:
        Np = _round_up(N, 128)
        tn = TN_CAP if Np % TN_CAP == 0 else 128
    Kp0 = _round_up(K, 128)
    kt = _cdiv(Kp0, TK_CAP)
    tk = _round_up(_cdiv(Kp0, kt), 128)
    Kp = tk * kt
    return tm, tn, tk, Mp, Np, Kp


def _pad2(x, rows, cols):
    r, c = x.shape
    if (r, c) == (rows, cols):
        return x
    return jnp.pad(x, ((0, rows - r), (0, cols - c)))


def _mxu_params():
    return pltpu.CompilerParams(
        dimension_semantics=("parallel", "parallel", "arbitrary"),
        vmem_limit_bytes=VMEM_LIMIT)


# ----------------------------------------------------------------------------
# Pallas kernels
# ----------------------------------------------------------------------------
def _matmul_bn_kernel(a_ref, b_ref, scale_ref, shift_ref, o_ref, acc_ref, *, relu):
    """acc += a@b over the K grid axis; BN(+ReLU) epilogue on the last K step."""
    k = pl.program_id(2)

    @pl.when(k == 0)
    def _():
        acc_ref[...] = jnp.zeros_like(acc_ref)

    acc_ref[...] += jnp.dot(a_ref[...], b_ref[...],
                            preferred_element_type=jnp.float32)

    @pl.when(k == pl.num_programs(2) - 1)
    def _():
        y = acc_ref[...] * scale_ref[...] + shift_ref[...]
        if relu:
            y = jnp.maximum(y, 0.0)
        o_ref[...] = y.astype(o_ref.dtype)


def _matmul_bn_relu_add_kernel(a_ref, b_ref, scale_ref, shift_ref, res_ref,
                               o_ref, acc_ref):
    """relu(BN(a@b)) + residual, residual fetched once per output tile."""
    k = pl.program_id(2)

    @pl.when(k == 0)
    def _():
        acc_ref[...] = jnp.zeros_like(acc_ref)

    acc_ref[...] += jnp.dot(a_ref[...], b_ref[...],
                            preferred_element_type=jnp.float32)

    @pl.when(k == pl.num_programs(2) - 1)
    def _():
        y = jnp.maximum(acc_ref[...] * scale_ref[...] + shift_ref[...], 0.0)
        o_ref[...] = (y + res_ref[...].astype(jnp.float32)).astype(o_ref.dtype)


def _block_conv1_ident_kernel(x_ref, a_ref, w1_ref, wi_ref, scale_ref, shift_ref,
                              h_ref, id_ref, acc_ref):
    """Fused: h = relu(BN(conv1 patches @ w1)); ident = x @ wi (1x1 conv).

    The identity 1x1 matmul is done once at k==0 (its K dim is tiny) so it
    rides the same grid/tiles as conv1 instead of a separate pallas_call."""
    k = pl.program_id(2)

    @pl.when(k == 0)
    def _():
        acc_ref[...] = jnp.zeros_like(acc_ref)
        id_ref[...] = jnp.dot(x_ref[...], wi_ref[...],
                              preferred_element_type=jnp.float32).astype(id_ref.dtype)

    acc_ref[...] += jnp.dot(a_ref[...], w1_ref[...],
                            preferred_element_type=jnp.float32)

    @pl.when(k == pl.num_programs(2) - 1)
    def _():
        y = jnp.maximum(acc_ref[...] * scale_ref[...] + shift_ref[...], 0.0)
        h_ref[...] = y.astype(h_ref.dtype)


def _maxpool_kernel(p_ref, o_ref):
    # p: (tm, 9, C) -> max over the 9 pooling taps (middle axis).
    o_ref[...] = jnp.max(p_ref[...], axis=1)


def _avgpool_linear_kernel(x_ref, w_ref, b_ref, o_ref):
    # x: (N, HW, C) -> mean over spatial axis, then the final Linear (fused).
    feat = jnp.mean(x_ref[...].astype(jnp.float32), axis=1)          # (N, C)
    o_ref[...] = jnp.dot(feat, w_ref[...],
                         preferred_element_type=jnp.float32) + b_ref[...]


# ----------------------------------------------------------------------------
# Pallas wrappers
# ----------------------------------------------------------------------------
def fused_conv_bn(a, b, scale, shift, *, relu, out_dtype=jnp.bfloat16):
    """out = act((a @ b) * scale + shift) with a tiled, pipelined MXU matmul."""
    M, K = a.shape
    _, N = b.shape
    tm, tn, tk, Mp, Np, Kp = _matmul_tiles(M, N, K)
    a_p = _pad2(a.astype(jnp.bfloat16), Mp, Kp)
    b_p = _pad2(b.astype(jnp.bfloat16), Kp, Np)
    sc = _pad2(scale.reshape(1, N).astype(jnp.float32), 1, Np)
    sh = _pad2(shift.reshape(1, N).astype(jnp.float32), 1, Np)

    out = pl.pallas_call(
        functools.partial(_matmul_bn_kernel, relu=relu),
        out_shape=jax.ShapeDtypeStruct((Mp, Np), out_dtype),
        grid=(Mp // tm, Np // tn, Kp // tk),
        in_specs=[
            pl.BlockSpec((tm, tk), lambda i, j, k: (i, k)),
            pl.BlockSpec((tk, tn), lambda i, j, k: (k, j)),
            pl.BlockSpec((1, tn), lambda i, j, k: (0, j)),
            pl.BlockSpec((1, tn), lambda i, j, k: (0, j)),
        ],
        out_specs=pl.BlockSpec((tm, tn), lambda i, j, k: (i, j)),
        scratch_shapes=[pltpu.VMEM((tm, tn), jnp.float32)],
        compiler_params=_mxu_params(),
        cost_estimate=pl.CostEstimate(
            flops=2 * Mp * Np * Kp, transcendentals=0,
            bytes_accessed=2 * (Mp * Kp + Kp * Np + Mp * Np)),
    )(a_p, b_p, sc, sh)
    if (Mp, Np) != (M, N):
        out = out[:M, :N]
    return out


def fused_conv_bn_relu_add(a, b, scale, shift, res, out_dtype=jnp.bfloat16):
    """out = relu((a @ b) * scale + shift) + res (residual add in the epilogue)."""
    M, K = a.shape
    _, N = b.shape
    tm, tn, tk, Mp, Np, Kp = _matmul_tiles(M, N, K)
    a_p = _pad2(a.astype(jnp.bfloat16), Mp, Kp)
    b_p = _pad2(b.astype(jnp.bfloat16), Kp, Np)
    sc = _pad2(scale.reshape(1, N).astype(jnp.float32), 1, Np)
    sh = _pad2(shift.reshape(1, N).astype(jnp.float32), 1, Np)
    r_p = _pad2(res.astype(jnp.bfloat16), Mp, Np)

    out = pl.pallas_call(
        _matmul_bn_relu_add_kernel,
        out_shape=jax.ShapeDtypeStruct((Mp, Np), out_dtype),
        grid=(Mp // tm, Np // tn, Kp // tk),
        in_specs=[
            pl.BlockSpec((tm, tk), lambda i, j, k: (i, k)),
            pl.BlockSpec((tk, tn), lambda i, j, k: (k, j)),
            pl.BlockSpec((1, tn), lambda i, j, k: (0, j)),
            pl.BlockSpec((1, tn), lambda i, j, k: (0, j)),
            pl.BlockSpec((tm, tn), lambda i, j, k: (i, j)),
        ],
        out_specs=pl.BlockSpec((tm, tn), lambda i, j, k: (i, j)),
        scratch_shapes=[pltpu.VMEM((tm, tn), jnp.float32)],
        compiler_params=_mxu_params(),
        cost_estimate=pl.CostEstimate(
            flops=2 * Mp * Np * Kp, transcendentals=0,
            bytes_accessed=2 * (Mp * Kp + Kp * Np + 2 * Mp * Np)),
    )(a_p, b_p, sc, sh, r_p)
    if (Mp, Np) != (M, N):
        out = out[:M, :N]
    return out


def block_conv1_ident(x2d, patches, w1, wi, scale, shift):
    """Fused conv1(3x3)+BN+ReLU and identity 1x1 conv sharing one grid.

    Returns (h, ident), both (M, cout) bf16."""
    M, cin = x2d.shape
    _, K = patches.shape
    _, N = w1.shape
    tm, tn, tk, Mp, Np, Kp = _matmul_tiles(M, N, K)
    x_p = _pad2(x2d.astype(jnp.bfloat16), Mp, cin)
    a_p = _pad2(patches.astype(jnp.bfloat16), Mp, Kp)
    w1_p = _pad2(w1.astype(jnp.bfloat16), Kp, Np)
    wi_p = _pad2(wi.astype(jnp.bfloat16), cin, Np)
    sc = _pad2(scale.reshape(1, N).astype(jnp.float32), 1, Np)
    sh = _pad2(shift.reshape(1, N).astype(jnp.float32), 1, Np)

    h, ident = pl.pallas_call(
        _block_conv1_ident_kernel,
        out_shape=(jax.ShapeDtypeStruct((Mp, Np), jnp.bfloat16),
                   jax.ShapeDtypeStruct((Mp, Np), jnp.bfloat16)),
        grid=(Mp // tm, Np // tn, Kp // tk),
        in_specs=[
            pl.BlockSpec((tm, cin), lambda i, j, k: (i, 0)),
            pl.BlockSpec((tm, tk), lambda i, j, k: (i, k)),
            pl.BlockSpec((tk, tn), lambda i, j, k: (k, j)),
            pl.BlockSpec((cin, tn), lambda i, j, k: (0, j)),
            pl.BlockSpec((1, tn), lambda i, j, k: (0, j)),
            pl.BlockSpec((1, tn), lambda i, j, k: (0, j)),
        ],
        out_specs=(pl.BlockSpec((tm, tn), lambda i, j, k: (i, j)),
                   pl.BlockSpec((tm, tn), lambda i, j, k: (i, j))),
        scratch_shapes=[pltpu.VMEM((tm, tn), jnp.float32)],
        compiler_params=_mxu_params(),
        cost_estimate=pl.CostEstimate(
            flops=2 * Mp * Np * (Kp + cin), transcendentals=0,
            bytes_accessed=2 * (Mp * Kp + Mp * cin + Kp * Np + cin * Np
                                + 2 * Mp * Np)),
    )(x_p, a_p, w1_p, wi_p, sc, sh)
    if (Mp, Np) != (M, N):
        h, ident = h[:M, :N], ident[:M, :N]
    return h, ident


def avgpool_linear(x, wl, bl):
    """AdaptiveAvgPool2d((1,1)) + flatten + Linear fused in one small kernel."""
    Nb, HW, C = x.shape
    nc = wl.shape[1]
    ncp = _round_up(nc, 128)                       # lane-dense classifier columns
    w = jnp.pad(wl.astype(jnp.float32), ((0, 0), (0, ncp - nc)))
    b = jnp.pad(bl.astype(jnp.float32).reshape(1, nc), ((0, 0), (0, ncp - nc)))
    out = pl.pallas_call(
        _avgpool_linear_kernel,
        out_shape=jax.ShapeDtypeStruct((Nb, ncp), jnp.float32),
        grid=(1,),
        in_specs=[pl.BlockSpec((Nb, HW, C), lambda i: (0, 0, 0)),
                  pl.BlockSpec((C, ncp), lambda i: (0, 0)),
                  pl.BlockSpec((1, ncp), lambda i: (0, 0))],
        out_specs=pl.BlockSpec((Nb, ncp), lambda i: (0, 0)),
        compiler_params=pltpu.CompilerParams(vmem_limit_bytes=VMEM_LIMIT),
    )(x, w, b)
    return out[:, :nc]


# ----------------------------------------------------------------------------
# Plain-JAX glue: im2col patch extraction (pad + strided slices + concat)
# ----------------------------------------------------------------------------
def im2col(x, kh, kw, stride, pad, pad_value=0.0):
    """x: (N, H, W, C) NHWC -> patches (N, Ho, Wo, kh*kw*C), tap-major order."""
    N, H, W, C = x.shape
    Ho = (H + 2 * pad - kh) // stride + 1
    Wo = (W + 2 * pad - kw) // stride + 1
    xp = jnp.pad(x, ((0, 0), (pad, pad), (pad, pad), (0, 0)),
                 constant_values=pad_value)
    cols = []
    for i in range(kh):
        for j in range(kw):
            cols.append(xp[:, i:i + stride * Ho:stride, j:j + stride * Wo:stride, :])
    patches = jnp.concatenate(cols, axis=-1)
    return patches, Ho, Wo


def maxpool_3x3_s2_p1(x):
    """PyTorch MaxPool2d(3, stride=2, padding=1) on NHWC via a Pallas reduce."""
    N, H, W, C = x.shape
    patches, Ho, Wo = im2col(x, 3, 3, 2, 1, pad_value=-jnp.inf)
    M = N * Ho * Wo
    p = patches.reshape(M, 9, C)                   # no HBM transpose shuffle
    tmp = min(256, _round_up(M, 8))
    Mp = _round_up(M, tmp)
    if Mp != M:
        p = jnp.pad(p, ((0, Mp - M), (0, 0), (0, 0)))
    out = pl.pallas_call(
        _maxpool_kernel,
        out_shape=jax.ShapeDtypeStruct((Mp, C), x.dtype),
        grid=(Mp // tmp,),
        in_specs=[pl.BlockSpec((tmp, 9, C), lambda i: (i, 0, 0))],
        out_specs=pl.BlockSpec((tmp, C), lambda i: (i, 0)),
        compiler_params=pltpu.CompilerParams(
            dimension_semantics=("parallel",), vmem_limit_bytes=VMEM_LIMIT),
    )(p)
    if Mp != M:
        out = out[:M]
    return out.reshape(N, Ho, Wo, C)


# ----------------------------------------------------------------------------
# Parameter init (deterministic, in-script) with folded inference-mode BN
# ----------------------------------------------------------------------------
def _fold_bn(gamma, beta, rmean, rvar, eps=1e-5):
    scale = gamma / jnp.sqrt(rvar + eps)
    shift = beta - rmean * scale
    return scale, shift


def init_params(key, input_channels, num_classes, depth):
    n_keys = 8 + depth * 16
    keys = iter(jax.random.split(key, n_keys))

    def conv_w(cin, cout, k):
        fan_in = cin * k * k
        std = (2.0 / fan_in) ** 0.5
        # stored directly as im2col matmul matrix (k*k*cin, cout), order (kh, kw, cin)
        return std * jax.random.normal(next(keys), (k * k * cin, cout), jnp.float32)

    def bn_params(c):
        gamma = 1.0 + 0.1 * jax.random.normal(next(keys), (c,), jnp.float32)
        beta = 0.1 * jax.random.normal(next(keys), (c,), jnp.float32)
        rmean = 0.1 * jax.random.normal(next(keys), (c,), jnp.float32)
        rvar = 0.5 + jnp.abs(jax.random.normal(next(keys), (c,), jnp.float32))
        return _fold_bn(gamma, beta, rmean, rvar)

    params = {}
    params["w0"] = conv_w(input_channels, 64, 7)
    params["bn0_scale"], params["bn0_shift"] = bn_params(64)

    blocks = []
    for i in range(depth):
        cin = 64 * 2 ** i
        cout = 128 * 2 ** i
        blk = {}
        blk["w1"] = conv_w(cin, cout, 3)
        blk["bn1_scale"], blk["bn1_shift"] = bn_params(cout)
        blk["w2"] = conv_w(cout, cout, 3)
        blk["bn2_scale"], blk["bn2_shift"] = bn_params(cout)
        blk["wi"] = conv_w(cin, cout, 1)   # identity 1x1 conv (no bias)
        blocks.append(blk)
    params["blocks"] = blocks

    cfeat = 128 * 2 ** (depth - 1)
    std = (1.0 / cfeat) ** 0.5
    params["wl"] = std * jax.random.normal(next(keys), (cfeat, num_classes), jnp.float32)
    params["bl"] = std * jax.random.normal(next(keys), (num_classes,), jnp.float32)
    return params


# ----------------------------------------------------------------------------
# Forward pass
# ----------------------------------------------------------------------------
def resnet_forward(x_nchw, params, depth):
    # NCHW -> NHWC, bf16 activations between layers (f32 accumulation in-kernel)
    x = jnp.transpose(x_nchw, (0, 2, 3, 1)).astype(jnp.bfloat16)
    N = x.shape[0]

    # conv0 (7x7, s2, p3, no bias) + BN + act_fn (module default = identity)
    p, Ho, Wo = im2col(x, 7, 7, 2, 3)
    y = fused_conv_bn(p.reshape(-1, p.shape[-1]), params["w0"],
                      params["bn0_scale"], params["bn0_shift"], relu=False)
    x = y.reshape(N, Ho, Wo, 64)

    # MaxPool(3, stride=2, padding=1)
    x = maxpool_3x3_s2_p1(x)

    # residual blocks: relu(bn2(conv2(relu(bn1(conv1 x))))) + conv1x1(x)
    for i in range(depth):
        blk = params["blocks"][i]
        Nb, Hb, Wb, cin = x.shape
        cout = blk["w1"].shape[1]

        # conv1+BN+ReLU fused with the identity 1x1 conv (shared A row tiles)
        p1, _, _ = im2col(x, 3, 3, 1, 1)
        h, ident = block_conv1_ident(x.reshape(-1, cin),
                                     p1.reshape(-1, p1.shape[-1]),
                                     blk["w1"], blk["wi"],
                                     blk["bn1_scale"], blk["bn1_shift"])
        h = h.reshape(Nb, Hb, Wb, cout)
        # Dropout2d(p=0.0) is a no-op.

        # conv2+BN+ReLU with the residual add fused into the epilogue
        p2, _, _ = im2col(h, 3, 3, 1, 1)
        out = fused_conv_bn_relu_add(p2.reshape(-1, p2.shape[-1]), blk["w2"],
                                     blk["bn2_scale"], blk["bn2_shift"], ident)
        x = out.reshape(Nb, Hb, Wb, cout)

    # AdaptiveAvgPool2d((1,1)) + flatten + Linear (fused kernel)
    Nb, Hb, Wb, C = x.shape
    logits = avgpool_linear(x.reshape(Nb, Hb * Wb, C), params["wl"], params["bl"])
    return logits


# ----------------------------------------------------------------------------
if __name__ == "__main__":
    INPUT_CHANNELS = 4
    NUM_CLASSES = 10
    DEPTH = 2           # small depth for a small synthetic config (module default is 4)
    BATCH, SPATIAL = 2, 16

    key = jax.random.PRNGKey(0)
    k_param, k_x = jax.random.split(key)
    params = init_params(k_param, INPUT_CHANNELS, NUM_CLASSES, DEPTH)

    # PyTorch-convention NCHW input
    x = jax.random.normal(k_x, (BATCH, INPUT_CHANNELS, SPATIAL, SPATIAL), jnp.float32)

    fwd = jax.jit(functools.partial(resnet_forward, depth=DEPTH))
    logits = fwd(x, params)
    jax.block_until_ready(logits)

    assert logits.shape == (BATCH, NUM_CLASSES), logits.shape
    assert bool(jnp.all(jnp.isfinite(logits)))
    print("KERNEL_OK")
</pallas_src>

<mosaic_0001>
module attributes {stable_mosaic.version = 11 : i64} {
  func.func @_matmul_bn_kernel(%arg0: i32, %arg1: i32, %arg2: i32, %arg3: memref<128x256xbf16, #tpu.memory_space<vmem>>, %arg4: memref<256x64xbf16, #tpu.memory_space<vmem>>, %arg5: memref<1x64xf32, #tpu.memory_space<vmem>>, %arg6: memref<1x64xf32, #tpu.memory_space<vmem>>, %arg7: memref<128x64xbf16, #tpu.memory_space<vmem>>, %arg8: memref<128x64xf32, #tpu.memory_space<vmem>>) attributes {dimension_semantics = [#tpu.dimension_semantics<parallel>, #tpu.dimension_semantics<parallel>, #tpu.dimension_semantics<arbitrary>], iteration_bounds = array<i64: 1, 1, 1>, scalar_prefetch = 0 : i64, scratch_operands = 1 : i64, tpu.core_type = #tpu.core_type<tc>, window_params = [{transform_indices = @transform_0, window_bounds = array<i64: 128, 256>}, {transform_indices = @transform_1, window_bounds = array<i64: 256, 64>}, {transform_indices = @transform_2, window_bounds = array<i64: 1, 64>}, {transform_indices = @transform_3, window_bounds = array<i64: 1, 64>}, {transform_indices = @transform_4, window_bounds = array<i64: 128, 64>}]} {
    %c0_i32 = arith.constant 0 : i32
    %0 = arith.cmpi eq, %arg2, %c0_i32 : i32
    %1 = arith.extui %0 : i1 to i32
    %c0_i32_0 = arith.constant 0 : i32
    %2 = arith.cmpi ne, %1, %c0_i32_0 : i32
    scf.if %2 {
      %cst_10 = arith.constant 0.000000e+00 : f32
      %12 = vector.broadcast %cst_10 : f32 to vector<128x64xf32>
      %c0_11 = arith.constant 0 : index
      %c0_12 = arith.constant 0 : index
      %13 = vector.load %arg8[%c0_11, %c0_12] : memref<128x64xf32, #tpu.memory_space<vmem>>, vector<128x64xf32>
      tpu.vector_store %arg8[%c0_11, %c0_12], %12 {strides = array<i32>} : memref<128x64xf32, #tpu.memory_space<vmem>>, vector<128x64xf32>,
    } else {
    }
    %c0 = arith.constant 0 : index
    %c0_1 = arith.constant 0 : index
    %3 = vector.load %arg8[%c0, %c0_1] : memref<128x64xf32, #tpu.memory_space<vmem>>, vector<128x64xf32>
    %c0_2 = arith.constant 0 : index
    %c0_3 = arith.constant 0 : index
    %4 = vector.load %arg3[%c0_2, %c0_3] : memref<128x256xbf16, #tpu.memory_space<vmem>>, vector<128x256xbf16>
    %c0_4 = arith.constant 0 : index
    %c0_5 = arith.constant 0 : index
    %5 = vector.load %arg4[%c0_4, %c0_5] : memref<256x64xbf16, #tpu.memory_space<vmem>>, vector<256x64xbf16>
    %cst = arith.constant dense<0.000000e+00> : vector<128x64xf32>
    %6 = tpu.matmul %4, %5, %cst {dimension_numbers = #tpu.dot_dimension_numbers<[1], [0], [0], [1], [0, 0, 1, 1], [], []>} : vector<128x256xbf16>, vector<256x64xbf16>, vector<128x64xf32> -> vector<128x64xf32>
    %7 = arith.addf %3, %6 : vector<128x64xf32>
    %c0_6 = arith.constant 0 : index
    %c0_7 = arith.constant 0 : index
    %8 = vector.load %arg8[%c0_6, %c0_7] : memref<128x64xf32, #tpu.memory_space<vmem>>, vector<128x64xf32>
    tpu.vector_store %arg8[%c0_6, %c0_7], %7 {strides = array<i32>} : memref<128x64xf32, #tpu.memory_space<vmem>>, vector<128x64xf32>,
    %c0_i32_8 = arith.constant 0 : i32
    %9 = arith.cmpi eq, %arg2, %c0_i32_8 : i32
    %10 = arith.extui %9 : i1 to i32
    %c0_i32_9 = arith.constant 0 : i32
    %11 = arith.cmpi ne, %10, %c0_i32_9 : i32
    scf.if %11 {
      %c0_10 = arith.constant 0 : index
      %c0_11 = arith.constant 0 : index
      %12 = vector.load %arg8[%c0_10, %c0_11] : memref<128x64xf32, #tpu.memory_space<vmem>>, vector<128x64xf32>
      %c0_12 = arith.constant 0 : index
      %c0_13 = arith.constant 0 : index
      %13 = vector.load %arg5[%c0_12, %c0_13] : memref<1x64xf32, #tpu.memory_space<vmem>>, vector<1x64xf32>
      %14 = vector.broadcast %13 : vector<1x64xf32> to vector<128x64xf32>
      %15 = arith.mulf %12, %14 : vector<128x64xf32>
      %c0_14 = arith.constant 0 : index
      %c0_15 = arith.constant 0 : index
      %16 = vector.load %arg6[%c0_14, %c0_15] : memref<1x64xf32, #tpu.memory_space<vmem>>, vector<1x64xf32>
      %17 = vector.broadcast %16 : vector<1x64xf32> to vector<128x64xf32>
      %18 = arith.addf %15, %17 : vector<128x64xf32>
      %19 = arith.truncf %18 : vector<128x64xf32> to vector<128x64xbf16>
      %c0_16 = arith.constant 0 : index
      %c0_17 = arith.constant 0 : index
      %20 = vector.load %arg7[%c0_16, %c0_17] : memref<128x64xbf16, #tpu.memory_space<vmem>>, vector<128x64xbf16>
      tpu.vector_store %arg7[%c0_16, %c0_17], %19 {strides = array<i32>} : memref<128x64xbf16, #tpu.memory_space<vmem>>, vector<128x64xbf16>,
    } else {
    }
    return
  }
  func.func @transform_0(%arg0: i32, %arg1: i32, %arg2: i32) -> (i32, i32) {
    %c0_i32 = arith.constant 0 : i32
    return %arg0, %arg2 : i32, i32
  }
  func.func @transform_1(%arg0: i32, %arg1: i32, %arg2: i32) -> (i32, i32) {
    %c0_i32 = arith.constant 0 : i32
    return %arg2, %arg1 : i32, i32
  }
  func.func @transform_2(%arg0: i32, %arg1: i32, %arg2: i32) -> (i32, i32) {
    %c0_i32 = arith.constant 0 : i32
    %c0_i32_0 = arith.constant 0 : i32
    return %c0_i32, %arg1 : i32, i32
  }
  func.func @transform_3(%arg0: i32, %arg1: i32, %arg2: i32) -> (i32, i32) {
    %c0_i32 = arith.constant 0 : i32
    %c0_i32_0 = arith.constant 0 : i32
    return %c0_i32, %arg1 : i32, i32
  }
  func.func @transform_4(%arg0: i32, %arg1: i32, %arg2: i32) -> (i32, i32) {
    %c0_i32 = arith.constant 0 : i32
    return %arg0, %arg1 : i32, i32
  }
}

module attributes {stable_mosaic.version = 11 : i64} {
  func.func @_maxpool_kernel(%arg0: i32, %arg1: memref<32x9x64xbf16, #tpu.memory_space<vmem>>, %arg2: memref<32x64xbf16, #tpu.memory_space<vmem>>) attributes {dimension_semantics = [#tpu.dimension_semantics<parallel>], iteration_bounds = array<i64: 1>, scalar_prefetch = 0 : i64, scratch_operands = 0 : i64, tpu.core_type = #tpu.core_type<tc>, window_params = [{transform_indices = @transform_0, window_bounds = array<i64: 32, 9, 64>}, {transform_indices = @transform_1, window_bounds = array<i64: 32, 64>}]} {
    %c0 = arith.constant 0 : index
    %c0_0 = arith.constant 0 : index
    %c0_1 = arith.constant 0 : index
    %0 = vector.load %arg1[%c0, %c0_0, %c0_1] : memref<32x9x64xbf16, #tpu.memory_space<vmem>>, vector<32x9x64xbf16>
    %cst = arith.constant dense<0xFF80> : vector<32x64xbf16>
    %1 = vector.multi_reduction <maximumf>, %0, %cst [1] : vector<32x9x64xbf16> to vector<32x64xbf16>
    %c0_2 = arith.constant 0 : index
    %c0_3 = arith.constant 0 : index
    %2 = vector.load %arg2[%c0_2, %c0_3] : memref<32x64xbf16, #tpu.memory_space<vmem>>, vector<32x64xbf16>
    tpu.vector_store %arg2[%c0_2, %c0_3], %1 {strides = array<i32>} : memref<32x64xbf16, #tpu.memory_space<vmem>>, vector<32x64xbf16>,
    return
  }
  func.func @transform_0(%arg0: i32) -> (i32, i32, i32) {
    %c0_i32 = arith.constant 0 : i32
    %c0_i32_0 = arith.constant 0 : i32
    %c0_i32_1 = arith.constant 0 : i32
    return %arg0, %c0_i32, %c0_i32_0 : i32, i32, i32
  }
  func.func @transform_1(%arg0: i32) -> (i32, i32) {
    %c0_i32 = arith.constant 0 : i32
    %c0_i32_0 = arith.constant 0 : i32
    return %arg0, %c0_i32 : i32, i32
  }
}

module attributes {stable_mosaic.version = 11 : i64} {
  func.func @_block_conv1_ident_kernel(%arg0: i32, %arg1: i32, %arg2: i32, %arg3: memref<32x64xbf16, #tpu.memory_space<vmem>>, %arg4: memref<32x640xbf16, #tpu.memory_space<vmem>>, %arg5: memref<640x128xbf16, #tpu.memory_space<vmem>>, %arg6: memref<64x128xbf16, #tpu.memory_space<vmem>>, %arg7: memref<1x128xf32, #tpu.memory_space<vmem>>, %arg8: memref<1x128xf32, #tpu.memory_space<vmem>>, %arg9: memref<32x128xbf16, #tpu.memory_space<vmem>>, %arg10: memref<32x128xbf16, #tpu.memory_space<vmem>>, %arg11: memref<32x128xf32, #tpu.memory_space<vmem>>) attributes {dimension_semantics = [#tpu.dimension_semantics<parallel>, #tpu.dimension_semantics<parallel>, #tpu.dimension_semantics<arbitrary>], iteration_bounds = array<i64: 1, 1, 1>, scalar_prefetch = 0 : i64, scratch_operands = 1 : i64, tpu.core_type = #tpu.core_type<tc>, window_params = [{transform_indices = @transform_0, window_bounds = array<i64: 32, 64>}, {transform_indices = @transform_1, window_bounds = array<i64: 32, 640>}, {transform_indices = @transform_2, window_bounds = array<i64: 640, 128>}, {transform_indices = @transform_3, window_bounds = array<i64: 64, 128>}, {transform_indices = @transform_4, window_bounds = array<i64: 1, 128>}, {transform_indices = @transform_5, window_bounds = array<i64: 1, 128>}, {transform_indices = @transform_6, window_bounds = array<i64: 32, 128>}, {transform_indices = @transform_7, window_bounds = array<i64: 32, 128>}]} {
    %c0_i32 = arith.constant 0 : i32
    %0 = arith.cmpi eq, %arg2, %c0_i32 : i32
    %1 = arith.extui %0 : i1 to i32
    %c0_i32_0 = arith.constant 0 : i32
    %2 = arith.cmpi ne, %1, %c0_i32_0 : i32
    scf.if %2 {
      %cst_10 = arith.constant 0.000000e+00 : f32
      %12 = vector.broadcast %cst_10 : f32 to vector<32x128xf32>
      %c0_11 = arith.constant 0 : index
      %c0_12 = arith.constant 0 : index
      %13 = vector.load %arg11[%c0_11, %c0_12] : memref<32x128xf32, #tpu.memory_space<vmem>>, vector<32x128xf32>
      tpu.vector_store %arg11[%c0_11, %c0_12], %12 {strides = array<i32>} : memref<32x128xf32, #tpu.memory_space<vmem>>, vector<32x128xf32>,
      %c0_13 = arith.constant 0 : index
      %c0_14 = arith.constant 0 : index
      %14 = vector.load %arg3[%c0_13, %c0_14] : memref<32x64xbf16, #tpu.memory_space<vmem>>, vector<32x64xbf16>
      %c0_15 = arith.constant 0 : index
      %c0_16 = arith.constant 0 : index
      %15 = vector.load %arg6[%c0_15, %c0_16] : memref<64x128xbf16, #tpu.memory_space<vmem>>, vector<64x128xbf16>
      %cst_17 = arith.constant dense<0.000000e+00> : vector<32x128xf32>
      %16 = tpu.matmul %14, %15, %cst_17 {dimension_numbers = #tpu.dot_dimension_numbers<[1], [0], [0], [1], [0, 0, 1, 1], [], []>} : vector<32x64xbf16>, vector<64x128xbf16>, vector<32x128xf32> -> vector<32x128xf32>
      %17 = arith.truncf %16 : vector<32x128xf32> to vector<32x128xbf16>
      %c0_18 = arith.constant 0 : index
      %c0_19 = arith.constant 0 : index
      %18 = vector.load %arg10[%c0_18, %c0_19] : memref<32x128xbf16, #tpu.memory_space<vmem>>, vector<32x128xbf16>
      tpu.vector_store %arg10[%c0_18, %c0_19], %17 {strides = array<i32>} : memref<32x128xbf16, #tpu.memory_space<vmem>>, vector<32x128xbf16>,
    } else {
    }
    %c0 = arith.constant 0 : index
    %c0_1 = arith.constant 0 : index
    %3 = vector.load %arg11[%c0, %c0_1] : memref<32x128xf32, #tpu.memory_space<vmem>>, vector<32x128xf32>
    %c0_2 = arith.constant 0 : index
    %c0_3 = arith.constant 0 : index
    %4 = vector.load %arg4[%c0_2, %c0_3] : memref<32x640xbf16, #tpu.memory_space<vmem>>, vector<32x640xbf16>
    %c0_4 = arith.constant 0 : index
    %c0_5 = arith.constant 0 : index
    %5 = vector.load %arg5[%c0_4, %c0_5] : memref<640x128xbf16, #tpu.memory_space<vmem>>, vector<640x128xbf16>
    %cst = arith.constant dense<0.000000e+00> : vector<32x128xf32>
    %6 = tpu.matmul %4, %5, %cst {dimension_numbers = #tpu.dot_dimension_numbers<[1], [0], [0], [1], [0, 0, 1, 1], [], []>} : vector<32x640xbf16>, vector<640x128xbf16>, vector<32x128xf32> -> vector<32x128xf32>
    %7 = arith.addf %3, %6 : vector<32x128xf32>
    %c0_6 = arith.constant 0 : index
    %c0_7 = arith.constant 0 : index
    %8 = vector.load %arg11[%c0_6, %c0_7] : memref<32x128xf32, #tpu.memory_space<vmem>>, vector<32x128xf32>
    tpu.vector_store %arg11[%c0_6, %c0_7], %7 {strides = array<i32>} : memref<32x128xf32, #tpu.memory_space<vmem>>, vector<32x128xf32>,
    %c0_i32_8 = arith.constant 0 : i32
    %9 = arith.cmpi eq, %arg2, %c0_i32_8 : i32
    %10 = arith.extui %9 : i1 to i32
    %c0_i32_9 = arith.constant 0 : i32
    %11 = arith.cmpi ne, %10, %c0_i32_9 : i32
    scf.if %11 {
      %c0_10 = arith.constant 0 : index
      %c0_11 = arith.constant 0 : index
      %12 = vector.load %arg11[%c0_10, %c0_11] : memref<32x128xf32, #tpu.memory_space<vmem>>, vector<32x128xf32>
      %c0_12 = arith.constant 0 : index
      %c0_13 = arith.constant 0 : index
      %13 = vector.load %arg7[%c0_12, %c0_13] : memref<1x128xf32, #tpu.memory_space<vmem>>, vector<1x128xf32>
      %14 = vector.broadcast %13 : vector<1x128xf32> to vector<32x128xf32>
      %15 = arith.mulf %12, %14 : vector<32x128xf32>
      %c0_14 = arith.constant 0 : index
      %c0_15 = arith.constant 0 : index
      %16 = vector.load %arg8[%c0_14, %c0_15] : memref<1x128xf32, #tpu.memory_space<vmem>>, vector<1x128xf32>
      %17 = vector.broadcast %16 : vector<1x128xf32> to vector<32x128xf32>
      %18 = arith.addf %15, %17 : vector<32x128xf32>
      %cst_16 = arith.constant 0.000000e+00 : f32
      %19 = vector.broadcast %cst_16 : f32 to vector<32x128xf32>
      %20 = arith.maximumf %18, %19 : vector<32x128xf32>
      %21 = arith.truncf %20 : vector<32x128xf32> to vector<32x128xbf16>
      %c0_17 = arith.constant 0 : index
      %c0_18 = arith.constant 0 : index
      %22 = vector.load %arg9[%c0_17, %c0_18] : memref<32x128xbf16, #tpu.memory_space<vmem>>, vector<32x128xbf16>
      tpu.vector_store %arg9[%c0_17, %c0_18], %21 {strides = array<i32>} : memref<32x128xbf16, #tpu.memory_space<vmem>>, vector<32x128xbf16>,
    } else {
    }
    return
  }
  func.func @transform_0(%arg0: i32, %arg1: i32, %arg2: i32) -> (i32, i32) {
    %c0_i32 = arith.constant 0 : i32
    %c0_i32_0 = arith.constant 0 : i32
    return %arg0, %c0_i32 : i32, i32
  }
  func.func @transform_1(%arg0: i32, %arg1: i32, %arg2: i32) -> (i32, i32) {
    %c0_i32 = arith.constant 0 : i32
    return %arg0, %arg2 : i32, i32
  }
  func.func @transform_2(%arg0: i32, %arg1: i32, %arg2: i32) -> (i32, i32) {
    %c0_i32 = arith.constant 0 : i32
    return %arg2, %arg1 : i32, i32
  }
  func.func @transform_3(%arg0: i32, %arg1: i32, %arg2: i32) -> (i32, i32) {
    %c0_i32 = arith.constant 0 : i32
    %c0_i32_0 = arith.constant 0 : i32
    return %c0_i32, %arg1 : i32, i32
  }
  func.func @transform_4(%arg0: i32, %arg1: i32, %arg2: i32) -> (i32, i32) {
    %c0_i32 = arith.constant 0 : i32
    %c0_i32_0 = arith.constant 0 : i32
    return %c0_i32, %arg1 : i32, i32
  }
  func.func @transform_5(%arg0: i32, %arg1: i32, %arg2: i32) -> (i32, i32) {
    %c0_i32 = arith.constant 0 : i32
    %c0_i32_0 = arith.constant 0 : i32
    return %c0_i32, %arg1 : i32, i32
  }
  func.func @transform_6(%arg0: i32, %arg1: i32, %arg2: i32) -> (i32, i32) {
    %c0_i32 = arith.constant 0 : i32
    return %arg0, %arg1 : i32, i32
  }
  func.func @transform_7(%arg0: i32, %arg1: i32, %arg2: i32) -> (i32, i32) {
    %c0_i32 = arith.constant 0 : i32
    return %arg0, %arg1 : i32, i32
  }
}

module attributes {stable_mosaic.version = 11 : i64} {
  func.func @_matmul_bn_relu_add_kernel(%arg0: i32, %arg1: i32, %arg2: i32, %arg3: memref<32x640xbf16, #tpu.memory_space<vmem>>, %arg4: memref<640x128xbf16, #tpu.memory_space<vmem>>, %arg5: memref<1x128xf32, #tpu.memory_space<vmem>>, %arg6: memref<1x128xf32, #tpu.memory_space<vmem>>, %arg7: memref<32x128xbf16, #tpu.memory_space<vmem>>, %arg8: memref<32x128xbf16, #tpu.memory_space<vmem>>, %arg9: memref<32x128xf32, #tpu.memory_space<vmem>>) attributes {dimension_semantics = [#tpu.dimension_semantics<parallel>, #tpu.dimension_semantics<parallel>, #tpu.dimension_semantics<arbitrary>], iteration_bounds = array<i64: 1, 1, 2>, scalar_prefetch = 0 : i64, scratch_operands = 1 : i64, tpu.core_type = #tpu.core_type<tc>, window_params = [{transform_indices = @transform_0, window_bounds = array<i64: 32, 640>}, {transform_indices = @transform_1, window_bounds = array<i64: 640, 128>}, {transform_indices = @transform_2, window_bounds = array<i64: 1, 128>}, {transform_indices = @transform_3, window_bounds = array<i64: 1, 128>}, {transform_indices = @transform_4, window_bounds = array<i64: 32, 128>}, {transform_indices = @transform_5, window_bounds = array<i64: 32, 128>}]} {
    %c0_i32 = arith.constant 0 : i32
    %0 = arith.cmpi eq, %arg2, %c0_i32 : i32
    %1 = arith.extui %0 : i1 to i32
    %c0_i32_0 = arith.constant 0 : i32
    %2 = arith.cmpi ne, %1, %c0_i32_0 : i32
    scf.if %2 {
      %cst_9 = arith.constant 0.000000e+00 : f32
      %12 = vector.broadcast %cst_9 : f32 to vector<32x128xf32>
      %c0_10 = arith.constant 0 : index
      %c0_11 = arith.constant 0 : index
      %13 = vector.load %arg9[%c0_10, %c0_11] : memref<32x128xf32, #tpu.memory_space<vmem>>, vector<32x128xf32>
      tpu.vector_store %arg9[%c0_10, %c0_11], %12 {strides = array<i32>} : memref<32x128xf32, #tpu.memory_space<vmem>>, vector<32x128xf32>,
    } else {
    }
    %c0 = arith.constant 0 : index
    %c0_1 = arith.constant 0 : index
    %3 = vector.load %arg9[%c0, %c0_1] : memref<32x128xf32, #tpu.memory_space<vmem>>, vector<32x128xf32>
    %c0_2 = arith.constant 0 : index
    %c0_3 = arith.constant 0 : index
    %4 = vector.load %arg3[%c0_2, %c0_3] : memref<32x640xbf16, #tpu.memory_space<vmem>>, vector<32x640xbf16>
    %c0_4 = arith.constant 0 : index
    %c0_5 = arith.constant 0 : index
    %5 = vector.load %arg4[%c0_4, %c0_5] : memref<640x128xbf16, #tpu.memory_space<vmem>>, vector<640x128xbf16>
    %cst = arith.constant dense<0.000000e+00> : vector<32x128xf32>
    %6 = tpu.matmul %4, %5, %cst {dimension_numbers = #tpu.dot_dimension_numbers<[1], [0], [0], [1], [0, 0, 1, 1], [], []>} : vector<32x640xbf16>, vector<640x128xbf16>, vector<32x128xf32> -> vector<32x128xf32>
    %7 = arith.addf %3, %6 : vector<32x128xf32>
    %c0_6 = arith.constant 0 : index
    %c0_7 = arith.constant 0 : index
    %8 = vector.load %arg9[%c0_6, %c0_7] : memref<32x128xf32, #tpu.memory_space<vmem>>, vector<32x128xf32>
    tpu.vector_store %arg9[%c0_6, %c0_7], %7 {strides = array<i32>} : memref<32x128xf32, #tpu.memory_space<vmem>>, vector<32x128xf32>,
    %c1_i32 = arith.constant 1 : i32
    %9 = arith.cmpi eq, %arg2, %c1_i32 : i32
    %10 = arith.extui %9 : i1 to i32
    %c0_i32_8 = arith.constant 0 : i32
    %11 = arith.cmpi ne, %10, %c0_i32_8 : i32
    scf.if %11 {
      %c0_9 = arith.constant 0 : index
      %c0_10 = arith.constant 0 : index
      %12 = vector.load %arg9[%c0_9, %c0_10] : memref<32x128xf32, #tpu.memory_space<vmem>>, vector<32x128xf32>
      %c0_11 = arith.constant 0 : index
      %c0_12 = arith.constant 0 : index
      %13 = vector.load %arg5[%c0_11, %c0_12] : memref<1x128xf32, #tpu.memory_space<vmem>>, vector<1x128xf32>
      %14 = vector.broadcast %13 : vector<1x128xf32> to vector<32x128xf32>
      %15 = arith.mulf %12, %14 : vector<32x128xf32>
      %c0_13 = arith.constant 0 : index
      %c0_14 = arith.constant 0 : index
      %16 = vector.load %arg6[%c0_13, %c0_14] : memref<1x128xf32, #tpu.memory_space<vmem>>, vector<1x128xf32>
      %17 = vector.broadcast %16 : vector<1x128xf32> to vector<32x128xf32>
      %18 = arith.addf %15, %17 : vector<32x128xf32>
      %cst_15 = arith.constant 0.000000e+00 : f32
      %19 = vector.broadcast %cst_15 : f32 to vector<32x128xf32>
      %20 = arith.maximumf %18, %19 : vector<32x128xf32>
      %c0_16 = arith.constant 0 : index
      %c0_17 = arith.constant 0 : index
      %21 = vector.load %arg7[%c0_16, %c0_17] : memref<32x128xbf16, #tpu.memory_space<vmem>>, vector<32x128xbf16>
      %22 = arith.extf %21 : vector<32x128xbf16> to vector<32x128xf32>
      %23 = arith.addf %20, %22 : vector<32x128xf32>
      %24 = arith.truncf %23 : vector<32x128xf32> to vector<32x128xbf16>
      %c0_18 = arith.constant 0 : index
      %c0_19 = arith.constant 0 : index
      %25 = vector.load %arg8[%c0_18, %c0_19] : memref<32x128xbf16, #tpu.memory_space<vmem>>, vector<32x128xbf16>
      tpu.vector_store %arg8[%c0_18, %c0_19], %24 {strides = array<i32>} : memref<32x128xbf16, #tpu.memory_space<vmem>>, vector<32x128xbf16>,
    } else {
    }
    return
  }
  func.func @transform_0(%arg0: i32, %arg1: i32, %arg2: i32) -> (i32, i32) {
    %c0_i32 = arith.constant 0 : i32
    return %arg0, %arg2 : i32, i32
  }
  func.func @transform_1(%arg0: i32, %arg1: i32, %arg2: i32) -> (i32, i32) {
    %c0_i32 = arith.constant 0 : i32
    return %arg2, %arg1 : i32, i32
  }
  func.func @transform_2(%arg0: i32, %arg1: i32, %arg2: i32) -> (i32, i32) {
    %c0_i32 = arith.constant 0 : i32
    %c0_i32_0 = arith.constant 0 : i32
    return %c0_i32, %arg1 : i32, i32
  }
  func.func @transform_3(%arg0: i32, %arg1: i32, %arg2: i32) -> (i32, i32) {
    %c0_i32 = arith.constant 0 : i32
    %c0_i32_0 = arith.constant 0 : i32
    return %c0_i32, %arg1 : i32, i32
  }
  func.func @transform_4(%arg0: i32, %arg1: i32, %arg2: i32) -> (i32, i32) {
    %c0_i32 = arith.constant 0 : i32
    return %arg0, %arg1 : i32, i32
  }
  func.func @transform_5(%arg0: i32, %arg1: i32, %arg2: i32) -> (i32, i32) {
    %c0_i32 = arith.constant 0 : i32
    return %arg0, %arg1 : i32, i32
  }
}

module attributes {stable_mosaic.version = 11 : i64} {
  func.func @_block_conv1_ident_kernel(%arg0: i32, %arg1: i32, %arg2: i32, %arg3: memref<32x128xbf16, #tpu.memory_space<vmem>>, %arg4: memref<32x640xbf16, #tpu.memory_space<vmem>>, %arg5: memref<640x256xbf16, #tpu.memory_space<vmem>>, %arg6: memref<128x256xbf16, #tpu.memory_space<vmem>>, %arg7: memref<1x256xf32, #tpu.memory_space<vmem>>, %arg8: memref<1x256xf32, #tpu.memory_space<vmem>>, %arg9: memref<32x256xbf16, #tpu.memory_space<vmem>>, %arg10: memref<32x256xbf16, #tpu.memory_space<vmem>>, %arg11: memref<32x256xf32, #tpu.memory_space<vmem>>) attributes {dimension_semantics = [#tpu.dimension_semantics<parallel>, #tpu.dimension_semantics<parallel>, #tpu.dimension_semantics<arbitrary>], iteration_bounds = array<i64: 1, 1, 2>, scalar_prefetch = 0 : i64, scratch_operands = 1 : i64, tpu.core_type = #tpu.core_type<tc>, window_params = [{transform_indices = @transform_0, window_bounds = array<i64: 32, 128>}, {transform_indices = @transform_1, window_bounds = array<i64: 32, 640>}, {transform_indices = @transform_2, window_bounds = array<i64: 640, 256>}, {transform_indices = @transform_3, window_bounds = array<i64: 128, 256>}, {transform_indices = @transform_4, window_bounds = array<i64: 1, 256>}, {transform_indices = @transform_5, window_bounds = array<i64: 1, 256>}, {transform_indices = @transform_6, window_bounds = array<i64: 32, 256>}, {transform_indices = @transform_7, window_bounds = array<i64: 32, 256>}]} {
    %c0_i32 = arith.constant 0 : i32
    %0 = arith.cmpi eq, %arg2, %c0_i32 : i32
    %1 = arith.extui %0 : i1 to i32
    %c0_i32_0 = arith.constant 0 : i32
    %2 = arith.cmpi ne, %1, %c0_i32_0 : i32
    scf.if %2 {
      %cst_9 = arith.constant 0.000000e+00 : f32
      %12 = vector.broadcast %cst_9 : f32 to vector<32x256xf32>
      %c0_10 = arith.constant 0 : index
      %c0_11 = arith.constant 0 : index
      %13 = vector.load %arg11[%c0_10, %c0_11] : memref<32x256xf32, #tpu.memory_space<vmem>>, vector<32x256xf32>
      tpu.vector_store %arg11[%c0_10, %c0_11], %12 {strides = array<i32>} : memref<32x256xf32, #tpu.memory_space<vmem>>, vector<32x256xf32>,
      %c0_12 = arith.constant 0 : index
      %c0_13 = arith.constant 0 : index
      %14 = vector.load %arg3[%c0_12, %c0_13] : memref<32x128xbf16, #tpu.memory_space<vmem>>, vector<32x128xbf16>
      %c0_14 = arith.constant 0 : index
      %c0_15 = arith.constant 0 : index
      %15 = vector.load %arg6[%c0_14, %c0_15] : memref<128x256xbf16, #tpu.memory_space<vmem>>, vector<128x256xbf16>
      %cst_16 = arith.constant dense<0.000000e+00> : vector<32x256xf32>
      %16 = tpu.matmul %14, %15, %cst_16 {dimension_numbers = #tpu.dot_dimension_numbers<[1], [0], [0], [1], [0, 0, 1, 1], [], []>} : vector<32x128xbf16>, vector<128x256xbf16>, vector<32x256xf32> -> vector<32x256xf32>
      %17 = arith.truncf %16 : vector<32x256xf32> to vector<32x256xbf16>
      %c0_17 = arith.constant 0 : index
      %c0_18 = arith.constant 0 : index
      %18 = vector.load %arg10[%c0_17, %c0_18] : memref<32x256xbf16, #tpu.memory_space<vmem>>, vector<32x256xbf16>
      tpu.vector_store %arg10[%c0_17, %c0_18], %17 {strides = array<i32>} : memref<32x256xbf16, #tpu.memory_space<vmem>>, vector<32x256xbf16>,
    } else {
    }
    %c0 = arith.constant 0 : index
    %c0_1 = arith.constant 0 : index
    %3 = vector.load %arg11[%c0, %c0_1] : memref<32x256xf32, #tpu.memory_space<vmem>>, vector<32x256xf32>
    %c0_2 = arith.constant 0 : index
    %c0_3 = arith.constant 0 : index
    %4 = vector.load %arg4[%c0_2, %c0_3] : memref<32x640xbf16, #tpu.memory_space<vmem>>, vector<32x640xbf16>
    %c0_4 = arith.constant 0 : index
    %c0_5 = arith.constant 0 : index
    %5 = vector.load %arg5[%c0_4, %c0_5] : memref<640x256xbf16, #tpu.memory_space<vmem>>, vector<640x256xbf16>
    %cst = arith.constant dense<0.000000e+00> : vector<32x256xf32>
    %6 = tpu.matmul %4, %5, %cst {dimension_numbers = #tpu.dot_dimension_numbers<[1], [0], [0], [1], [0, 0, 1, 1], [], []>} : vector<32x640xbf16>, vector<640x256xbf16>, vector<32x256xf32> -> vector<32x256xf32>
    %7 = arith.addf %3, %6 : vector<32x256xf32>
    %c0_6 = arith.constant 0 : index
    %c0_7 = arith.constant 0 : index
    %8 = vector.load %arg11[%c0_6, %c0_7] : memref<32x256xf32, #tpu.memory_space<vmem>>, vector<32x256xf32>
    tpu.vector_store %arg11[%c0_6, %c0_7], %7 {strides = array<i32>} : memref<32x256xf32, #tpu.memory_space<vmem>>, vector<32x256xf32>,
    %c1_i32 = arith.constant 1 : i32
    %9 = arith.cmpi eq, %arg2, %c1_i32 : i32
    %10 = arith.extui %9 : i1 to i32
    %c0_i32_8 = arith.constant 0 : i32
    %11 = arith.cmpi ne, %10, %c0_i32_8 : i32
    scf.if %11 {
      %c0_9 = arith.constant 0 : index
      %c0_10 = arith.constant 0 : index
      %12 = vector.load %arg11[%c0_9, %c0_10] : memref<32x256xf32, #tpu.memory_space<vmem>>, vector<32x256xf32>
      %c0_11 = arith.constant 0 : index
      %c0_12 = arith.constant 0 : index
      %13 = vector.load %arg7[%c0_11, %c0_12] : memref<1x256xf32, #tpu.memory_space<vmem>>, vector<1x256xf32>
      %14 = vector.broadcast %13 : vector<1x256xf32> to vector<32x256xf32>
      %15 = arith.mulf %12, %14 : vector<32x256xf32>
      %c0_13 = arith.constant 0 : index
      %c0_14 = arith.constant 0 : index
      %16 = vector.load %arg8[%c0_13, %c0_14] : memref<1x256xf32, #tpu.memory_space<vmem>>, vector<1x256xf32>
      %17 = vector.broadcast %16 : vector<1x256xf32> to vector<32x256xf32>
      %18 = arith.addf %15, %17 : vector<32x256xf32>
      %cst_15 = arith.constant 0.000000e+00 : f32
      %19 = vector.broadcast %cst_15 : f32 to vector<32x256xf32>
      %20 = arith.maximumf %18, %19 : vector<32x256xf32>
      %21 = arith.truncf %20 : vector<32x256xf32> to vector<32x256xbf16>
      %c0_16 = arith.constant 0 : index
      %c0_17 = arith.constant 0 : index
      %22 = vector.load %arg9[%c0_16, %c0_17] : memref<32x256xbf16, #tpu.memory_space<vmem>>, vector<32x256xbf16>
      tpu.vector_store %arg9[%c0_16, %c0_17], %21 {strides = array<i32>} : memref<32x256xbf16, #tpu.memory_space<vmem>>, vector<32x256xbf16>,
    } else {
    }
    return
  }
  func.func @transform_0(%arg0: i32, %arg1: i32, %arg2: i32) -> (i32, i32) {
    %c0_i32 = arith.constant 0 : i32
    %c0_i32_0 = arith.constant 0 : i32
    return %arg0, %c0_i32 : i32, i32
  }
  func.func @transform_1(%arg0: i32, %arg1: i32, %arg2: i32) -> (i32, i32) {
    %c0_i32 = arith.constant 0 : i32
    return %arg0, %arg2 : i32, i32
  }
  func.func @transform_2(%arg0: i32, %arg1: i32, %arg2: i32) -> (i32, i32) {
    %c0_i32 = arith.constant 0 : i32
    return %arg2, %arg1 : i32, i32
  }
  func.func @transform_3(%arg0: i32, %arg1: i32, %arg2: i32) -> (i32, i32) {
    %c0_i32 = arith.constant 0 : i32
    %c0_i32_0 = arith.constant 0 : i32
    return %c0_i32, %arg1 : i32, i32
  }
  func.func @transform_4(%arg0: i32, %arg1: i32, %arg2: i32) -> (i32, i32) {
    %c0_i32 = arith.constant 0 : i32
    %c0_i32_0 = arith.constant 0 : i32
    return %c0_i32, %arg1 : i32, i32
  }
  func.func @transform_5(%arg0: i32, %arg1: i32, %arg2: i32) -> (i32, i32) {
    %c0_i32 = arith.constant 0 : i32
    %c0_i32_0 = arith.constant 0 : i32
    return %c0_i32, %arg1 : i32, i32
  }
  func.func @transform_6(%arg0: i32, %arg1: i32, %arg2: i32) -> (i32, i32) {
    %c0_i32 = arith.constant 0 : i32
    return %arg0, %arg1 : i32, i32
  }
  func.func @transform_7(%arg0: i32, %arg1: i32, %arg2: i32) -> (i32, i32) {
    %c0_i32 = arith.constant 0 : i32
    return %arg0, %arg1 : i32, i32
  }
}

module attributes {stable_mosaic.version = 11 : i64} {
  func.func @_matmul_bn_relu_add_kernel(%arg0: i32, %arg1: i32, %arg2: i32, %arg3: memref<32x768xbf16, #tpu.memory_space<vmem>>, %arg4: memref<768x256xbf16, #tpu.memory_space<vmem>>, %arg5: memref<1x256xf32, #tpu.memory_space<vmem>>, %arg6: memref<1x256xf32, #tpu.memory_space<vmem>>, %arg7: memref<32x256xbf16, #tpu.memory_space<vmem>>, %arg8: memref<32x256xbf16, #tpu.memory_space<vmem>>, %arg9: memref<32x256xf32, #tpu.memory_space<vmem>>) attributes {dimension_semantics = [#tpu.dimension_semantics<parallel>, #tpu.dimension_semantics<parallel>, #tpu.dimension_semantics<arbitrary>], iteration_bounds = array<i64: 1, 1, 3>, scalar_prefetch = 0 : i64, scratch_operands = 1 : i64, tpu.core_type = #tpu.core_type<tc>, window_params = [{transform_indices = @transform_0, window_bounds = array<i64: 32, 768>}, {transform_indices = @transform_1, window_bounds = array<i64: 768, 256>}, {transform_indices = @transform_2, window_bounds = array<i64: 1, 256>}, {transform_indices = @transform_3, window_bounds = array<i64: 1, 256>}, {transform_indices = @transform_4, window_bounds = array<i64: 32, 256>}, {transform_indices = @transform_5, window_bounds = array<i64: 32, 256>}]} {
    %c0_i32 = arith.constant 0 : i32
    %0 = arith.cmpi eq, %arg2, %c0_i32 : i32
    %1 = arith.extui %0 : i1 to i32
    %c0_i32_0 = arith.constant 0 : i32
    %2 = arith.cmpi ne, %1, %c0_i32_0 : i32
    scf.if %2 {
      %cst_9 = arith.constant 0.000000e+00 : f32
      %12 = vector.broadcast %cst_9 : f32 to vector<32x256xf32>
      %c0_10 = arith.constant 0 : index
      %c0_11 = arith.constant 0 : index
      %13 = vector.load %arg9[%c0_10, %c0_11] : memref<32x256xf32, #tpu.memory_space<vmem>>, vector<32x256xf32>
      tpu.vector_store %arg9[%c0_10, %c0_11], %12 {strides = array<i32>} : memref<32x256xf32, #tpu.memory_space<vmem>>, vector<32x256xf32>,
    } else {
    }
    %c0 = arith.constant 0 : index
    %c0_1 = arith.constant 0 : index
    %3 = vector.load %arg9[%c0, %c0_1] : memref<32x256xf32, #tpu.memory_space<vmem>>, vector<32x256xf32>
    %c0_2 = arith.constant 0 : index
    %c0_3 = arith.constant 0 : index
    %4 = vector.load %arg3[%c0_2, %c0_3] : memref<32x768xbf16, #tpu.memory_space<vmem>>, vector<32x768xbf16>
    %c0_4 = arith.constant 0 : index
    %c0_5 = arith.constant 0 : index
    %5 = vector.load %arg4[%c0_4, %c0_5] : memref<768x256xbf16, #tpu.memory_space<vmem>>, vector<768x256xbf16>
    %cst = arith.constant dense<0.000000e+00> : vector<32x256xf32>
    %6 = tpu.matmul %4, %5, %cst {dimension_numbers = #tpu.dot_dimension_numbers<[1], [0], [0], [1], [0, 0, 1, 1], [], []>} : vector<32x768xbf16>, vector<768x256xbf16>, vector<32x256xf32> -> vector<32x256xf32>
    %7 = arith.addf %3, %6 : vector<32x256xf32>
    %c0_6 = arith.constant 0 : index
    %c0_7 = arith.constant 0 : index
    %8 = vector.load %arg9[%c0_6, %c0_7] : memref<32x256xf32, #tpu.memory_space<vmem>>, vector<32x256xf32>
    tpu.vector_store %arg9[%c0_6, %c0_7], %7 {strides = array<i32>} : memref<32x256xf32, #tpu.memory_space<vmem>>, vector<32x256xf32>,
    %c2_i32 = arith.constant 2 : i32
    %9 = arith.cmpi eq, %arg2, %c2_i32 : i32
    %10 = arith.extui %9 : i1 to i32
    %c0_i32_8 = arith.constant 0 : i32
    %11 = arith.cmpi ne, %10, %c0_i32_8 : i32
    scf.if %11 {
      %c0_9 = arith.constant 0 : index
      %c0_10 = arith.constant 0 : index
      %12 = vector.load %arg9[%c0_9, %c0_10] : memref<32x256xf32, #tpu.memory_space<vmem>>, vector<32x256xf32>
      %c0_11 = arith.constant 0 : index
      %c0_12 = arith.constant 0 : index
      %13 = vector.load %arg5[%c0_11, %c0_12] : memref<1x256xf32, #tpu.memory_space<vmem>>, vector<1x256xf32>
      %14 = vector.broadcast %13 : vector<1x256xf32> to vector<32x256xf32>
      %15 = arith.mulf %12, %14 : vector<32x256xf32>
      %c0_13 = arith.constant 0 : index
      %c0_14 = arith.constant 0 : index
      %16 = vector.load %arg6[%c0_13, %c0_14] : memref<1x256xf32, #tpu.memory_space<vmem>>, vector<1x256xf32>
      %17 = vector.broadcast %16 : vector<1x256xf32> to vector<32x256xf32>
      %18 = arith.addf %15, %17 : vector<32x256xf32>
      %cst_15 = arith.constant 0.000000e+00 : f32
      %19 = vector.broadcast %cst_15 : f32 to vector<32x256xf32>
      %20 = arith.maximumf %18, %19 : vector<32x256xf32>
      %c0_16 = arith.constant 0 : index
      %c0_17 = arith.constant 0 : index
      %21 = vector.load %arg7[%c0_16, %c0_17] : memref<32x256xbf16, #tpu.memory_space<vmem>>, vector<32x256xbf16>
      %22 = arith.extf %21 : vector<32x256xbf16> to vector<32x256xf32>
      %23 = arith.addf %20, %22 : vector<32x256xf32>
      %24 = arith.truncf %23 : vector<32x256xf32> to vector<32x256xbf16>
      %c0_18 = arith.constant 0 : index
      %c0_19 = arith.constant 0 : index
      %25 = vector.load %arg8[%c0_18, %c0_19] : memref<32x256xbf16, #tpu.memory_space<vmem>>, vector<32x256xbf16>
      tpu.vector_store %arg8[%c0_18, %c0_19], %24 {strides = array<i32>} : memref<32x256xbf16, #tpu.memory_space<vmem>>, vector<32x256xbf16>,
    } else {
    }
    return
  }
  func.func @transform_0(%arg0: i32, %arg1: i32, %arg2: i32) -> (i32, i32) {
    %c0_i32 = arith.constant 0 : i32
    return %arg0, %arg2 : i32, i32
  }
  func.func @transform_1(%arg0: i32, %arg1: i32, %arg2: i32) -> (i32, i32) {
    %c0_i32 = arith.constant 0 : i32
    return %arg2, %arg1 : i32, i32
  }
  func.func @transform_2(%arg0: i32, %arg1: i32, %arg2: i32) -> (i32, i32) {
    %c0_i32 = arith.constant 0 : i32
    %c0_i32_0 = arith.constant 0 : i32
    return %c0_i32, %arg1 : i32, i32
  }
  func.func @transform_3(%arg0: i32, %arg1: i32, %arg2: i32) -> (i32, i32) {
    %c0_i32 = arith.constant 0 : i32
    %c0_i32_0 = arith.constant 0 : i32
    return %c0_i32, %arg1 : i32, i32
  }
  func.func @transform_4(%arg0: i32, %arg1: i32, %arg2: i32) -> (i32, i32) {
    %c0_i32 = arith.constant 0 : i32
    return %arg0, %arg1 : i32, i32
  }
  func.func @transform_5(%arg0: i32, %arg1: i32, %arg2: i32) -> (i32, i32) {
    %c0_i32 = arith.constant 0 : i32
    return %arg0, %arg1 : i32, i32
  }
}

module attributes {stable_mosaic.version = 11 : i64} {
  func.func @_avgpool_linear_kernel(%arg0: i32, %arg1: memref<2x16x256xbf16, #tpu.memory_space<vmem>>, %arg2: memref<256x128xf32, #tpu.memory_space<vmem>>, %arg3: memref<1x128xf32, #tpu.memory_space<vmem>>, %arg4: memref<2x128xf32, #tpu.memory_space<vmem>>) attributes {dimension_semantics = [#tpu.dimension_semantics<arbitrary>], iteration_bounds = array<i64: 1>, scalar_prefetch = 0 : i64, scratch_operands = 0 : i64, tpu.core_type = #tpu.core_type<tc>, window_params = [{pipeline_mode = #tpu.pipeline_mode<synchronous>, transform_indices = @transform_0, window_bounds = array<i64: 2, 16, 256>}, {pipeline_mode = #tpu.pipeline_mode<synchronous>, transform_indices = @transform_1, window_bounds = array<i64: 256, 128>}, {pipeline_mode = #tpu.pipeline_mode<synchronous>, transform_indices = @transform_2, window_bounds = array<i64: 1, 128>}, {pipeline_mode = #tpu.pipeline_mode<synchronous>, transform_indices = @transform_3, window_bounds = array<i64: 2, 128>}]} {
    %c0 = arith.constant 0 : index
    %c0_0 = arith.constant 0 : index
    %c0_1 = arith.constant 0 : index
    %0 = vector.load %arg1[%c0, %c0_0, %c0_1] : memref<2x16x256xbf16, #tpu.memory_space<vmem>>, vector<2x16x256xbf16>
    %1 = arith.extf %0 : vector<2x16x256xbf16> to vector<2x16x256xf32>
    %cst = arith.constant dense<0.000000e+00> : vector<2x256xf32>
    %2 = vector.multi_reduction <add>, %1, %cst [1] : vector<2x16x256xf32> to vector<2x256xf32>
    %cst_2 = arith.constant 1.600000e+01 : f32
    %3 = vector.broadcast %cst_2 : f32 to vector<2x256xf32>
    %4 = arith.divf %2, %3 : vector<2x256xf32>
    %c0_3 = arith.constant 0 : index
    %c0_4 = arith.constant 0 : index
    %5 = vector.load %arg2[%c0_3, %c0_4] : memref<256x128xf32, #tpu.memory_space<vmem>>, vector<256x128xf32>
    %cst_5 = arith.constant dense<0.000000e+00> : vector<2x128xf32>
    %6 = tpu.matmul %4, %5, %cst_5 {dimension_numbers = #tpu.dot_dimension_numbers<[1], [0], [0], [1], [0, 0, 1, 1], [], []>} : vector<2x256xf32>, vector<256x128xf32>, vector<2x128xf32> -> vector<2x128xf32>
    %c0_6 = arith.constant 0 : index
    %c0_7 = arith.constant 0 : index
    %7 = vector.load %arg3[%c0_6, %c0_7] : memref<1x128xf32, #tpu.memory_space<vmem>>, vector<1x128xf32>
    %8 = vector.broadcast %7 : vector<1x128xf32> to vector<2x128xf32>
    %9 = arith.addf %6, %8 : vector<2x128xf32>
    %c0_8 = arith.constant 0 : index
    %c0_9 = arith.constant 0 : index
    %10 = vector.load %arg4[%c0_8, %c0_9] : memref<2x128xf32, #tpu.memory_space<vmem>>, vector<2x128xf32>
    tpu.vector_store %arg4[%c0_8, %c0_9], %9 {strides = array<i32>} : memref<2x128xf32, #tpu.memory_space<vmem>>, vector<2x128xf32>,
    return
  }
  func.func @transform_0(%arg0: i32) -> (i32, i32, i32) {
    %c0_i32 = arith.constant 0 : i32
    %c0_i32_0 = arith.constant 0 : i32
    %c0_i32_1 = arith.constant 0 : i32
    %c0_i32_2 = arith.constant 0 : i32
    return %c0_i32, %c0_i32_0, %c0_i32_1 : i32, i32, i32
  }
  func.func @transform_1(%arg0: i32) -> (i32, i32) {
    %c0_i32 = arith.constant 0 : i32
    %c0_i32_0 = arith.constant 0 : i32
    %c0_i32_1 = arith.constant 0 : i32
    return %c0_i32, %c0_i32_0 : i32, i32
  }
  func.func @transform_2(%arg0: i32) -> (i32, i32) {
    %c0_i32 = arith.constant 0 : i32
    %c0_i32_0 = arith.constant 0 : i32
    %c0_i32_1 = arith.constant 0 : i32
    return %c0_i32, %c0_i32_0 : i32, i32
  }
  func.func @transform_3(%arg0: i32) -> (i32, i32) {
    %c0_i32 = arith.constant 0 : i32
    %c0_i32_0 = arith.constant 0 : i32
    %c0_i32_1 = arith.constant 0 : i32
    return %c0_i32, %c0_i32_0 : i32, i32
  }
}

</mosaic_0001>

<bundles_post_ra>
// kernel: resnet_forward.7
= control target key start
LH: loop header
LB: loop body
LE: loop exit
PB: predicated region body
PF: predicated region fallthrough
CT: control target
= control target key end

     0   :  { %vm21_vm0 = vcmask 523264   ;;  %vm484_vm1 = vcmask 519168   ;;  %s992_s1 = inlined_call_operand.vmem [shape: bf16[256,64], index: 1, kind: input, shape index: {}]   ;;  %s993_s0 = inlined_call_operand.vmem [shape: bf16[128,256], index: 0, kind: input, shape index: {}]   ;;  %s994_s2 = inlined_call_operand.vmem [shape: f32[1,64], index: 2, kind: input, shape index: {}]   ;;  %s995_s3 = inlined_call_operand.vmem [shape: f32[1,64], index: 3, kind: input, shape index: {}]   ;;  %s996_s4 = inlined_call_operand.vmem [shape: bf16[128,64], index: 4, kind: output, shape index: {}]  }
   0x1   :  { %v656_v0 = vld [vmem:[%s992_s1 + $0x38] sm:$0xff]  ;;  %v655_v2 = vld [vmem:[%s992_s1 + $0x30] sm:$0xff]  ;;  %v654_v4 = vld [vmem:[%s992_s1 + $0x28] sm:$0xff] }
   0x2   :  { %v664_v1 = vld [vmem:[%s992_s1 + $0x78] sm:$0xff]  ;;  %278 = vmatpush.bf16.msra.mxu0 %v656_v0  ;;  %665 = vmatpush.bf16.msra.mxu2 %v656_v0  ;;  %v663_v3 = vld [vmem:[%s992_s1 + $0x70] sm:$0xff]  ;;  %v662_v5 = vld [vmem:[%s992_s1 + $0x68] sm:$0xff]  ;;  %v684_v0 = vmov 0.0  }
   0x3   :  { %327 = vmatpush.bf16.msra.mxu1 %v664_v1  ;;  %673 = vmatpush.bf16.msra.mxu3 %v664_v1  ;;  %v653_v6 = vld [vmem:[%s992_s1 + $0x20] sm:$0xff]  ;;  %v652_v8 = vld [vmem:[%s992_s1 + $0x18] sm:$0xff]  ;;  %v651_v10 = vld [vmem:[%s992_s1 + $0x10] sm:$0xff]  ;;  %22 = vst.msk [vmem:[#allocation2] sm:$0xff] %vm21_vm0, %v684_v0 }
   0x4   :  { %v661_v7 = vld [vmem:[%s992_s1 + $0x60] sm:$0xff]  ;;  %v660_v9 = vld [vmem:[%s992_s1 + $0x58] sm:$0xff]  ;;  %v659_v11 = vld [vmem:[%s992_s1 + $0x50] sm:$0xff]  ;;  %23 = vst.msk [vmem:[#allocation2 + $0x8] sm:$0xff] %vm21_vm0, %v684_v0 }
   0x5   :  { %v650_v12 = vld [vmem:[%s992_s1 + $0x8] sm:$0xff]  ;;  %v649_v14 = vld [vmem:[%s992_s1] sm:$0xff]  ;;  %v515_v28 = vld [vmem:[%s993_s0 + $0x10] sm:$0xf]  ;;  %24 = vst.msk [vmem:[#allocation2 + $0x10] sm:$0xff] %vm21_vm0, %v684_v0 }
   0x6   :  { %279 = vmatpush.bf16.msra.mxu0 %v655_v2  ;;  %666 = vmatpush.bf16.msra.mxu2 %v655_v2  ;;  %v658_v13 = vld [vmem:[%s992_s1 + $0x48] sm:$0xff]  ;;  %v657_v15 = vld [vmem:[%s992_s1 + $0x40] sm:$0xff]  ;;  %v636_v29 = vld [vmem:[%s993_s0 + $0x14] sm:$0xf0]  ;;  %25 = vst.msk [vmem:[#allocation2 + $0x18] sm:$0xff] %vm21_vm0, %v684_v0 }
   0x7   :  { %328 = vmatpush.bf16.msra.mxu1 %v663_v3  ;;  %674 = vmatpush.bf16.msra.mxu3 %v663_v3  ;;  %v507_v16 = vld [vmem:[%s993_s0] sm:$0xf]  ;;  %v634_v17 = vld [vmem:[%s993_s0 + $0x4] sm:$0xf0]  ;;  %v633_v20 = vld [vmem:[%s993_s0 + $0x4] sm:$0xf]  ;;  %v516_v36 = vor.u32 %v636_v29, %v515_v28 }
   0x8   :  { %v539_v18 = vld [vmem:[%s993_s0 + $0x40] sm:$0xf]  ;;  %v642_v19 = vld [vmem:[%s993_s0 + $0x44] sm:$0xf0]  ;;  %v509_v21 = vld [vmem:[%s993_s0 + $0x8] sm:$0xf0]  ;;  %v508_v24 = vor.u32 %v634_v17, %v507_v16 }
   0x9   :  { %v641_v22 = vld [vmem:[%s993_s0 + $0x44] sm:$0xf]  ;;  %v541_v23 = vld [vmem:[%s993_s0 + $0x48] sm:$0xf0]  ;;  %v540_v25 = vor.u32 %v642_v19, %v539_v18  ;;  %v512_v26 = vor.u32 %v633_v20, %v509_v21  ;;  %v547_v30 = vld [vmem:[%s993_s0 + $0x50] sm:$0xf] }
   0xa   :  { %280 = vmatpush.bf16.msra.mxu0 %v654_v4  ;;  %667 = vmatpush.bf16.msra.mxu2 %v654_v4  ;;  %v544_v27 = vor.u32 %v641_v22, %v541_v23  ;;  %v644_v31 = vld [vmem:[%s993_s0 + $0x54] sm:$0xf0]  ;;  %v635_v32 = vld [vmem:[%s993_s0 + $0x14] sm:$0xf]  ;;  %v517_v33 = vld [vmem:[%s993_s0 + $0x18] sm:$0xf0] }
   0xb   :  { %329 = vmatpush.bf16.msra.mxu1 %v662_v5  ;;  %675 = vmatpush.bf16.msra.mxu3 %v662_v5  ;;  %v643_v34 = vld [vmem:[%s993_s0 + $0x54] sm:$0xf]  ;;  %v549_v35 = vld [vmem:[%s993_s0 + $0x58] sm:$0xf0]  ;;  %v548_v37 = vor.u32 %v644_v31, %v547_v30  ;;  %v520_v38 = vor.u32 %v635_v32, %v517_v33  ;;  %v523_v40 = vld [vmem:[%s993_s0 + $0x20] sm:$0xf] }
   0xc   :  { %v552_v39 = vor.u32 %v643_v34, %v549_v35  ;;  %v638_v41 = vld [vmem:[%s993_s0 + $0x24] sm:$0xf0]  ;;  %v555_v42 = vld [vmem:[%s993_s0 + $0x60] sm:$0xf]  ;;  %v637_v44 = vld [vmem:[%s993_s0 + $0x24] sm:$0xf] }
   0xd   :  { %v646_v43 = vld [vmem:[%s993_s0 + $0x64] sm:$0xf0]  ;;  %v525_v45 = vld [vmem:[%s993_s0 + $0x28] sm:$0xf0]  ;;  %v645_v46 = vld [vmem:[%s993_s0 + $0x64] sm:$0xf]  ;;  %v524_v48 = vor.u32 %v638_v41, %v523_v40 }
   0xe   :  { %281 = vmatpush.bf16.msra.mxu0 %v653_v6  ;;  %668 = vmatpush.bf16.msra.mxu2 %v653_v6  ;;  %v557_v47 = vld [vmem:[%s993_s0 + $0x68] sm:$0xf0]  ;;  %v556_v49 = vor.u32 %v646_v43, %v555_v42  ;;  %v528_v50 = vor.u32 %v637_v44, %v525_v45  ;;  %v531_v52 = vld [vmem:[%s993_s0 + $0x30] sm:$0xf]  ;;  %v640_v53 = vld [vmem:[%s993_s0 + $0x34] sm:$0xf0] }
   0xf   :  { %330 = vmatpush.bf16.msra.mxu1 %v661_v7  ;;  %676 = vmatpush.bf16.msra.mxu3 %v661_v7  ;;  %v560_v51 = vor.u32 %v645_v46, %v557_v47  ;;  %v563_v54 = vld [vmem:[%s993_s0 + $0x70] sm:$0xf]  ;;  %v648_v55 = vld [vmem:[%s993_s0 + $0x74] sm:$0xf0]  ;;  %v639_v56 = vld [vmem:[%s993_s0 + $0x34] sm:$0xf]  ;;  %v532_v60 = vor.u32 %v640_v53, %v531_v52 }
  0x10   :  { %v533_v57 = vld [vmem:[%s993_s0 + $0x38] sm:$0xf0]  ;;  %v647_v58 = vld [vmem:[%s993_s0 + $0x74] sm:$0xf]  ;;  %v564_v61 = vor.u32 %v648_v55, %v563_v54  ;;  %26 = vst.msk [vmem:[#allocation2 + $0x20] sm:$0xff] %vm21_vm0, %v684_v0  ;;  %v38_v2 = vld [vmem:[#allocation2] sm:$0xff] }
  0x11   :  { %v565_v59 = vld [vmem:[%s993_s0 + $0x78] sm:$0xf0]  ;;  %v536_v62 = vor.u32 %v639_v56, %v533_v57  ;;  %27 = vst.msk [vmem:[#allocation2 + $0x28] sm:$0xff] %vm21_vm0, %v684_v0  ;;  %v879_v16 = vld [vmem:[%s995_s3] ss:$0 sm:$0xff] }
  0x12   :  { %282 = vmatpush.bf16.msra.mxu0 %v652_v8  ;;  %669 = vmatpush.bf16.msra.mxu2 %v652_v8  ;;  %v568_v63 = vor.u32 %v647_v58, %v565_v59  ;;  %28 = vst.msk [vmem:[#allocation2 + $0x30] sm:$0xff] %vm21_vm0, %v684_v0  ;;  %v41_v44 = vld [vmem:[#allocation2 + $0x18] sm:$0xff] }
  0x13   :  { %331 = vmatpush.bf16.msra.mxu1 %v660_v9  ;;  %677 = vmatpush.bf16.msra.mxu3 %v660_v9  ;;  %29 = vst.msk [vmem:[#allocation2 + $0x38] sm:$0xff] %vm21_vm0, %v684_v0 }
  0x14   :  { %30 = vst.msk [vmem:[#allocation2 + $0x40] sm:$0xff] %vm21_vm0, %v684_v0 }
  0x15   :  { %31 = vst.msk [vmem:[#allocation2 + $0x48] sm:$0xff] %vm21_vm0, %v684_v0 }
  0x16   :  { %283 = vmatpush.bf16.msra.mxu0 %v651_v10  ;;  %670 = vmatpush.bf16.msra.mxu2 %v651_v10  ;;  %32 = vst.msk [vmem:[#allocation2 + $0x50] sm:$0xff] %vm21_vm0, %v684_v0 }
  0x17   :  { %332 = vmatpush.bf16.msra.mxu1 %v659_v11  ;;  %678 = vmatpush.bf16.msra.mxu3 %v659_v11  ;;  %33 = vst.msk [vmem:[#allocation2 + $0x58] sm:$0xff] %vm21_vm0, %v684_v0  ;;  %v39_v11 = vld [vmem:[#allocation2 + $0x8] sm:$0xff] }
  0x18   :  { %34 = vst.msk [vmem:[#allocation2 + $0x60] sm:$0xff] %vm21_vm0, %v684_v0 }
  0x19   :  { %35 = vst.msk [vmem:[#allocation2 + $0x68] sm:$0xff] %vm21_vm0, %v684_v0 }
  0x1a   :  { %284 = vmatpush.bf16.msra.mxu0 %v650_v12  ;;  %671 = vmatpush.bf16.msra.mxu2 %v650_v12  ;;  %36 = vst.msk [vmem:[#allocation2 + $0x70] sm:$0xff] %vm21_vm0, %v684_v0 }
  0x1b   :  { %333 = vmatpush.bf16.msra.mxu1 %v658_v13  ;;  %679 = vmatpush.bf16.msra.mxu3 %v658_v13  ;;  %37 = vst.msk [vmem:[#allocation2 + $0x78] sm:$0xff] %vm21_vm0, %v684_v0  ;;  %v46_v7 = vld [vmem:[#allocation2 + $0x40] sm:$0xff] }
  0x1c   :  { %v874_v13 = vld [vmem:[%s994_s2] ss:$0 sm:$0xff]  ;;  %v47_v21 = vld [vmem:[#allocation2 + $0x48] sm:$0xff] }
  0x1e   :  { %285 = vmatpush.bf16.msra.mxu0 %v649_v14  ;;  %672 = vmatpush.bf16.msra.mxu2 %v649_v14  ;;  %v49_v56 = vld [vmem:[#allocation2 + $0x58] sm:$0xff] }
  0x1f   :  { %334 = vmatpush.bf16.msra.mxu1 %v657_v15  ;;  %680 = vmatpush.bf16.msra.mxu3 %v657_v15 }
  0x21   :  { %286 = vmatmul.bf16.vlgmr.msra.gmra.mxu0 %v508_v24  ;;  %306 = vmatmul.bf16.vlgmr.msra.gmra.mxu2 %v540_v25 }
  0x22   :  { %335 = vmatmul.bf16.vlgmr.msra.gmra.mxu1 %v512_v26  ;;  %355 = vmatmul.bf16.vlgmr.msra.gmra.mxu3 %v544_v27  ;;  %v40_v26 = vld [vmem:[#allocation2 + $0x10] sm:$0xff] }
  0x31   :  { %291 = vmatmul.bf16.gmra.mxu0 %v516_v36  ;;  %311 = vmatmul.bf16.gmra.mxu2 %v548_v37 }
  0x32   :  { %340 = vmatmul.bf16.gmra.mxu1 %v520_v38  ;;  %360 = vmatmul.bf16.gmra.mxu3 %v552_v39  ;;  %v48_v38 = vld [vmem:[#allocation2 + $0x50] sm:$0xff] }
  0x41   :  { %296 = vmatmul.bf16.gmra.mxu0 %v524_v48  ;;  %316 = vmatmul.bf16.gmra.mxu2 %v556_v49 }
  0x42   :  { %345 = vmatmul.bf16.gmra.mxu1 %v528_v50  ;;  %365 = vmatmul.bf16.gmra.mxu3 %v560_v51 }
  0x51   :  { %301 = vmatmul.bf16.gmra.mxu0 %v532_v60  ;;  %321 = vmatmul.bf16.gmra.mxu2 %v564_v61 }
  0x52   :  { %350 = vmatmul.bf16.gmra.mxu1 %v536_v62  ;;  %370 = vmatmul.bf16.gmra.mxu3 %v568_v63  ;;  %v42_v62 = vld [vmem:[#allocation2 + $0x20] sm:$0xff] }
  0x9e   :  { %v287_v1 = vpop.f32.mrf.mxu0 }
  0x9f   :  { %v336_v3 = vpop.f32.mrf.mxu1 }
  0xa0   :  { %v337_v4 = vadd.f32 %v336_v3, %v287_v1 }
  0xa2   :  { %v376_v5 = vadd.f32 %v337_v4, %v38_v2 }
  0xa4   :  { %393 = vst.msk [vmem:[#allocation2] sm:$0xff] %vm21_vm0, %v376_v5  ;;  %v307_v6 = vpop.f32.mrf.mxu2 }
  0xa5   :  { %v356_v8 = vpop.f32.mrf.mxu3 }
  0xa6   :  { %v357_v9 = vadd.f32 %v356_v8, %v307_v6  ;;  %v289_v10 = vpop.f32.mrf.mxu0 }
  0xa7   :  { %v338_v12 = vpop.f32.mrf.mxu1 }
  0xa8   :  { %v384_v14 = vadd.f32 %v357_v9, %v46_v7  ;;  %v339_v15 = vadd.f32 %v338_v12, %v289_v10  ;;  %v50_v10 = vld [vmem:[#allocation2 + $0x60] sm:$0xff] }
  0xaa   :  { %401 = vst.msk [vmem:[#allocation2 + $0x40] sm:$0xff] %vm21_vm0, %v384_v14  ;;  %v377_v17 = vadd.f32 %v339_v15, %v39_v11 }
  0xab   :  { %v412_v18 = vld [vmem:[#allocation2] sm:$0xff] }
  0xac   :  { %v432_v19 = vmul.f32 %v874_v13, %v412_v18  ;;  %394 = vst.msk [vmem:[#allocation2 + $0x8] sm:$0xff] %vm21_vm0, %v377_v17  ;;  %v309_v20 = vpop.f32.mrf.mxu2  ;;  %v43_v18 = vld [vmem:[#allocation2 + $0x28] sm:$0xff] }
  0xad   :  { %v358_v22 = vpop.f32.mrf.mxu3 }
  0xae   :  { %v452_v23 = vadd.f32 %v879_v16, %v432_v19  ;;  %v359_v24 = vadd.f32 %v358_v22, %v309_v20  ;;  %v292_v25 = vpop.f32.mrf.mxu0 }
  0xaf   :  { %v341_v27 = vpop.f32.mrf.mxu1 }
  0xb0   :  { %v468_v28 = vpack.c.bf16 %v452_v23, %v452_v23  ;;  %v385_v29 = vadd.f32 %v359_v24, %v47_v21  ;;  %v342_v30 = vadd.f32 %v341_v27, %v292_v25 }
  0xb1   :  { %v420_v31 = vld [vmem:[#allocation2 + $0x40] sm:$0xff] }
  0xb2   :  { %485 = vst.msk [vmem:[%s996_s4] sm:$0xf] %vm484_vm1, %v468_v28  ;;  %v440_v32 = vmul.f32 %v874_v13, %v420_v31  ;;  %v378_v33 = vadd.f32 %v342_v30, %v40_v26  ;;  %v51_v30 = vld [vmem:[#allocation2 + $0x68] sm:$0xff] }
  0xb3   :  { %v413_v34 = vld [vmem:[#allocation2 + $0x8] sm:$0xff]  ;;  %402 = vst.msk [vmem:[#allocation2 + $0x48] sm:$0xff] %vm21_vm0, %v385_v29 }
  0xb4   :  { %v460_v35 = vadd.f32 %v879_v16, %v440_v32  ;;  %v433_v36 = vmul.f32 %v874_v13, %v413_v34  ;;  %395 = vst.msk [vmem:[#allocation2 + $0x10] sm:$0xff] %vm21_vm0, %v378_v33  ;;  %v312_v37 = vpop.f32.mrf.mxu2 }
  0xb5   :  { %v361_v39 = vpop.f32.mrf.mxu3 }
  0xb6   :  { %v476_v40 = vpack.c.bf16 %v460_v35, %v460_v35  ;;  %v453_v41 = vadd.f32 %v879_v16, %v433_v36  ;;  %v362_v42 = vadd.f32 %v361_v39, %v312_v37  ;;  %v294_v43 = vpop.f32.mrf.mxu0  ;;  %v44_v36 = vld [vmem:[#allocation2 + $0x30] sm:$0xff] }
  0xb7   :  { %v343_v45 = vpop.f32.mrf.mxu1 }
  0xb8   :  { %493 = vst.msk [vmem:[%s996_s4 + $0x20] sm:$0xf] %vm484_vm1, %v476_v40  ;;  %v469_v46 = vpack.c.bf16 %v453_v41, %v453_v41  ;;  %v386_v47 = vadd.f32 %v362_v42, %v48_v38  ;;  %v344_v48 = vadd.f32 %v343_v45, %v294_v43 }
  0xba   :  { %486 = vst.msk [vmem:[%s996_s4 + $0x4] sm:$0xf] %vm484_vm1, %v469_v46  ;;  %v421_v49 = vld [vmem:[#allocation2 + $0x48] sm:$0xff]  ;;  %v379_v50 = vadd.f32 %v344_v48, %v41_v44  ;;  %v52_v48 = vld [vmem:[#allocation2 + $0x70] sm:$0xff] }
  0xbb   :  { %v441_v51 = vmul.f32 %v874_v13, %v421_v49  ;;  %v414_v52 = vld [vmem:[#allocation2 + $0x10] sm:$0xff]  ;;  %403 = vst.msk [vmem:[#allocation2 + $0x50] sm:$0xff] %vm21_vm0, %v386_v47 }
  0xbc   :  { %v434_v53 = vmul.f32 %v874_v13, %v414_v52  ;;  %396 = vst.msk [vmem:[#allocation2 + $0x18] sm:$0xff] %vm21_vm0, %v379_v50  ;;  %v314_v54 = vpop.f32.mrf.mxu2 }
  0xbd   :  { %v461_v55 = vadd.f32 %v879_v16, %v441_v51  ;;  %v363_v57 = vpop.f32.mrf.mxu3 }
  0xbe   :  { %v454_v58 = vadd.f32 %v879_v16, %v434_v53  ;;  %v364_v59 = vadd.f32 %v363_v57, %v314_v54  ;;  %v297_v60 = vpop.f32.mrf.mxu0  ;;  %v45_v54 = vld [vmem:[#allocation2 + $0x38] sm:$0xff] }
  0xbf   :  { %v477_v61 = vpack.c.bf16 %v461_v55, %v461_v55  ;;  %v346_v63 = vpop.f32.mrf.mxu1 }
  0xc0   :  { %v470_v0 = vpack.c.bf16 %v454_v58, %v454_v58  ;;  %v387_v1 = vadd.f32 %v364_v59, %v49_v56  ;;  %v347_v2 = vadd.f32 %v346_v63, %v297_v60 }
  0xc1   :  { %494 = vst.msk [vmem:[%s996_s4 + $0x24] sm:$0xf] %vm484_vm1, %v477_v61 }
  0xc2   :  { %487 = vst.msk [vmem:[%s996_s4 + $0x8] sm:$0xf] %vm484_vm1, %v470_v0  ;;  %v422_v3 = vld [vmem:[#allocation2 + $0x50] sm:$0xff]  ;;  %v380_v4 = vadd.f32 %v347_v2, %v42_v62  ;;  %v53_v2 = vld [vmem:[#allocation2 + $0x78] sm:$0xff] }
  0xc3   :  { %v442_v5 = vmul.f32 %v874_v13, %v422_v3  ;;  %v415_v6 = vld [vmem:[#allocation2 + $0x18] sm:$0xff]  ;;  %404 = vst.msk [vmem:[#allocation2 + $0x58] sm:$0xff] %vm21_vm0, %v387_v1 }
  0xc4   :  { %v435_v7 = vmul.f32 %v874_v13, %v415_v6  ;;  %397 = vst.msk [vmem:[#allocation2 + $0x20] sm:$0xff] %vm21_vm0, %v380_v4  ;;  %v317_v8 = vpop.f32.mrf.mxu2 }
  0xc5   :  { %v462_v9 = vadd.f32 %v879_v16, %v442_v5  ;;  %v366_v11 = vpop.f32.mrf.mxu3 }
  0xc6   :  { %v455_v12 = vadd.f32 %v879_v16, %v435_v7  ;;  %v367_v14 = vadd.f32 %v366_v11, %v317_v8  ;;  %v299_v15 = vpop.f32.mrf.mxu0 }
  0xc7   :  { %v478_v17 = vpack.c.bf16 %v462_v9, %v462_v9  ;;  %v348_v19 = vpop.f32.mrf.mxu1 }
  0xc8   :  { %v471_v20 = vpack.c.bf16 %v455_v12, %v455_v12  ;;  %v388_v21 = vadd.f32 %v367_v14, %v50_v10  ;;  %v349_v22 = vadd.f32 %v348_v19, %v299_v15 }
  0xc9   :  { %495 = vst.msk [vmem:[%s996_s4 + $0x28] sm:$0xf] %vm484_vm1, %v478_v17 }
  0xca   :  { %488 = vst.msk [vmem:[%s996_s4 + $0xc] sm:$0xf] %vm484_vm1, %v471_v20  ;;  %v423_v23 = vld [vmem:[#allocation2 + $0x58] sm:$0xff]  ;;  %v381_v24 = vadd.f32 %v349_v22, %v43_v18 }
  0xcb   :  { %v443_v25 = vmul.f32 %v874_v13, %v423_v23  ;;  %v416_v26 = vld [vmem:[#allocation2 + $0x20] sm:$0xff]  ;;  %405 = vst.msk [vmem:[#allocation2 + $0x60] sm:$0xff] %vm21_vm0, %v388_v21 }
  0xcc   :  { %v436_v27 = vmul.f32 %v874_v13, %v416_v26  ;;  %398 = vst.msk [vmem:[#allocation2 + $0x28] sm:$0xff] %vm21_vm0, %v381_v24  ;;  %v319_v28 = vpop.f32.mrf.mxu2 }
  0xcd   :  { %v463_v29 = vadd.f32 %v879_v16, %v443_v25  ;;  %v368_v31 = vpop.f32.mrf.mxu3 }
  0xce   :  { %v456_v32 = vadd.f32 %v879_v16, %v436_v27  ;;  %v369_v33 = vadd.f32 %v368_v31, %v319_v28  ;;  %v302_v34 = vpop.f32.mrf.mxu0 }
  0xcf   :  { %v479_v35 = vpack.c.bf16 %v463_v29, %v463_v29  ;;  %v351_v37 = vpop.f32.mrf.mxu1 }
  0xd0   :  { %v472_v38 = vpack.c.bf16 %v456_v32, %v456_v32  ;;  %v389_v39 = vadd.f32 %v369_v33, %v51_v30  ;;  %v352_v40 = vadd.f32 %v351_v37, %v302_v34 }
  0xd1   :  { %496 = vst.msk [vmem:[%s996_s4 + $0x2c] sm:$0xf] %vm484_vm1, %v479_v35 }
  0xd2   :  { %489 = vst.msk [vmem:[%s996_s4 + $0x10] sm:$0xf] %vm484_vm1, %v472_v38  ;;  %v424_v41 = vld [vmem:[#allocation2 + $0x60] sm:$0xff]  ;;  %v382_v42 = vadd.f32 %v352_v40, %v44_v36 }
  0xd3   :  { %v444_v43 = vmul.f32 %v874_v13, %v424_v41  ;;  %v417_v44 = vld [vmem:[#allocation2 + $0x28] sm:$0xff]  ;;  %406 = vst.msk [vmem:[#allocation2 + $0x68] sm:$0xff] %vm21_vm0, %v389_v39 }
  0xd4   :  { %v437_v45 = vmul.f32 %v874_v13, %v417_v44  ;;  %399 = vst.msk [vmem:[#allocation2 + $0x30] sm:$0xff] %vm21_vm0, %v382_v42  ;;  %v322_v46 = vpop.f32.mrf.mxu2 }
  0xd5   :  { %v464_v47 = vadd.f32 %v879_v16, %v444_v43  ;;  %v371_v49 = vpop.f32.mrf.mxu3 }
  0xd6   :  { %v457_v50 = vadd.f32 %v879_v16, %v437_v45  ;;  %v372_v51 = vadd.f32 %v371_v49, %v322_v46  ;;  %v304_v52 = vpop.f32.mrf.mxu0 }
  0xd7   :  { %v480_v53 = vpack.c.bf16 %v464_v47, %v464_v47  ;;  %v353_v55 = vpop.f32.mrf.mxu1 }
  0xd8   :  { %v473_v56 = vpack.c.bf16 %v457_v50, %v457_v50  ;;  %v390_v57 = vadd.f32 %v372_v51, %v52_v48  ;;  %v354_v58 = vadd.f32 %v353_v55, %v304_v52 }
  0xd9   :  { %497 = vst.msk [vmem:[%s996_s4 + $0x30] sm:$0xf] %vm484_vm1, %v480_v53 }
  0xda   :  { %490 = vst.msk [vmem:[%s996_s4 + $0x14] sm:$0xf] %vm484_vm1, %v473_v56  ;;  %v425_v59 = vld [vmem:[#allocation2 + $0x68] sm:$0xff]  ;;  %v383_v60 = vadd.f32 %v354_v58, %v45_v54 }
  0xdb   :  { %v445_v61 = vmul.f32 %v874_v13, %v425_v59  ;;  %v418_v62 = vld [vmem:[#allocation2 + $0x30] sm:$0xff]  ;;  %407 = vst.msk [vmem:[#allocation2 + $0x70] sm:$0xff] %vm21_vm0, %v390_v57 }
  0xdc   :  { %v438_v63 = vmul.f32 %v874_v13, %v418_v62  ;;  %400 = vst.msk [vmem:[#allocation2 + $0x38] sm:$0xff] %vm21_vm0, %v383_v60  ;;  %v324_v0 = vpop.f32.mrf.mxu2 }
  0xdd   :  { %v465_v1 = vadd.f32 %v879_v16, %v445_v61  ;;  %v373_v3 = vpop.f32.mrf.mxu3 }
  0xde   :  { %v458_v4 = vadd.f32 %v879_v16, %v438_v63  ;;  %v374_v5 = vadd.f32 %v373_v3, %v324_v0 }
  0xdf   :  { %v481_v6 = vpack.c.bf16 %v465_v1, %v465_v1 }
  0xe0   :  { %v474_v7 = vpack.c.bf16 %v458_v4, %v458_v4  ;;  %v391_v8 = vadd.f32 %v374_v5, %v53_v2 }
  0xe1   :  { %498 = vst.msk [vmem:[%s996_s4 + $0x34] sm:$0xf] %vm484_vm1, %v481_v6 }
  0xe2   :  { %491 = vst.msk [vmem:[%s996_s4 + $0x18] sm:$0xf] %vm484_vm1, %v474_v7  ;;  %v426_v9 = vld [vmem:[#allocation2 + $0x70] sm:$0xff] }
  0xe3   :  { %v446_v10 = vmul.f32 %v874_v13, %v426_v9  ;;  %v419_v11 = vld [vmem:[#allocation2 + $0x38] sm:$0xff]  ;;  %408 = vst.msk [vmem:[#allocation2 + $0x78] sm:$0xff] %vm21_vm0, %v391_v8 }
  0xe4   :  { %v439_v12 = vmul.f32 %v874_v13, %v419_v11 }
  0xe5   :  { %v466_v14 = vadd.f32 %v879_v16, %v446_v10 }
  0xe6   :  { %v459_v15 = vadd.f32 %v879_v16, %v439_v12 }
  0xe7   :  { %v482_v17 = vpack.c.bf16 %v466_v14, %v466_v14 }
  0xe8   :  { %v475_v18 = vpack.c.bf16 %v459_v15, %v459_v15 }
  0xe9   :  { %499 = vst.msk [vmem:[%s996_s4 + $0x38] sm:$0xf] %vm484_vm1, %v482_v17 }
  0xea   :  { %492 = vst.msk [vmem:[%s996_s4 + $0x1c] sm:$0xf] %vm484_vm1, %v475_v18  ;;  %v427_v19 = vld [vmem:[#allocation2 + $0x78] sm:$0xff] }
  0xeb   :  { %v447_v20 = vmul.f32 %v874_v13, %v427_v19 }
  0xed   :  { %v467_v21 = vadd.f32 %v879_v16, %v447_v20 }
  0xef   :  { %v483_v22 = vpack.c.bf16 %v467_v21, %v467_v21 }
  0xf1   :  { %500 = vst.msk [vmem:[%s996_s4 + $0x3c] sm:$0xf] %vm484_vm1, %v483_v22 }

// kernel: resnet_forward.8
= control target key start
LH: loop header
LB: loop body
LE: loop exit
PB: predicated region body
PF: predicated region fallthrough
CT: control target
= control target key end

     0   :  { %vm136_vm0 = vcmask 523264   ;;  %vm138_vm1 = vcmask 516096   ;;  %vm522_vm2 = vcmask 1041409   ;;  %vm524_vm3 = vcmask 1042434   ;;  %s1304_s0 = inlined_call_operand.vmem [shape: bf16[32,9,64], index: 0, kind: input, shape index: {}]   ;;  %s1305_s1 = inlined_call_operand.vmem [shape: bf16[32,64], index: 1, kind: output, shape index: {}]  }
   0x1   :  { %v587_v0 = vld [vmem:[%s1304_s0] sm:$0xf]  ;;  %v592_v1 = vld [vmem:[%s1304_s0 + $0x4] sm:$0x1]  ;;  %v597_v2 = vld [vmem:[%s1304_s0 + $0x8] sm:$0xf] }
   0x2   :  { %v602_v3 = vld [vmem:[%s1304_s0 + $0xc] sm:$0x1]  ;;  %v607_v4 = vld [vmem:[%s1304_s0 + $0x10] sm:$0xf]  ;;  %v612_v5 = vld [vmem:[%s1304_s0 + $0x14] sm:$0x1]  ;;  %v1337_v21 = vunpack.c.l.bf16 %v592_v1 }
   0x3   :  { %v617_v6 = vld [vmem:[%s1304_s0 + $0x18] sm:$0xf]  ;;  %v622_v7 = vld [vmem:[%s1304_s0 + $0x1c] sm:$0x1]  ;;  %v627_v8 = vld [vmem:[%s1304_s0 + $0x20] sm:$0xf]  ;;  %v1341_v24 = vunpack.c.l.bf16 %v612_v5 }
   0x4   :  { %v632_v9 = vld [vmem:[%s1304_s0 + $0x24] sm:$0x1]  ;;  %v637_v10 = vld [vmem:[%s1304_s0 + $0x28] sm:$0xf]  ;;  %v642_v11 = vld [vmem:[%s1304_s0 + $0x2c] sm:$0x1] }
   0x5   :  { %v647_v12 = vld [vmem:[%s1304_s0 + $0x30] sm:$0xf]  ;;  %v652_v13 = vld [vmem:[%s1304_s0 + $0x34] sm:$0x1]  ;;  %v657_v14 = vld [vmem:[%s1304_s0 + $0x38] sm:$0xf]  ;;  %v1345_v5 = vunpack.c.l.bf16 %v632_v9 }
   0x6   :  { %v662_v15 = vld [vmem:[%s1304_s0 + $0x3c] sm:$0x1]  ;;  %v667_v16 = vld [vmem:[%s1304_s0 + $0x40] sm:$0xf]  ;;  %v672_v17 = vld [vmem:[%s1304_s0 + $0x44] sm:$0x1]  ;;  %v1348_v9 = vunpack.c.l.bf16 %v647_v12 }
   0x7   :  { %v677_v18 = vld [vmem:[%s1304_s0 + $0x48] sm:$0xf]  ;;  %v682_v19 = vld [vmem:[%s1304_s0 + $0x4c] sm:$0x1]  ;;  %v687_v20 = vld [vmem:[%s1304_s0 + $0x50] sm:$0xf] }
   0x8   :  { %v696_v25 = vld [vmem:[%s1304_s0 + $0x54] sm:$0x1]  ;;  %v701_v26 = vld [vmem:[%s1304_s0 + $0x58] sm:$0xf]  ;;  %v706_v27 = vld [vmem:[%s1304_s0 + $0x5c] sm:$0x1] }
   0x9   :  { %v715_v32 = vld [vmem:[%s1304_s0 + $0x60] sm:$0xf]  ;;  %v720_v33 = vld [vmem:[%s1304_s0 + $0x64] sm:$0x1]  ;;  %v725_v34 = vld [vmem:[%s1304_s0 + $0x68] sm:$0xf] }
   0xa   :  { %v734_v39 = vld [vmem:[%s1304_s0 + $0x6c] sm:$0x1]  ;;  %v739_v40 = vld [vmem:[%s1304_s0 + $0x70] sm:$0xf]  ;;  %v744_v41 = vld [vmem:[%s1304_s0 + $0x74] sm:$0x1] }
   0xb   :  { %v753_v46 = vld [vmem:[%s1304_s0 + $0x78] sm:$0xf]  ;;  %v758_v47 = vld [vmem:[%s1304_s0 + $0x7c] sm:$0x1]  ;;  %v763_v48 = vld [vmem:[%s1304_s0 + $0x80] sm:$0xf] }
   0xc   :  { %v772_v53 = vld [vmem:[%s1304_s0 + $0x84] sm:$0x1]  ;;  %v777_v54 = vld [vmem:[%s1304_s0 + $0x88] sm:$0xf]  ;;  %v782_v55 = vld [vmem:[%s1304_s0 + $0x8c] sm:$0x1] }
   0xd   :  { %v791_v60 = vld [vmem:[%s1304_s0 + $0x90] sm:$0xf]  ;;  %v796_v61 = vld [vmem:[%s1304_s0 + $0x94] sm:$0x1]  ;;  %v801_v62 = vld [vmem:[%s1304_s0 + $0x98] sm:$0xf] }
   0xe   :  { %v810_v56 = vld [vmem:[%s1304_s0 + $0x9c] sm:$0x1]  ;;  %v815_v52 = vld [vmem:[%s1304_s0 + $0xa0] sm:$0xf]  ;;  %v820_v63 = vld [vmem:[%s1304_s0 + $0xa4] sm:$0x1] }
   0xf   :  { %v829_v50 = vld [vmem:[%s1304_s0 + $0xa8] sm:$0xf]  ;;  %v834_v49 = vld [vmem:[%s1304_s0 + $0xac] sm:$0x1]  ;;  %v839_v59 = vld [vmem:[%s1304_s0 + $0xb0] sm:$0xf] }
  0x10   :  { %v848_v44 = vld [vmem:[%s1304_s0 + $0xb4] sm:$0x1]  ;;  %v853_v43 = vld [vmem:[%s1304_s0 + $0xb8] sm:$0xf]  ;;  %v858_v58 = vld [vmem:[%s1304_s0 + $0xbc] sm:$0x1] }
  0x11   :  { %v867_v38 = vld [vmem:[%s1304_s0 + $0xc0] sm:$0xf]  ;;  %v872_v37 = vld [vmem:[%s1304_s0 + $0xc4] sm:$0x1]  ;;  %v877_v57 = vld [vmem:[%s1304_s0 + $0xc8] sm:$0xf] }
  0x12   :  { %1321 = vst [vmem:[#allocation2_spill] sm:$0xff] %v867_v38  ;;  %v886_v35 = vld [vmem:[%s1304_s0 + $0xcc] sm:$0x1]  ;;  %v891_v31 = vld [vmem:[%s1304_s0 + $0xd0] sm:$0xf]  ;;  %v1336_v38 = vunpack.c.l.bf16 %v587_v0  ;;  %v1340_v0 = vunpack.c.l.bf16 %v607_v4  ;;  %v157_v1 = vsel %vm138_vm1, %v1341_v24, -inf }
  0x13   :  { %1322 = vst [vmem:[#allocation3_spill] sm:$0xff] %v872_v37  ;;  %v896_v51 = vld [vmem:[%s1304_s0 + $0xd4] sm:$0x1]  ;;  %v905_v29 = vld [vmem:[%s1304_s0 + $0xd8] sm:$0xf]  ;;  %v175_v24 = vsel %vm138_vm1, %v1345_v5, -inf }
  0x14   :  { %1323 = vst [vmem:[#allocation4_spill] sm:$0xff] %v877_v57  ;;  %v910_v28 = vld [vmem:[%s1304_s0 + $0xdc] sm:$0x1]  ;;  %v915_v45 = vld [vmem:[%s1304_s0 + $0xe0] sm:$0xf]  ;;  %v137_v30 = vsel %vm136_vm0, %v1336_v38, -inf }
  0x15   :  { %1324 = vst [vmem:[#allocation5_spill] sm:$0xff] %v886_v35  ;;  %v924_v23 = vld [vmem:[%s1304_s0 + $0xe4] sm:$0x1]  ;;  %v929_v22 = vld [vmem:[%s1304_s0 + $0xe8] sm:$0xf]  ;;  %v156_v38 = vsel %vm136_vm0, %v1340_v0, -inf }
  0x16   :  { %1325 = vst [vmem:[#allocation6_spill] sm:$0xff] %v891_v31  ;;  %v934_v42 = vld [vmem:[%s1304_s0 + $0xec] sm:$0x1]  ;;  %v943_v35 = vld [vmem:[%s1304_s0 + $0xf0] sm:$0xf]  ;;  %vm526_vm4 = vcmask 1043459  }
  0x17   :  { %1326 = vst [vmem:[#allocation7_spill] sm:$0xff] %v896_v51  ;;  %v948_v57 = vld [vmem:[%s1304_s0 + $0xf4] sm:$0x1]  ;;  %v953_v36 = vld [vmem:[%s1304_s0 + $0xf8] sm:$0xf]  ;;  %v1339_v51 = vunpack.c.l.bf16 %v602_v3  ;;  %vm528_vm5 = vcmask 1044484  }
  0x18   :  { %1327 = vst [vmem:[#allocation8_spill] sm:$0xff] %v905_v29  ;;  %v962_v29 = vld [vmem:[%s1304_s0 + $0xfc] sm:$0x1]  ;;  %vm530_vm6 = vcmask 1045509   ;;  %vm532_vm7 = vcmask 1046534   ;;  %vm534_vm8 = vcmask 1047559  }
  0x19   :  { %1328 = vst [vmem:[#allocation9_spill] sm:$0xff] %v910_v28  ;;  %v139_v28 = vsel %vm138_vm1, %v1337_v21, -inf  ;;  %v148_v31 = vsel %vm138_vm1, %v1339_v51, -inf  ;;  %v1342_v21 = vunpack.c.l.bf16 %v617_v6  ;;  %v1346_v6 = vunpack.c.l.bf16 %v637_v10 }
  0x1a   :  { %1329 = vst [vmem:[#allocation10_spill] sm:$0xff] %v924_v23  ;;  %vm565_vm9 = vcmask 519168  }
  0x1b   :  { %1330 = vst [vmem:[#allocation11_spill] sm:$0xff] %v929_v22 }
  0x1c   :  { %1331 = vst [vmem:[#allocation12_spill] sm:$0xff] %v934_v42  ;;  %v1338_v42 = vunpack.c.l.bf16 %v597_v2  ;;  %v165_v2 = vsel %vm136_vm0, %v1342_v21, -inf }
  0x1d   :  { %1332 = vst [vmem:[#allocation13_spill] sm:$0xff] %v943_v35 }
  0x1e   :  { %1333 = vst [vmem:[#allocation14_spill] sm:$0xff] %v948_v57  ;;  %v147_v22 = vsel %vm136_vm0, %v1338_v42, -inf  ;;  %v140_v57 = vmax.f32 %v137_v30, %v139_v28  ;;  %v1343_v42 = vunpack.c.l.bf16 %v622_v7  ;;  %v1344_v28 = vunpack.c.l.bf16 %v627_v8 }
  0x1f   :  { %1334 = vst [vmem:[#allocation15_spill] sm:$0xff] %v953_v36  ;;  %v149_v37 = vmax.f32 %v147_v22, %v148_v31  ;;  %v1347_v7 = vunpack.c.l.bf16 %v642_v11 }
  0x20   :  { %1335 = vst [vmem:[#allocation16_spill] sm:$0xff] %v962_v29  ;;  %v158_v29 = vmax.f32 %v156_v38, %v157_v1  ;;  %v166_v3 = vsel %vm138_vm1, %v1343_v42, -inf  ;;  %v174_v22 = vsel %vm136_vm0, %v1344_v28, -inf  ;;  %v141_v4 = vrot.slane %v140_v57, 4 }
  0x21   :  { %v150_v30 = vrot.slane %v149_v37, 4  ;;  %v167_v31 = vmax.f32 %v165_v2, %v166_v3  ;;  %v176_v0 = vmax.f32 %v174_v22, %v175_v24  ;;  %v183_v38 = vsel %vm136_vm0, %v1346_v6, -inf }
  0x22   :  { %v159_v51 = vrot.slane %v158_v29, 4  ;;  %v184_v1 = vsel %vm138_vm1, %v1347_v7, -inf  ;;  %v142_v8 = vmax.f32 %v140_v57, %v141_v4  ;;  %v192_v3 = vsel %vm136_vm0, %v1348_v9, -inf }
  0x23   :  { %v151_v21 = vmax.f32 %v149_v37, %v150_v30  ;;  %v168_v42 = vrot.slane %v167_v31, 4  ;;  %v185_v28 = vmax.f32 %v183_v38, %v184_v1  ;;  %v177_v2 = vrot.slane %v176_v0, 4 }
  0x24   :  { %v160_v36 = vmax.f32 %v158_v29, %v159_v51  ;;  %v1349_v22 = vunpack.c.l.bf16 %v652_v13  ;;  %v143_v5 = vrot.slane %v142_v8, 2  ;;  %v1350_v37 = vunpack.c.l.bf16 %v657_v14 }
  0x25   :  { %v152_v24 = vrot.slane %v151_v21, 2  ;;  %v169_v6 = vmax.f32 %v167_v31, %v168_v42  ;;  %v186_v11 = vrot.slane %v185_v28, 4  ;;  %v178_v7 = vmax.f32 %v176_v0, %v177_v2 }
  0x26   :  { %v193_v10 = vsel %vm138_vm1, %v1349_v22, -inf  ;;  %v161_v35 = vrot.slane %v160_v36, 2  ;;  %v201_v29 = vsel %vm136_vm0, %v1350_v37, -inf  ;;  %v144_v4 = vmax.f32 %v142_v8, %v143_v5 }
  0x27   :  { %v194_v57 = vmax.f32 %v192_v3, %v193_v10  ;;  %v153_v30 = vmax.f32 %v151_v21, %v152_v24  ;;  %v170_v12 = vrot.slane %v169_v6, 2  ;;  %v187_v51 = vmax.f32 %v185_v28, %v186_v11 }
  0x28   :  { %v162_v38 = vmax.f32 %v160_v36, %v161_v35  ;;  %v179_v1 = vrot.slane %v178_v7, 2  ;;  %v1351_v9 = vunpack.c.l.bf16 %v662_v15  ;;  %v145_v31 = vrot.slane %v144_v4, 1 }
  0x29   :  { %v195_v13 = vrot.slane %v194_v57, 4  ;;  %v154_v42 = vrot.slane %v153_v30, 1  ;;  %v171_v23 = vmax.f32 %v169_v6, %v170_v12  ;;  %v188_v0 = vrot.slane %v187_v51, 2 }
  0x2a   :  { %v202_v22 = vsel %vm138_vm1, %v1351_v9, -inf  ;;  %v163_v2 = vrot.slane %v162_v38, 1  ;;  %v180_v3 = vmax.f32 %v178_v7, %v179_v1  ;;  %v1016_v37 = vmax.f32 %v144_v4, %v145_v31 }
  0x2b   :  { %v196_v14 = vmax.f32 %v194_v57, %v195_v13  ;;  %v203_v10 = vmax.f32 %v201_v29, %v202_v22  ;;  %v1018_v8 = vmax.f32 %v153_v30, %v154_v42  ;;  %v172_v21 = vrot.slane %v171_v23, 1 }
  0x2c   :  { %v189_v35 = vmax.f32 %v187_v51, %v188_v0  ;;  %v1020_v36 = vmax.f32 %v162_v38, %v163_v2  ;;  %v181_v28 = vrot.slane %v180_v3, 1  ;;  %v1352_v6 = vunpack.c.l.bf16 %v667_v16 }
  0x2d   :  { %v197_v15 = vrot.slane %v196_v14, 2  ;;  %v204_v5 = vrot.slane %v203_v10, 4  ;;  %v1022_v24 = vmax.f32 %v171_v23, %v172_v21  ;;  %v1353_v57 = vunpack.c.l.bf16 %v672_v17 }
  0x2e   :  { %v190_v11 = vrot.slane %v189_v35, 1  ;;  %v210_v7 = vsel %vm136_vm0, %v1352_v6, -inf  ;;  %v1030_v4 = vmax.f32 %v180_v3, %v181_v28  ;;  %v1354_v1 = vunpack.c.l.bf16 %v677_v18 }
  0x2f   :  { %v211_v29 = vsel %vm138_vm1, %v1353_v57, -inf  ;;  %v198_v30 = vmax.f32 %v196_v14, %v197_v15  ;;  %v205_v12 = vmax.f32 %v203_v10, %v204_v5  ;;  %v1355_v13 = vunpack.c.l.bf16 %v682_v19 }
  0x30   :  { %v212_v51 = vmax.f32 %v210_v7, %v211_v29  ;;  %v1032_v38 = vmax.f32 %v189_v35, %v190_v11  ;;  %v219_v23 = vsel %vm136_vm0, %v1354_v1, -inf  ;;  %v1356_v9 = vunpack.c.l.bf16 %v687_v20 }
  0x31   :  { %v220_v16 = vsel %vm138_vm1, %v1355_v13, -inf  ;;  %v199_v22 = vrot.slane %v198_v30, 1  ;;  %v206_v31 = vrot.slane %v205_v12, 2  ;;  %v1357_v2 = vunpack.c.l.bf16 %v696_v25 }
  0x32   :  { %v228_v17 = vsel %vm136_vm0, %v1356_v9, -inf  ;;  %v213_v42 = vrot.slane %v212_v51, 4  ;;  %v221_v0 = vmax.f32 %v219_v23, %v220_v16  ;;  %v1358_v18 = vunpack.c.l.bf16 %v701_v26 }
  0x33   :  { %v229_v3 = vsel %vm138_vm1, %v1357_v2, -inf  ;;  %v1359_v19 = vunpack.c.l.bf16 %v706_v27  ;;  %v1360_v20 = vunpack.c.l.bf16 %v715_v32  ;;  %v1055_v35 = vmax.f32 %v198_v30, %v199_v22 }
  0x34   :  { %v237_v14 = vsel %vm136_vm0, %v1358_v18, -inf  ;;  %v207_v28 = vmax.f32 %v205_v12, %v206_v31  ;;  %v214_v15 = vmax.f32 %v212_v51, %v213_v42  ;;  %v222_v5 = vrot.slane %v221_v0, 4 }
  0x35   :  { %v238_v10 = vsel %vm138_vm1, %v1359_v19, -inf  ;;  %v246_v21 = vsel %vm136_vm0, %v1360_v20, -inf  ;;  %v230_v25 = vmax.f32 %v228_v17, %v229_v3  ;;  %v1361_v6 = vunpack.c.l.bf16 %v720_v33 }
  0x36   :  { %v239_v11 = vmax.f32 %v237_v14, %v238_v10  ;;  %v1362_v7 = vunpack.c.l.bf16 %v725_v34  ;;  %v208_v57 = vrot.slane %v207_v28, 1  ;;  %v215_v29 = vrot.slane %v214_v15, 2 }
  0x37   :  { %v247_v26 = vsel %vm138_vm1, %v1361_v6, -inf  ;;  %v223_v32 = vmax.f32 %v221_v0, %v222_v5  ;;  %v231_v23 = vrot.slane %v230_v25, 4  ;;  %v1363_v12 = vunpack.c.l.bf16 %v734_v39 }
  0x38   :  { %v255_v27 = vsel %vm136_vm0, %v1362_v7, -inf  ;;  %v248_v1 = vmax.f32 %v246_v21, %v247_v26  ;;  %v240_v30 = vrot.slane %v239_v11, 4  ;;  %v1364_v13 = vunpack.c.l.bf16 %v739_v40 }
  0x39   :  { %v256_v51 = vsel %vm138_vm1, %v1363_v12, -inf  ;;  %v1069_v16 = vmax.f32 %v207_v28, %v208_v57  ;;  %v216_v9 = vmax.f32 %v214_v15, %v215_v29  ;;  %v224_v34 = vrot.slane %v223_v32, 2 }
  0x3a   :  { %v264_v33 = vsel %vm136_vm0, %v1364_v13, -inf  ;;  %v249_v17 = vrot.slane %v248_v1, 4  ;;  %v232_v22 = vmax.f32 %v230_v25, %v231_v23  ;;  %v241_v31 = vmax.f32 %v239_v11, %v240_v30 }
  0x3b   :  { %v257_v42 = vmax.f32 %v255_v27, %v256_v51  ;;  %v1365_v0 = vunpack.c.l.bf16 %v744_v41  ;;  %v217_v3 = vrot.slane %v216_v9, 1  ;;  %v225_v39 = vmax.f32 %v223_v32, %v224_v34 }
  0x3c   :  { %v250_v18 = vmax.f32 %v248_v1, %v249_v17  ;;  %v233_v19 = vrot.slane %v232_v22, 2  ;;  %v242_v40 = vrot.slane %v241_v31, 2  ;;  %v1366_v20 = vunpack.c.l.bf16 %v753_v46 }
  0x3d   :  { %v265_v2 = vsel %vm138_vm1, %v1365_v0, -inf  ;;  %v258_v10 = vrot.slane %v257_v42, 4  ;;  %v1077_v28 = vmax.f32 %v216_v9, %v217_v3  ;;  %v226_v15 = vrot.slane %v225_v39, 1 }
  0x3e   :  { %v266_v14 = vmax.f32 %v264_v33, %v265_v2  ;;  %v273_v21 = vsel %vm136_vm0, %v1366_v20, -inf  ;;  %v251_v5 = vrot.slane %v250_v18, 2  ;;  %v234_v11 = vmax.f32 %v232_v22, %v233_v19 }
  0x3f   :  { %v243_v41 = vmax.f32 %v241_v31, %v242_v40  ;;  %v259_v6 = vmax.f32 %v257_v42, %v258_v10  ;;  %v1367_v26 = vunpack.c.l.bf16 %v758_v47  ;;  %v1082_v27 = vmax.f32 %v225_v39, %v226_v15 }
  0x40   :  { %v267_v25 = vrot.slane %v266_v14, 4  ;;  %v252_v57 = vmax.f32 %v250_v18, %v251_v5  ;;  %v235_v46 = vrot.slane %v234_v11, 1  ;;  %v1368_v30 = vunpack.c.l.bf16 %v763_v48 }
  0x41   :  { %v274_v7 = vsel %vm138_vm1, %v1367_v26, -inf  ;;  %v244_v1 = vrot.slane %v243_v41, 1  ;;  %v260_v23 = vrot.slane %v259_v6, 2  ;;  %v1369_v9 = vunpack.c.l.bf16 %v772_v53 }
  0x42   :  { %v268_v29 = vmax.f32 %v266_v14, %v267_v25  ;;  %v275_v32 = vmax.f32 %v273_v21, %v274_v7  ;;  %v282_v12 = vsel %vm136_vm0, %v1368_v30, -inf  ;;  %v253_v51 = vrot.slane %v252_v57, 1 }
  0x43   :  { %v283_v47 = vsel %vm138_vm1, %v1369_v9, -inf  ;;  %v1090_v34 = vmax.f32 %v234_v11, %v235_v46  ;;  %v1092_v17 = vmax.f32 %v243_v41, %v244_v1  ;;  %v261_v22 = vmax.f32 %v259_v6, %v260_v23 }
  0x44   :  { %v269_v13 = vrot.slane %v268_v29, 2  ;;  %v276_v33 = vrot.slane %v275_v32, 4  ;;  %v284_v31 = vmax.f32 %v282_v12, %v283_v47  ;;  %v1094_v42 = vmax.f32 %v252_v57, %v253_v51 }
  0x45   :  { %v1370_v48 = vunpack.c.l.bf16 %v777_v54  ;;  %v262_v39 = vrot.slane %v261_v22, 1  ;;  %v1371_v53 = vunpack.c.l.bf16 %v782_v55  ;;  %v1372_v19 = vunpack.c.l.bf16 %v791_v60 }
  0x46   :  { %v270_v0 = vmax.f32 %v268_v29, %v269_v13  ;;  %v277_v2 = vmax.f32 %v275_v32, %v276_v33  ;;  %v285_v18 = vrot.slane %v284_v31, 4  ;;  %v1373_v15 = vunpack.c.l.bf16 %v796_v61 }
  0x47   :  { %v291_v3 = vsel %vm136_vm0, %v1370_v48, -inf  ;;  %v292_v14 = vsel %vm138_vm1, %v1371_v53, -inf  ;;  %v300_v40 = vsel %vm136_vm0, %v1372_v19, -inf  ;;  %v1108_v54 = vmax.f32 %v261_v22, %v262_v39 }
  0x48   :  { %v271_v10 = vrot.slane %v270_v0, 1  ;;  %v278_v20 = vrot.slane %v277_v2, 2  ;;  %v293_v21 = vmax.f32 %v291_v3, %v292_v14  ;;  %v301_v5 = vsel %vm138_vm1, %v1373_v15, -inf }
  0x49   :  { %v286_v25 = vmax.f32 %v284_v31, %v285_v18  ;;  %v302_v11 = vmax.f32 %v300_v40, %v301_v5  ;;  %v1374_v41 = vunpack.c.l.bf16 %v801_v62  ;;  %v1375_v7 = vunpack.c.l.bf16 %v810_v56 }
  0x4a   :  { %v1113_v6 = vmax.f32 %v270_v0, %v271_v10  ;;  %v279_v60 = vmax.f32 %v277_v2, %v278_v20  ;;  %v294_v26 = vrot.slane %v293_v21, 4  ;;  %v1376_v46 = vunpack.c.l.bf16 %v815_v52 }
  0x4b   :  { %v309_v55 = vsel %vm136_vm0, %v1374_v41, -inf  ;;  %v310_v57 = vsel %vm138_vm1, %v1375_v7, -inf  ;;  %v287_v29 = vrot.slane %v286_v25, 2  ;;  %v303_v61 = vrot.slane %v302_v11, 4 }
  0x4c   :  { %v311_v32 = vmax.f32 %v309_v55, %v310_v57  ;;  %v318_v1 = vsel %vm136_vm0, %v1376_v46, -inf  ;;  %v280_v23 = vrot.slane %v279_v60, 1  ;;  %v295_v30 = vmax.f32 %v293_v21, %v294_v26 }
  0x4d   :  { %v1377_v62 = vunpack.c.l.bf16 %v820_v63  ;;  %v1378_v51 = vunpack.c.l.bf16 %v829_v50  ;;  %v288_v56 = vmax.f32 %v286_v25, %v287_v29  ;;  %v304_v33 = vmax.f32 %v302_v11, %v303_v61  ;;  %v1384_v29 = vld [vmem:[#allocation2_spill] sm:$0xff] }
  0x4e   :  { %v312_v9 = vrot.slane %v311_v32, 4  ;;  %v1127_v22 = vmax.f32 %v279_v60, %v280_v23  ;;  %v296_v31 = vrot.slane %v295_v30, 2  ;;  %v1379_v52 = vunpack.c.l.bf16 %v834_v49 }
  0x4f   :  { %v319_v12 = vsel %vm138_vm1, %v1377_v62, -inf  ;;  %v327_v13 = vsel %vm136_vm0, %v1378_v51, -inf  ;;  %v1380_v2 = vunpack.c.l.bf16 %v839_v59  ;;  %v289_v48 = vrot.slane %v288_v56, 1 }
  0x50   :  { %v320_v47 = vmax.f32 %v318_v1, %v319_v12  ;;  %v328_v0 = vsel %vm138_vm1, %v1379_v52, -inf  ;;  %v305_v3 = vrot.slane %v304_v33, 2  ;;  %v313_v50 = vmax.f32 %v311_v32, %v312_v9  ;;  %v1386_v12 = vld [vmem:[#allocation3_spill] sm:$0xff] }
  0x51   :  { %v336_v63 = vsel %vm136_vm0, %v1380_v2, -inf  ;;  %v297_v18 = vmax.f32 %v295_v30, %v296_v31  ;;  %v329_v53 = vmax.f32 %v327_v13, %v328_v0  ;;  %v1381_v14 = vunpack.c.l.bf16 %v848_v44 }
  0x52   :  { %v321_v39 = vrot.slane %v320_v47, 4  ;;  %v1382_v40 = vunpack.c.l.bf16 %v853_v43  ;;  %v1141_v10 = vmax.f32 %v288_v56, %v289_v48  ;;  %v306_v20 = vmax.f32 %v304_v33, %v305_v3  ;;  %v1388_v56 = vld [vmem:[#allocation4_spill] sm:$0xff]  ;;  %v1390_v48 = vld [vmem:[#allocation5_spill] sm:$0xff] }
  0x53   :  { %v337_v19 = vsel %vm138_vm1, %v1381_v14, -inf  ;;  %v314_v59 = vrot.slane %v313_v50, 2  ;;  %v298_v15 = vrot.slane %v297_v18, 1  ;;  %v330_v5 = vrot.slane %v329_v53, 4 }
  0x54   :  { %v345_v49 = vsel %vm136_vm0, %v1382_v40, -inf  ;;  %v322_v21 = vmax.f32 %v320_v47, %v321_v39  ;;  %v338_v25 = vmax.f32 %v336_v63, %v337_v19  ;;  %v1383_v11 = vunpack.c.l.bf16 %v858_v58  ;;  %v1392_v39 = vld [vmem:[#allocation6_spill] sm:$0xff] }
  0x55   :  { %v307_v55 = vrot.slane %v306_v20, 1  ;;  %v315_v44 = vmax.f32 %v313_v50, %v314_v59  ;;  %v1146_v7 = vmax.f32 %v297_v18, %v298_v15  ;;  %v331_v43 = vmax.f32 %v329_v53, %v330_v5 }
  0x56   :  { %v346_v41 = vsel %vm138_vm1, %v1383_v11, -inf  ;;  %v323_v60 = vrot.slane %v322_v21, 2  ;;  %v339_v57 = vrot.slane %v338_v25, 4  ;;  %v1385_v61 = vunpack.c.l.bf16 %v1384_v29  ;;  %v1398_v29 = vld [vmem:[#allocation9_spill] sm:$0xff] }
  0x57   :  { %v347_v26 = vmax.f32 %v345_v49, %v346_v41  ;;  %v1151_v46 = vmax.f32 %v306_v20, %v307_v55  ;;  %v316_v1 = vrot.slane %v315_v44, 1  ;;  %v332_v58 = vrot.slane %v331_v43, 2 }
  0x58   :  { %v354_v32 = vsel %vm136_vm0, %v1385_v61, -inf  ;;  %v324_v23 = vmax.f32 %v322_v21, %v323_v60  ;;  %v340_v62 = vmax.f32 %v338_v25, %v339_v57  ;;  %v1387_v51 = vunpack.c.l.bf16 %v1386_v12  ;;  %v1394_v21 = vld [vmem:[#allocation7_spill] sm:$0xff]  ;;  %v1396_v25 = vld [vmem:[#allocation8_spill] sm:$0xff] }
  0x59   :  { %v348_v30 = vrot.slane %v347_v26, 4  ;;  %v1389_v33 = vunpack.c.l.bf16 %v1388_v56  ;;  %v1159_v47 = vmax.f32 %v315_v44, %v316_v1  ;;  %v333_v2 = vmax.f32 %v331_v43, %v332_v58  ;;  %v1401_v56 = vld [vmem:[#allocation10_spill] sm:$0xff] }
  0x5a   :  { %v355_v13 = vsel %vm138_vm1, %v1387_v51, -inf  ;;  %v325_v31 = vrot.slane %v324_v23, 1  ;;  %v341_v63 = vrot.slane %v340_v62, 2  ;;  %v1391_v3 = vunpack.c.l.bf16 %v1390_v48 }
  0x5b   :  { %v363_v9 = vsel %vm136_vm0, %v1389_v33, -inf  ;;  %v349_v52 = vmax.f32 %v347_v26, %v348_v30  ;;  %v356_v0 = vmax.f32 %v354_v32, %v355_v13  ;;  %v1393_v18 = vunpack.c.l.bf16 %v1392_v39  ;;  %v1405_v39 = vld [vmem:[#allocation12_spill] sm:$0xff] }
  0x5c   :  { %v364_v50 = vsel %vm138_vm1, %v1391_v3, -inf  ;;  %v1167_v14 = vmax.f32 %v324_v23, %v325_v31  ;;  %v334_v20 = vrot.slane %v333_v2, 1  ;;  %v342_v59 = vmax.f32 %v340_v62, %v341_v63  ;;  %v1403_v31 = vld [vmem:[#allocation11_spill] sm:$0xff] }
  0x5d   :  { %v372_v53 = vsel %vm136_vm0, %v1393_v18, -inf  ;;  %v350_v19 = vrot.slane %v349_v52, 2  ;;  %v357_v40 = vrot.slane %v356_v0, 4  ;;  %v365_v49 = vmax.f32 %v363_v9, %v364_v50 }
  0x5e   :  { %v1395_v15 = vunpack.c.l.bf16 %v1394_v21  ;;  %v1397_v11 = vunpack.c.l.bf16 %v1396_v25  ;;  %v1175_v43 = vmax.f32 %v333_v2, %v334_v20  ;;  %v343_v57 = vrot.slane %v342_v59, 1 }
  0x5f   :  { %v351_v55 = vmax.f32 %v349_v52, %v350_v19  ;;  %v358_v44 = vmax.f32 %v356_v0, %v357_v40  ;;  %v366_v60 = vrot.slane %v365_v49, 4  ;;  %v1399_v61 = vunpack.c.l.bf16 %v1398_v29  ;;  %v1407_v19 = vld [vmem:[#allocation13_spill] sm:$0xff] }
  0x60   :  { %v373_v5 = vsel %vm138_vm1, %v1395_v15, -inf  ;;  %v381_v41 = vsel %vm136_vm0, %v1397_v11, -inf  ;;  %v1400_v1 = vunpack.c.l.bf16 %v915_v45  ;;  %v1183_v51 = vmax.f32 %v342_v59, %v343_v57  ;;  %v1409_v11 = vld [vmem:[#allocation14_spill] sm:$0xff] }
  0x61   :  { %v374_v26 = vmax.f32 %v372_v53, %v373_v5  ;;  %v382_v32 = vsel %vm138_vm1, %v1399_v61, -inf  ;;  %v352_v30 = vrot.slane %v351_v55, 1  ;;  %v359_v58 = vrot.slane %v358_v44, 2 }
  0x62   :  { %v390_v23 = vsel %vm136_vm0, %v1400_v1, -inf  ;;  %v367_v62 = vmax.f32 %v365_v49, %v366_v60  ;;  %v383_v13 = vmax.f32 %v381_v41, %v382_v32  ;;  %v1402_v33 = vunpack.c.l.bf16 %v1401_v56 }
  0x63   :  { %v375_v12 = vrot.slane %v374_v26, 4  ;;  %v1404_v52 = vunpack.c.l.bf16 %v1403_v31  ;;  %v1191_v2 = vmax.f32 %v351_v55, %v352_v30  ;;  %v360_v45 = vmax.f32 %v358_v44, %v359_v58  ;;  %v1411_v44 = vld [vmem:[#allocation15_spill] sm:$0xff]  ;;  %v1413_v58 = vld [vmem:[#allocation16_spill] sm:$0xff] }
  0x64   :  { %v391_v9 = vsel %vm138_vm1, %v1402_v33, -inf  ;;  %v368_v63 = vrot.slane %v367_v62, 2  ;;  %v384_v3 = vrot.slane %v383_v13, 4  ;;  %v1406_v18 = vunpack.c.l.bf16 %v1405_v39 }
  0x65   :  { %v399_v0 = vsel %vm136_vm0, %v1404_v52, -inf  ;;  %v376_v48 = vmax.f32 %v374_v26, %v375_v12  ;;  %v392_v50 = vmax.f32 %v390_v23, %v391_v9  ;;  %v1408_v40 = vunpack.c.l.bf16 %v1407_v19 }
  0x66   :  { %v400_v53 = vsel %vm138_vm1, %v1406_v18, -inf  ;;  %v361_v20 = vrot.slane %v360_v45, 1  ;;  %v369_v59 = vmax.f32 %v367_v62, %v368_v63  ;;  %v385_v5 = vmax.f32 %v383_v13, %v384_v3 }
  0x67   :  { %v408_v49 = vsel %vm136_vm0, %v1408_v40, -inf  ;;  %v377_v21 = vrot.slane %v376_v48, 2  ;;  %v401_v15 = vmax.f32 %v399_v0, %v400_v53  ;;  %v393_v25 = vrot.slane %v392_v50, 4 }
  0x68   :  { %v1410_v41 = vunpack.c.l.bf16 %v1409_v11  ;;  %v1412_v60 = vunpack.c.l.bf16 %v1411_v44  ;;  %v1205_v57 = vmax.f32 %v360_v45, %v361_v20  ;;  %v370_v29 = vrot.slane %v369_v59, 1 }
  0x69   :  { %v378_v61 = vmax.f32 %v376_v48, %v377_v21  ;;  %v402_v32 = vrot.slane %v401_v15, 4  ;;  %v386_v1 = vrot.slane %v385_v5, 2  ;;  %v394_v23 = vmax.f32 %v392_v50, %v393_v25 }
  0x6a   :  { %v409_v55 = vsel %vm138_vm1, %v1410_v41, -inf  ;;  %v417_v26 = vsel %vm136_vm0, %v1412_v60, -inf  ;;  %v1414_v62 = vunpack.c.l.bf16 %v1413_v58  ;;  %v1210_v13 = vmax.f32 %v369_v59, %v370_v29 }
  0x6b   :  { %v410_v30 = vmax.f32 %v408_v49, %v409_v55  ;;  %v379_v56 = vrot.slane %v378_v61, 1  ;;  %v403_v33 = vmax.f32 %v401_v15, %v402_v32  ;;  %v387_v31 = vmax.f32 %v385_v5, %v386_v1 }
  0x6c   :  { %v418_v12 = vsel %vm138_vm1, %v1414_v62, -inf  ;;  %v395_v52 = vrot.slane %v394_v23, 2  ;;  %v426_v45 = vpack.c.bf16 %v1016_v37, %v1016_v37  ;;  %v427_v50 = vpack.c.bf16 %v1018_v8, %v1018_v8 }
  0x6d   :  { %v419_v9 = vmax.f32 %v417_v26, %v418_v12  ;;  %v411_v0 = vrot.slane %v410_v30, 4  ;;  %v1214_v63 = vmax.f32 %v378_v61, %v379_v56  ;;  %v404_v48 = vrot.slane %v403_v33, 2 }
  0x6e   :  { %v388_v39 = vrot.slane %v387_v31, 1  ;;  %v396_v18 = vmax.f32 %v394_v23, %v395_v52  ;;  %v428_v19 = vpack.c.bf16 %v1020_v36, %v1020_v36  ;;  %v429_v20 = vpack.c.bf16 %v1022_v24, %v1022_v24 }
  0x6f   :  { %v420_v3 = vrot.slane %v419_v9, 4  ;;  %v412_v53 = vmax.f32 %v410_v30, %v411_v0  ;;  %v405_v40 = vmax.f32 %v403_v33, %v404_v48  ;;  %v430_v37 = vpack.c.bf16 %v1030_v4, %v1030_v4 }
  0x70   :  { %v1224_v59 = vmax.f32 %v387_v31, %v388_v39  ;;  %v397_v21 = vrot.slane %v396_v18, 1  ;;  %v431_v8 = vpack.c.bf16 %v1032_v38, %v1032_v38  ;;  %v432_v36 = vpack.c.bf16 %v1055_v35, %v1055_v35 }
  0x71   :  { %v421_v49 = vmax.f32 %v419_v9, %v420_v3  ;;  %v413_v15 = vrot.slane %v412_v53, 2  ;;  %v406_v5 = vrot.slane %v405_v40, 1  ;;  %v433_v11 = vpack.c.bf16 %v1069_v16, %v1069_v16 }
  0x72   :  { %v398_v41 = vmax.f32 %v396_v18, %v397_v21  ;;  %v434_v4 = vpack.c.bf16 %v1077_v28, %v1077_v28  ;;  %v435_v55 = vpack.c.bf16 %v1082_v27, %v1082_v27  ;;  %v436_v38 = vpack.c.bf16 %v1090_v34, %v1090_v34 }
  0x73   :  { %v422_v25 = vrot.slane %v421_v49, 2  ;;  %v414_v24 = vmax.f32 %v412_v53, %v413_v15  ;;  %v407_v44 = vmax.f32 %v405_v40, %v406_v5  ;;  %v437_v26 = vpack.c.bf16 %v1092_v17, %v1092_v17 }
  0x74   :  { %v438_v16 = vpack.c.bf16 %v1094_v42, %v1094_v42  ;;  %v439_v29 = vpack.c.bf16 %v1108_v54, %v1108_v54  ;;  %v440_v28 = vpack.c.bf16 %v1113_v6, %v1113_v6  ;;  %v441_v27 = vpack.c.bf16 %v1127_v22, %v1127_v22 }
  0x75   :  { %v423_v60 = vmax.f32 %v421_v49, %v422_v25  ;;  %v415_v35 = vrot.slane %v414_v24, 1  ;;  %v442_v34 = vpack.c.bf16 %v1141_v10, %v1141_v10  ;;  %v443_v17 = vpack.c.bf16 %v1146_v7, %v1146_v7 }
  0x76   :  { %v444_v42 = vpack.c.bf16 %v1151_v46, %v1151_v46  ;;  %v445_v54 = vpack.c.bf16 %v1159_v47, %v1159_v47  ;;  %v446_v6 = vpack.c.bf16 %v1167_v14, %v1167_v14  ;;  %v447_v22 = vpack.c.bf16 %v1175_v43, %v1175_v43 }
  0x77   :  { %v424_v61 = vrot.slane %v423_v60, 1  ;;  %v416_v32 = vmax.f32 %v414_v24, %v415_v35  ;;  %v448_v10 = vpack.c.bf16 %v1183_v51, %v1183_v51  ;;  %v449_v7 = vpack.c.bf16 %v1191_v2, %v1191_v2 }
  0x78   :  { %v450_v23 = vpack.c.bf16 %v1205_v57, %v1205_v57  ;;  %v451_v46 = vpack.c.bf16 %v1210_v13, %v1210_v13  ;;  %v452_v47 = vpack.c.bf16 %v1214_v63, %v1214_v63  ;;  %v453_v14 = vpack.c.bf16 %v1224_v59, %v1224_v59 }
  0x79   :  { %v425_v1 = vmax.f32 %v423_v60, %v424_v61  ;;  %v454_v30 = vpack.c.bf16 %v398_v41, %v398_v41  ;;  %v455_v43 = vpack.c.bf16 %v407_v44, %v407_v44  ;;  %v456_v58 = vpack.c.bf16 %v416_v32, %v416_v32 }
  0x7a   :  { %v490_v51 = vunpack.c.l.b16 %v426_v45  ;;  %v491_v12 = vunpack.c.l.b16 %v427_v50  ;;  %v492_v56 = vunpack.c.l.b16 %v428_v19  ;;  %v493_v2 = vunpack.c.l.b16 %v429_v20 }
  0x7b   :  { %v457_v62 = vpack.c.bf16 %v425_v1, %v425_v1  ;;  %v494_v33 = vunpack.c.l.b16 %v430_v37  ;;  %v495_v9 = vunpack.c.l.b16 %v431_v8  ;;  %v496_v57 = vunpack.c.l.b16 %v432_v36 }
  0x7c   :  { %v497_v31 = vunpack.c.l.b16 %v433_v11  ;;  %v498_v52 = vunpack.c.l.b16 %v434_v4  ;;  %v499_v13 = vunpack.c.l.b16 %v435_v55  ;;  %v500_v0 = vunpack.c.l.b16 %v436_v38 }
  0x7d   :  { %v501_v48 = vunpack.c.l.b16 %v437_v26  ;;  %v502_v63 = vunpack.c.l.b16 %v438_v16  ;;  %v503_v3 = vunpack.c.l.b16 %v439_v29  ;;  %v504_v39 = vunpack.c.l.b16 %v440_v28 }
  0x7e   :  { %v505_v18 = vunpack.c.l.b16 %v441_v27  ;;  %v506_v53 = vunpack.c.l.b16 %v442_v34  ;;  %v507_v40 = vunpack.c.l.b16 %v443_v17  ;;  %v508_v49 = vunpack.c.l.b16 %v444_v42 }
  0x7f   :  { %v509_v59 = vunpack.c.l.b16 %v445_v54  ;;  %v510_v45 = vunpack.c.l.b16 %v446_v6  ;;  %v511_v50 = vunpack.c.l.b16 %v447_v22  ;;  %v512_v19 = vunpack.c.l.b16 %v448_v10 }
  0x80   :  { %v513_v20 = vunpack.c.l.b16 %v449_v7  ;;  %v514_v37 = vunpack.c.l.b16 %v450_v23  ;;  %v515_v21 = vunpack.c.l.b16 %v451_v46  ;;  %v516_v15 = vunpack.c.l.b16 %v452_v47 }
  0x81   :  { %v517_v8 = vunpack.c.l.b16 %v453_v14  ;;  %v518_v5 = vunpack.c.l.b16 %v454_v30  ;;  %v519_v25 = vunpack.c.l.b16 %v455_v43  ;;  %v520_v36 = vunpack.c.l.b16 %v456_v58 }
  0x82   :  { %v521_v11 = vunpack.c.l.b16 %v457_v62  ;;  %v523_v41 = vsel %vm522_vm2, %v491_v12, %v490_v51  ;;  %v536_v4 = vsel %vm522_vm2, %v499_v13, %v498_v52  ;;  %v543_v55 = vsel %vm522_vm2, %v507_v40, %v506_v53 }
  0x83   :  { %v525_v24 = vsel %vm524_vm3, %v492_v56, %v523_v41  ;;  %v550_v44 = vsel %vm522_vm2, %v515_v21, %v514_v37  ;;  %v537_v38 = vsel %vm524_vm3, %v500_v0, %v536_v4  ;;  %v544_v26 = vsel %vm524_vm3, %v508_v49, %v543_v55 }
  0x84   :  { %v527_v60 = vsel %vm526_vm4, %v493_v2, %v525_v24  ;;  %v551_v35 = vsel %vm524_vm3, %v516_v15, %v550_v44  ;;  %v538_v29 = vsel %vm526_vm4, %v501_v48, %v537_v38  ;;  %v545_v28 = vsel %vm526_vm4, %v509_v59, %v544_v26 }
  0x85   :  { %v529_v16 = vsel %vm528_vm5, %v494_v33, %v527_v60  ;;  %v552_v61 = vsel %vm526_vm4, %v517_v8, %v551_v35  ;;  %v539_v34 = vsel %vm528_vm5, %v502_v63, %v538_v29  ;;  %v546_v17 = vsel %vm528_vm5, %v510_v45, %v545_v28 }
  0x86   :  { %v531_v27 = vsel %vm530_vm6, %v495_v9, %v529_v16  ;;  %v553_v32 = vsel %vm528_vm5, %v518_v5, %v552_v61  ;;  %v540_v54 = vsel %vm530_vm6, %v503_v3, %v539_v34  ;;  %v547_v6 = vsel %vm530_vm6, %v511_v50, %v546_v17 }
  0x87   :  { %v533_v42 = vsel %vm532_vm7, %v496_v57, %v531_v27  ;;  %v554_v1 = vsel %vm530_vm6, %v519_v25, %v553_v32  ;;  %v541_v10 = vsel %vm532_vm7, %v504_v39, %v540_v54  ;;  %v548_v7 = vsel %vm532_vm7, %v512_v19, %v547_v6 }
  0x88   :  { %v535_v22 = vsel %vm534_vm8, %v497_v31, %v533_v42  ;;  %v555_v23 = vsel %vm532_vm7, %v520_v36, %v554_v1  ;;  %v542_v46 = vsel %vm534_vm8, %v505_v18, %v541_v10  ;;  %v549_v47 = vsel %vm534_vm8, %v513_v20, %v548_v7 }
  0x89   :  { %v556_v14 = vsel %vm534_vm8, %v521_v11, %v555_v23  ;;  %v557_v30 = vpack.c.b16 %v535_v22, %v535_v22  ;;  %v558_v43 = vpack.c.b16 %v542_v46, %v542_v46  ;;  %v559_v58 = vpack.c.b16 %v549_v47, %v549_v47 }
  0x8a   :  { %v560_v62 = vpack.c.b16 %v556_v14, %v556_v14 }
  0x8b   :  { %566 = vst.msk [vmem:[%s1305_s1] sm:$0xf] %vm565_vm9, %v557_v30 }
  0x8c   :  { %567 = vst.msk [vmem:[%s1305_s1 + $0x4] sm:$0xf] %vm565_vm9, %v558_v43 }
  0x8d   :  { %568 = vst.msk [vmem:[%s1305_s1 + $0x8] sm:$0xf] %vm565_vm9, %v559_v58 }
  0x8e   :  { %569 = vst.msk [vmem:[%s1305_s1 + $0xc] sm:$0xf] %vm565_vm9, %v560_v62 }

// kernel: resnet_forward.9
= control target key start
LH: loop header
LB: loop body
LE: loop exit
PB: predicated region body
PF: predicated region fallthrough
CT: control target
= control target key end

     0   :  { %vm80_vm0 = vcmask 523264   ;;  %s1220_s3 = inlined_call_operand.vmem [shape: bf16[64,128], index: 3, kind: input, shape index: {}]   ;;  %s1221_s2 = inlined_call_operand.vmem [shape: bf16[640,128], index: 2, kind: input, shape index: {}]   ;;  %s1222_s0 = inlined_call_operand.vmem [shape: bf16[32,64], index: 0, kind: input, shape index: {}]   ;;  %s1223_s1 = inlined_call_operand.vmem [shape: bf16[32,640], index: 1, kind: input, shape index: {}]   ;;  %s1224_s4 = inlined_call_operand.vmem [shape: f32[1,128], index: 4, kind: input, shape index: {}]   ;;  %s1225_s5 = inlined_call_operand.vmem [shape: f32[1,128], index: 5, kind: input, shape index: {}]   ;;  %s1226_s7 = inlined_call_operand.vmem [shape: bf16[32,128], index: 7, kind: output, shape index: {1}]   ;;  %s1227_s6 = inlined_call_operand.vmem [shape: bf16[32,128], index: 6, kind: output, shape index: {0}]  }
   0x1   :  { %v879_v0 = vld [vmem:[%s1220_s3 + $0x18] sm:$0xff]  ;;  %v878_v4 = vld [vmem:[%s1220_s3 + $0x10] sm:$0xff]  ;;  %v877_v8 = vld [vmem:[%s1220_s3 + $0x8] sm:$0xff] }
   0x2   :  { %v897_v1 = vld [vmem:[%s1221_s2 + $0x38] sm:$0xff]  ;;  %91 = vmatpush.bf16.msra.mxu0 %v879_v0  ;;  %v896_v5 = vld [vmem:[%s1221_s2 + $0x30] sm:$0xff]  ;;  %v895_v9 = vld [vmem:[%s1221_s2 + $0x28] sm:$0xff] }
   0x3   :  { %v905_v2 = vld [vmem:[%s1221_s2 + $0x78] sm:$0xff]  ;;  %502 = vmatpush.bf16.msra.mxu1 %v897_v1  ;;  %v904_v6 = vld [vmem:[%s1221_s2 + $0x70] sm:$0xff]  ;;  %v903_v10 = vld [vmem:[%s1221_s2 + $0x68] sm:$0xff] }
   0x4   :  { %v913_v3 = vld [vmem:[%s1221_s2 + $0xb8] sm:$0xff]  ;;  %521 = vmatpush.bf16.msra.mxu2 %v905_v2  ;;  %v912_v7 = vld [vmem:[%s1221_s2 + $0xb0] sm:$0xff]  ;;  %v911_v11 = vld [vmem:[%s1221_s2 + $0xa8] sm:$0xff] }
   0x5   :  { %540 = vmatpush.bf16.msra.mxu3 %v913_v3  ;;  %v876_v12 = vld [vmem:[%s1220_s3] sm:$0xff]  ;;  %v921_v16 = vld [vmem:[%s1221_s2 + $0xf8] sm:$0xff]  ;;  %v920_v21 = vld [vmem:[%s1221_s2 + $0xf0] sm:$0xff] }
   0x6   :  { %92 = vmatpush.bf16.msra.mxu0 %v878_v4  ;;  %v894_v13 = vld [vmem:[%s1221_s2 + $0x20] sm:$0xff]  ;;  %v893_v18 = vld [vmem:[%s1221_s2 + $0x18] sm:$0xff]  ;;  %v892_v22 = vld [vmem:[%s1221_s2 + $0x10] sm:$0xff] }
   0x7   :  { %503 = vmatpush.bf16.msra.mxu1 %v896_v5  ;;  %v902_v14 = vld [vmem:[%s1221_s2 + $0x60] sm:$0xff]  ;;  %v901_v19 = vld [vmem:[%s1221_s2 + $0x58] sm:$0xff]  ;;  %v900_v23 = vld [vmem:[%s1221_s2 + $0x50] sm:$0xff] }
   0x8   :  { %522 = vmatpush.bf16.msra.mxu2 %v904_v6  ;;  %v910_v15 = vld [vmem:[%s1221_s2 + $0xa0] sm:$0xff]  ;;  %v909_v20 = vld [vmem:[%s1221_s2 + $0x98] sm:$0xff]  ;;  %v908_v24 = vld [vmem:[%s1221_s2 + $0x90] sm:$0xff] }
   0x9   :  { %541 = vmatpush.bf16.msra.mxu3 %v912_v7  ;;  %v874_v17 = vld [vmem:[%s1222_s0] sm:$0xff]  ;;  %v919_v25 = vld [vmem:[%s1221_s2 + $0xe8] sm:$0xff]  ;;  %v882_v34 = vld [vmem:[%s1223_s1 + $0x10] sm:$0xf0] }
   0xa   :  { %93 = vmatpush.bf16.msra.mxu0 %v877_v8  ;;  %v891_v26 = vld [vmem:[%s1221_s2 + $0x8] sm:$0xff]  ;;  %v918_v29 = vld [vmem:[%s1221_s2 + $0xe0] sm:$0xff]  ;;  %v678_v36 = vld [vmem:[%s1223_s1 + $0x14] sm:$0xf0] }
   0xb   :  { %504 = vmatpush.bf16.msra.mxu1 %v895_v9  ;;  %v899_v27 = vld [vmem:[%s1221_s2 + $0x48] sm:$0xff]  ;;  %v890_v30 = vld [vmem:[%s1221_s2] sm:$0xff]  ;;  %v929_v37 = vld [vmem:[%s1221_s2 + $0x138] sm:$0xff] }
   0xc   :  { %523 = vmatpush.bf16.msra.mxu2 %v903_v10  ;;  %v907_v28 = vld [vmem:[%s1221_s2 + $0x88] sm:$0xff]  ;;  %v898_v31 = vld [vmem:[%s1221_s2 + $0x40] sm:$0xff]  ;;  %v917_v38 = vld [vmem:[%s1221_s2 + $0xd8] sm:$0xff] }
   0xd   :  { %542 = vmatpush.bf16.msra.mxu3 %v911_v11  ;;  %v906_v32 = vld [vmem:[%s1221_s2 + $0x80] sm:$0xff]  ;;  %v684_v39 = vld [vmem:[%s1223_s1 + $0x8] sm:$0xf]  ;;  %v883_v40 = vld [vmem:[%s1223_s1 + $0x18] sm:$0xf0] }
   0xe   :  { %94 = vmatpush.bf16.msra.mxu0 %v876_v12  ;;  %v676_v33 = vld [vmem:[%s1223_s1] sm:$0xf]  ;;  %v880_v35 = vld [vmem:[%s1223_s1 + $0x4] sm:$0xf]  ;;  %v875_v41 = vld [vmem:[%s1222_s0 + $0x8] sm:$0xff]  ;;  %v685_v44 = vor.u32 %v883_v40, %v684_v39 }
   0xf   :  { %505 = vmatpush.bf16.msra.mxu1 %v894_v13  ;;  %v677_v42 = vor.u32 %v882_v34, %v676_v33  ;;  %v681_v43 = vor.u32 %v880_v35, %v678_v36  ;;  %v928_v45 = vld [vmem:[%s1221_s2 + $0x130] sm:$0xff]  ;;  %v927_v47 = vld [vmem:[%s1221_s2 + $0x128] sm:$0xff]  ;;  %v926_v49 = vld [vmem:[%s1221_s2 + $0x120] sm:$0xff] }
  0x10   :  { %524 = vmatpush.bf16.msra.mxu2 %v902_v14  ;;  %v916_v46 = vld [vmem:[%s1221_s2 + $0xd0] sm:$0xff]  ;;  %v915_v48 = vld [vmem:[%s1221_s2 + $0xc8] sm:$0xff]  ;;  %v914_v50 = vld [vmem:[%s1221_s2 + $0xc0] sm:$0xff] }
  0x11   :  { %543 = vmatpush.bf16.msra.mxu3 %v910_v15  ;;  %672 = vmatmul.msk.bf16.vlgmr.msra.gmra.mxu0 %vm80_vm0, %v874_v17  ;;  %v696_v51 = vld [vmem:[%s1223_s1 + $0x28] sm:$0xf]  ;;  %v887_v52 = vld [vmem:[%s1223_s1 + $0x38] sm:$0xf0]  ;;  %v881_v53 = vld [vmem:[%s1223_s1 + $0xc] sm:$0xf] }
  0x12   :  { %559 = vmatpush.bf16.msrb.mxu0 %v921_v16  ;;  %v686_v54 = vld [vmem:[%s1223_s1 + $0x1c] sm:$0xf0]  ;;  %v885_v55 = vld [vmem:[%s1223_s1 + $0x2c] sm:$0xf]  ;;  %v925_v57 = vld [vmem:[%s1221_s2 + $0x118] sm:$0xff]  ;;  %v697_v60 = vor.u32 %v887_v52, %v696_v51 }
  0x13   :  { %506 = vmatpush.bf16.msra.mxu1 %v893_v18  ;;  %v698_v56 = vld [vmem:[%s1223_s1 + $0x3c] sm:$0xf0]  ;;  %v704_v58 = vld [vmem:[%s1223_s1 + $0x30] sm:$0xf]  ;;  %v888_v59 = vld [vmem:[%s1223_s1 + $0x40] sm:$0xf0]  ;;  %v689_v61 = vor.u32 %v881_v53, %v686_v54 }
  0x14   :  { %525 = vmatpush.bf16.msra.mxu2 %v901_v19  ;;  %v701_v62 = vor.u32 %v885_v55, %v698_v56  ;;  %v705_v63 = vor.u32 %v888_v59, %v704_v58  ;;  %v924_v0 = vld [vmem:[%s1221_s2 + $0x110] sm:$0xff]  ;;  %v923_v1 = vld [vmem:[%s1221_s2 + $0x108] sm:$0xff]  ;;  %v922_v2 = vld [vmem:[%s1221_s2 + $0x100] sm:$0xff] }
  0x15   :  { %544 = vmatpush.bf16.msra.mxu3 %v909_v20  ;;  %v886_v3 = vld [vmem:[%s1223_s1 + $0x34] sm:$0xf]  ;;  %v706_v4 = vld [vmem:[%s1223_s1 + $0x44] sm:$0xf0]  ;;  %v692_v5 = vld [vmem:[%s1223_s1 + $0x10] sm:$0xf] }
  0x16   :  { %560 = vmatpush.bf16.msrb.mxu0 %v920_v21  ;;  %v884_v6 = vld [vmem:[%s1223_s1 + $0x20] sm:$0xf0]  ;;  %v712_v7 = vld [vmem:[%s1223_s1 + $0x38] sm:$0xf]  ;;  %v889_v8 = vld [vmem:[%s1223_s1 + $0x48] sm:$0xf0]  ;;  %v709_v9 = vor.u32 %v886_v3, %v706_v4 }
  0x17   :  { %507 = vmatpush.bf16.msra.mxu1 %v892_v22  ;;  %v693_v10 = vor.u32 %v884_v6, %v692_v5  ;;  %v713_v11 = vor.u32 %v889_v8, %v712_v7  ;;  %v960_v39 = vld [vmem:[%s1224_s4] ss:$0 sm:$0xff] }
  0x18   :  { %526 = vmatpush.bf16.msra.mxu2 %v900_v23 }
  0x19   :  { %545 = vmatpush.bf16.msra.mxu3 %v908_v24 }
  0x1a   :  { %561 = vmatpush.bf16.msrb.mxu0 %v919_v25 }
  0x1b   :  { %508 = vmatpush.bf16.msra.mxu1 %v891_v26 }
  0x1c   :  { %527 = vmatpush.bf16.msra.mxu2 %v899_v27 }
  0x1d   :  { %546 = vmatpush.bf16.msra.mxu3 %v907_v28 }
  0x1e   :  { %562 = vmatpush.bf16.msrb.mxu0 %v918_v29 }
  0x1f   :  { %509 = vmatpush.bf16.msra.mxu1 %v890_v30 }
  0x20   :  { %528 = vmatpush.bf16.msra.mxu2 %v898_v31 }
  0x21   :  { %547 = vmatpush.bf16.msra.mxu3 %v906_v32  ;;  %673 = vmatmul.msk.bf16.gmra.mxu0 %vm80_vm0, %v875_v41 }
  0x22   :  { %563 = vmatpush.bf16.msrb.mxu0 %v917_v38  ;;  %510 = vmatmul.bf16.vlgmr.msra.gmra.mxu1 %v677_v42 }
  0x23   :  { %529 = vmatmul.bf16.vlgmr.msra.gmra.mxu2 %v681_v43  ;;  %578 = vmatpush.bf16.msrb.mxu1 %v929_v37 }
  0x24   :  { %952 = vmatpush.bf16.msrb.mxu2 %v929_v37  ;;  %548 = vmatmul.bf16.vlgmr.msra.gmra.mxu3 %v685_v44  ;;  %v961_v44 = vld [vmem:[%s1225_s5] ss:$0 sm:$0xff] }
  0x26   :  { %564 = vmatpush.bf16.msrb.mxu0 %v916_v46 }
  0x27   :  { %579 = vmatpush.bf16.msrb.mxu1 %v928_v45 }
  0x28   :  { %953 = vmatpush.bf16.msrb.mxu2 %v928_v45 }
  0x2a   :  { %565 = vmatpush.bf16.msrb.mxu0 %v915_v48 }
  0x2b   :  { %580 = vmatpush.bf16.msrb.mxu1 %v927_v47 }
  0x2c   :  { %954 = vmatpush.bf16.msrb.mxu2 %v927_v47 }
  0x2e   :  { %566 = vmatpush.bf16.msrb.mxu0 %v914_v50 }
  0x2f   :  { %581 = vmatpush.bf16.msrb.mxu1 %v926_v49 }
  0x30   :  { %955 = vmatpush.bf16.msrb.mxu2 %v926_v49 }
  0x31   :  { %567 = vmatmul.bf16.vlgmr.msrb.gmra.mxu0 %v689_v61 }
  0x32   :  { %515 = vmatmul.bf16.gmra.mxu1 %v697_v60 }
  0x33   :  { %534 = vmatmul.bf16.gmra.mxu2 %v701_v62  ;;  %582 = vmatpush.bf16.msrb.mxu1 %v925_v57 }
  0x34   :  { %956 = vmatpush.bf16.msrb.mxu2 %v925_v57  ;;  %553 = vmatmul.bf16.gmra.mxu3 %v705_v63 }
  0x37   :  { %583 = vmatpush.bf16.msrb.mxu1 %v924_v0 }
  0x38   :  { %957 = vmatpush.bf16.msrb.mxu2 %v924_v0 }
  0x3b   :  { %584 = vmatpush.bf16.msrb.mxu1 %v923_v1 }
  0x3c   :  { %958 = vmatpush.bf16.msrb.mxu2 %v923_v1 }
  0x3f   :  { %585 = vmatpush.bf16.msrb.mxu1 %v922_v2 }
  0x40   :  { %959 = vmatpush.bf16.msrb.mxu2 %v922_v2 }
  0x41   :  { %572 = vmatmul.bf16.gmra.mxu0 %v709_v9 }
  0x42   :  { %586 = vmatmul.bf16.vlgmr.msrb.gmra.mxu1 %v693_v10 }
  0x43   :  { %591 = vmatmul.bf16.vlgmr.msrb.gmra.mxu2 %v713_v11 }
  0x8e   :  { %v96_v12 = vpop.f32.mrf.mxu0 }
  0x96   :  { %v98_v13 = vpop.f32.mrf.mxu0 }
  0x97   :  { %v933_v14 = vpack.c.bf16 %v98_v13, %v96_v12 }
  0x99   :  { %934 = vst [vmem:[%s1226_s7] sm:$0xff] %v933_v14  }
  0x9e   :  { %v101_v15 = vpop.f32.mrf.mxu0 }
  0x9f   :  { %v511_v16 = vpop.f32.mrf.mxu1 }
  0xa6   :  { %v530_v17 = vpop.f32.mrf.mxu2  ;;  %v103_v18 = vpop.f32.mrf.mxu0 }
  0xa7   :  { %v513_v19 = vpop.f32.mrf.mxu1  ;;  %v938_v20 = vpack.c.bf16 %v103_v18, %v101_v15  ;;  %v549_v21 = vpop.f32.mrf.mxu3  ;;  %v531_v29 = vadd.f32 %v530_v17, %v511_v16 }
  0xa9   :  { %950 = vst [vmem:[%s1226_s7 + $0x8] sm:$0xff] %v938_v20   ;;  %v550_v30 = vadd.f32 %v549_v21, %v531_v29 }
  0xae   :  { %v532_v22 = vpop.f32.mrf.mxu2  ;;  %v568_v24 = vpop.f32.mrf.mxu0 }
  0xaf   :  { %v516_v23 = vpop.f32.mrf.mxu1  ;;  %v551_v25 = vpop.f32.mrf.mxu3  ;;  %v533_v34 = vadd.f32 %v532_v22, %v513_v19  ;;  %v569_v35 = vadd.f32 %v568_v24, %v550_v30 }
  0xb1   :  { %v552_v40 = vadd.f32 %v551_v25, %v533_v34 }
  0xb6   :  { %v535_v26 = vpop.f32.mrf.mxu2  ;;  %v570_v28 = vpop.f32.mrf.mxu0 }
  0xb7   :  { %v518_v27 = vpop.f32.mrf.mxu1  ;;  %v554_v31 = vpop.f32.mrf.mxu3  ;;  %v536_v37 = vadd.f32 %v535_v26, %v516_v23  ;;  %v571_v42 = vadd.f32 %v570_v28, %v552_v40 }
  0xb9   :  { %v555_v41 = vadd.f32 %v554_v31, %v536_v37 }
  0xbe   :  { %v537_v32 = vpop.f32.mrf.mxu2  ;;  %v573_v36 = vpop.f32.mrf.mxu0 }
  0xbf   :  { %v587_v33 = vpop.f32.mrf.mxu1  ;;  %v538_v46 = vadd.f32 %v537_v32, %v518_v27  ;;  %v574_v47 = vadd.f32 %v573_v36, %v555_v41  ;;  %v556_v49 = vpop.f32.mrf.mxu3 }
  0xc0   :  { %v588_v38 = vadd.f32 %v587_v33, %v569_v35 }
  0xc1   :  { %v557_v55 = vadd.f32 %v556_v49, %v538_v46 }
  0xc2   :  { %v616_v43 = vmul.f32 %v960_v39, %v588_v38 }
  0xc4   :  { %v624_v52 = vadd.f32 %v961_v44, %v616_v43 }
  0xc6   :  { %v592_v45 = vpop.f32.mrf.mxu2  ;;  %v575_v53 = vpop.f32.mrf.mxu0  ;;  %v628_v59 = vmax.f32 %v624_v52, 0.0 }
  0xc7   :  { %v589_v48 = vpop.f32.mrf.mxu1  ;;  %v593_v51 = vadd.f32 %v592_v45, %v574_v47  ;;  %v576_v58 = vadd.f32 %v575_v53, %v557_v55 }
  0xc8   :  { %v590_v50 = vadd.f32 %v589_v48, %v571_v42 }
  0xc9   :  { %v618_v57 = vmul.f32 %v960_v39, %v593_v51 }
  0xca   :  { %v617_v54 = vmul.f32 %v960_v39, %v590_v50 }
  0xcb   :  { %v626_v0 = vadd.f32 %v961_v44, %v618_v57 }
  0xcc   :  { %v625_v56 = vadd.f32 %v961_v44, %v617_v54 }
  0xcd   :  { %v630_v3 = vmax.f32 %v626_v0, 0.0 }
  0xce   :  { %v629_v60 = vmax.f32 %v625_v56, 0.0  ;;  %v594_v61 = vpop.f32.mrf.mxu2 }
  0xcf   :  { %v595_v62 = vadd.f32 %v594_v61, %v576_v58 }
  0xd0   :  { %v943_v63 = vpack.c.bf16 %v629_v60, %v628_v59 }
  0xd1   :  { %v619_v1 = vmul.f32 %v960_v39, %v595_v62 }
  0xd2   :  { %944 = vst [vmem:[%s1227_s6] sm:$0xff] %v943_v63  }
  0xd3   :  { %v627_v2 = vadd.f32 %v961_v44, %v619_v1 }
  0xd5   :  { %v631_v4 = vmax.f32 %v627_v2, 0.0 }
  0xd7   :  { %v948_v5 = vpack.c.bf16 %v631_v4, %v630_v3 }
  0xd9   :  { %951 = vst [vmem:[%s1227_s6 + $0x8] sm:$0xff] %v948_v5  }

// kernel: resnet_forward.10
= control target key start
LH: loop header
LB: loop body
LE: loop exit
PB: predicated region body
PF: predicated region fallthrough
CT: control target
= control target key end

     0   :  { %s1516_s18 = smov 0   ;;  %s1518_s19 = smov 0   ;;  %s1665_s0 = inlined_call_operand.vmem [shape: bf16[32,1280], index: 0, kind: input, shape index: {}]   ;;  %s1666_s1 = inlined_call_operand.vmem [shape: bf16[1280,128], index: 1, kind: input, shape index: {}]   ;;  %s1667_s2 = inlined_call_operand.vmem [shape: f32[1,128], index: 2, kind: input, shape index: {}]   ;;  %s1668_s3 = inlined_call_operand.vmem [shape: f32[1,128], index: 3, kind: input, shape index: {}]   ;;  %s1669_s4 = inlined_call_operand.vmem [shape: bf16[32,128], index: 4, kind: input, shape index: {}]   ;;  %s1670_s5 = inlined_call_operand.vmem [shape: bf16[32,128], index: 5, kind: output, shape index: {}]  }
   0x1   :  { %s1520_s20 = smov 0   ;;  %s1522_s21 = smov 0  }
   0x2   :  { %s1524_s22 = smov 0  }
   0x3 LB: > { %s27_s23 = sadd.s32 1, %s1479_s21  ;;  %p50_p1 = scmp.ne.s32.totalorder %s1471_s19, %s1467_s18  ;;  %s1483_s22 = sphi %s1524_s22, %s15_s22   ;;  %s1479_s21 = sphi %s1522_s21, %s1674_s21   ;;  %s1475_s20 = sphi %s1520_s20, %s1673_s20   ;;  %s1471_s19 = sphi %s1518_s19, %s1672_s19   ;;  %s1467_s18 = sphi %s1516_s18, %s1671_s18  }
   0x4   : > { %p28_p0 = scmp.ge.s32.totalorder %s27_s23, 2  ;;  %p51_p2 = scmp.eq.s32.totalorder %s1483_s22, 0 }
   0x5   : > { %s43_s25 = sadd.s32 1, %s1471_s19  ;;  %p1103_p5 = scmp.ge.s32.totalorder %s1483_s22, 2 }
   0x6   : > { %s1676_s23 = smov (%p28_p0, %s27_s23), 0  ;;  %p52_p3 = por %p51_p2, %p50_p1 }
   0x7   : > { %s39_s24 = ssub.s32 %s1479_s21, %s1676_s23  ;;  %236 = sbr.rel (%p1103_p5) target bundleno = 29 (0x1d), region = 28 }
   0x8   : > { %p41_p4 = scmp.eq.s32.totalorder %s39_s24, 0 }
   0xa   : > { %s1551_s26 = scalar_select %p41_p4, %s1471_s19, %s43_s25  }
   0xc   : > { %239 = sbr.rel (!%p52_p3) target bundleno = 29 (0x1d), region = 32  ;;  %s241_s27 = sand.u32 (%p52_p3), 1, %s1471_s19  }
   0xd   : > { %s1321_s28 = smul.u32 (%p52_p3), 20, %s1479_s21 }
   0xe   : > { %s1400_s29 = smul.u32 (%p52_p3), 80, %s241_s27 }
   0xf   : > { %s249_s7 = scalar_lea.vmem (%p52_p3), %s1665_s0, %s1321_s28 }
  0x10   : > { %v264_v0 = vld [vmem:[%s249_s7] sm:$0xff] (%p52_p3)  ;;  %v266_v1 = vld [vmem:[%s249_s7 + $0x8] sm:$0xff] (%p52_p3)  ;;  %s243_s8 = scalar_lea.vmem (%p52_p3), [#allocation3], %s1400_s29  ;;  %v270_v3 = vld [vmem:[%s249_s7 + $0x30] sm:$0xff] (%p52_p3) }
  0x11   : > { %v268_v2 = vld [vmem:[%s249_s7 + $0x28] sm:$0xff]  ;;  %265 = vst [vmem:[%s243_s8] sm:$0xff] %v264_v0  ;;  %v272_v4 = vld [vmem:[%s249_s7 + $0x50] sm:$0xff]  ;;  %v274_v5 = vld [vmem:[%s249_s7 + $0x58] sm:$0xff] }
  0x12   : > { %267 = vst [vmem:[%s243_s8 + $0x8] sm:$0xff] %v266_v1  ;;  %v276_v6 = vld [vmem:[%s249_s7 + $0x78] sm:$0xff]  ;;  %v278_v7 = vld [vmem:[%s249_s7 + $0x80] sm:$0xff]  ;;  %v1105_v8 = vld [vmem:[%s249_s7 + $0x10] sm:$0xf] }
  0x13   : > { %269 = vst [vmem:[%s243_s8 + $0x14] sm:$0xff] %v268_v2  ;;  %v1107_v9 = vld [vmem:[%s249_s7 + $0x38] sm:$0xf]  ;;  %v1109_v10 = vld [vmem:[%s249_s7 + $0x60] sm:$0xf] }
  0x14   : > { %271 = vst [vmem:[%s243_s8 + $0x1c] sm:$0xff] %v270_v3  ;;  %v1111_v11 = vld [vmem:[%s249_s7 + $0x88] sm:$0xf] }
  0x15   : > { %273 = vst [vmem:[%s243_s8 + $0x28] sm:$0xff] %v272_v4 }
  0x16   : > { %275 = vst [vmem:[%s243_s8 + $0x30] sm:$0xff] %v274_v5 }
  0x17   : > { %277 = vst [vmem:[%s243_s8 + $0x3c] sm:$0xff] %v276_v6 }
  0x18   : > { %279 = vst [vmem:[%s243_s8 + $0x44] sm:$0xff] %v278_v7 }
  0x19   : > { %1106 = vst [vmem:[%s243_s8 + $0x10] sm:$0xf] %v1105_v8 }
  0x1a   : > { %1108 = vst [vmem:[%s243_s8 + $0x24] sm:$0xf] %v1107_v9 }
  0x1b   : > { %1110 = vst [vmem:[%s243_s8 + $0x38] sm:$0xf] %v1109_v10 }
  0x1c   : > { %1112 = vst [vmem:[%s243_s8 + $0x4c] sm:$0xf] %v1111_v11 }
  0x1d PF: > { %p1113_p6 = scmp.ge.s32.totalorder %s1483_s22, 1  ;;  %p312_p7 = scmp.lt.s32.totalorder %s1483_s22, 3 }
  0x1f   : > { %p313_p8 = pnand %p1113_p6, %p312_p7 }
  0x20   : > { %s319_s9 = sand.u32 (!%p313_p8), 1, %s1467_s18   ;;  %s373_s10 = smul.u32 (!%p313_p8), 80, %s1475_s20 }
  0x21   : > { %316 = sbr.rel (%p313_p8) target bundleno = 270 (0x10e), region = 62  ;;  %p1115_p10 = scmp.ne.s32.totalorder (!%p313_p8), %s1475_s20, 0 }
  0x22   : > { %s1401_s11 = smul.u32 (!%p313_p8), 80, %s319_s9  ;;  %p374_p9 = scmp.lt.s32.totalorder (!%p313_p8), %s373_s10, 159 }
  0x24   : > { %s1568_s16 = scalar_lea.vmem (!%p313_p8), [#allocation3], %s1401_s11 }
  0x26   : > { %s1678_s10 = smov (!%p374_p9, %s373_s10), 159  ;;  %409 = sbr.rel (%p1115_p10) target bundleno = 48 (0x30), region = 70 }
  0x27   : > { %s1114_s12 = sshll.u32 %s1678_s10, 2 }
  0x28   : > { %s1566_s15 = scalar_lea.vmem %s1666_s1, %s1114_s12 }
  0x2b   : > { %v1485_v12 = vmov 0.0  }
  0x2c   : > { %410 = vst [vmem:[#allocation2 + $0x10] sm:$0xff] %v1485_v12 }
  0x2d   : > { %411 = vst [vmem:[#allocation2] sm:$0xff] %v1485_v12 }
  0x2e   : > { %412 = vst [vmem:[#allocation2 + $0x18] sm:$0xff] %v1485_v12 }
  0x2f   : > { %413 = vst [vmem:[#allocation2 + $0x8] sm:$0xff] %v1485_v12 }
  0x30 PF: > { %v1339_v13 = vld [vmem:[%s1566_s15 + $0x38] sm:$0xff]  ;;  %v1338_v17 = vld [vmem:[%s1566_s15 + $0x30] sm:$0xff]  ;;  %v1337_v21 = vld [vmem:[%s1566_s15 + $0x28] sm:$0xff]  ;;  %p1316_p11 = scmp.ne.s32.totalorder %s1475_s20, 1 }
  0x31   : > { %v1347_v14 = vld [vmem:[%s1566_s15 + $0x78] sm:$0xff]  ;;  %802 = vmatpush.bf16.msra.mxu0 %v1339_v13  ;;  %v1346_v18 = vld [vmem:[%s1566_s15 + $0x70] sm:$0xff]  ;;  %v1345_v22 = vld [vmem:[%s1566_s15 + $0x68] sm:$0xff] }
  0x32   : > { %v1355_v15 = vld [vmem:[%s1566_s15 + $0xb8] sm:$0xff]  ;;  %821 = vmatpush.bf16.msra.mxu1 %v1347_v14  ;;  %v1354_v19 = vld [vmem:[%s1566_s15 + $0xb0] sm:$0xff]  ;;  %v1353_v23 = vld [vmem:[%s1566_s15 + $0xa8] sm:$0xff] }
  0x33   : > { %v1363_v16 = vld [vmem:[%s1566_s15 + $0xf8] sm:$0xff]  ;;  %840 = vmatpush.bf16.msra.mxu2 %v1355_v15  ;;  %v1362_v20 = vld [vmem:[%s1566_s15 + $0xf0] sm:$0xff]  ;;  %v1361_v24 = vld [vmem:[%s1566_s15 + $0xe8] sm:$0xff] }
  0x34   : > { %859 = vmatpush.bf16.msra.mxu3 %v1363_v16  ;;  %v1336_v25 = vld [vmem:[%s1566_s15 + $0x20] sm:$0xff]  ;;  %v1335_v29 = vld [vmem:[%s1566_s15 + $0x18] sm:$0xff]  ;;  %v1334_v33 = vld [vmem:[%s1566_s15 + $0x10] sm:$0xff] }
  0x35   : > { %803 = vmatpush.bf16.msra.mxu0 %v1338_v17  ;;  %v1344_v26 = vld [vmem:[%s1566_s15 + $0x60] sm:$0xff]  ;;  %v1343_v30 = vld [vmem:[%s1566_s15 + $0x58] sm:$0xff]  ;;  %v1342_v34 = vld [vmem:[%s1566_s15 + $0x50] sm:$0xff] }
  0x36   : > { %822 = vmatpush.bf16.msra.mxu1 %v1346_v18  ;;  %v1352_v27 = vld [vmem:[%s1566_s15 + $0xa0] sm:$0xff]  ;;  %v1351_v31 = vld [vmem:[%s1566_s15 + $0x98] sm:$0xff]  ;;  %v1350_v35 = vld [vmem:[%s1566_s15 + $0x90] sm:$0xff] }
  0x37   : > { %841 = vmatpush.bf16.msra.mxu2 %v1354_v19  ;;  %v1360_v28 = vld [vmem:[%s1566_s15 + $0xe0] sm:$0xff]  ;;  %v1359_v32 = vld [vmem:[%s1566_s15 + $0xd8] sm:$0xff]  ;;  %v1358_v36 = vld [vmem:[%s1566_s15 + $0xd0] sm:$0xff] }
  0x38   : > { %860 = vmatpush.bf16.msra.mxu3 %v1362_v20  ;;  %v1333_v37 = vld [vmem:[%s1566_s15 + $0x8] sm:$0xff]  ;;  %v1332_v41 = vld [vmem:[%s1566_s15] sm:$0xff]  ;;  %v1371_v53 = vld [vmem:[%s1566_s15 + $0x138] sm:$0xff] }
  0x39   : > { %804 = vmatpush.bf16.msra.mxu0 %v1337_v21  ;;  %v1341_v38 = vld [vmem:[%s1566_s15 + $0x48] sm:$0xff]  ;;  %v1340_v42 = vld [vmem:[%s1566_s15 + $0x40] sm:$0xff]  ;;  %v1370_v58 = vld [vmem:[%s1566_s15 + $0x130] sm:$0xff] }
  0x3a   : > { %823 = vmatpush.bf16.msra.mxu1 %v1345_v22  ;;  %v1349_v39 = vld [vmem:[%s1566_s15 + $0x88] sm:$0xff]  ;;  %v1348_v43 = vld [vmem:[%s1566_s15 + $0x80] sm:$0xff]  ;;  %v1367_v5 = vld [vmem:[%s1566_s15 + $0x118] sm:$0xff] }
  0x3b   : > { %842 = vmatpush.bf16.msra.mxu2 %v1353_v23  ;;  %v1357_v40 = vld [vmem:[%s1566_s15 + $0xc8] sm:$0xff]  ;;  %v1356_v44 = vld [vmem:[%s1566_s15 + $0xc0] sm:$0xff]  ;;  %v1366_v10 = vld [vmem:[%s1566_s15 + $0x110] sm:$0xff] }
  0x3c   : > { %861 = vmatpush.bf16.msra.mxu3 %v1361_v24  ;;  %v1118_v45 = vld [vmem:[%s1568_s16] sm:$0xf]  ;;  %v1324_v46 = vld [vmem:[%s1568_s16 + $0x10] sm:$0xf0]  ;;  %v1322_v47 = vld [vmem:[%s1568_s16 + $0x4] sm:$0xf] }
  0x3d   : > { %805 = vmatpush.bf16.msra.mxu0 %v1336_v25  ;;  %v1120_v48 = vld [vmem:[%s1568_s16 + $0x14] sm:$0xf0]  ;;  %v1126_v49 = vld [vmem:[%s1568_s16 + $0x8] sm:$0xf]  ;;  %v1325_v50 = vld [vmem:[%s1568_s16 + $0x18] sm:$0xf0]  ;;  %v1119_v54 = vor.u32 %v1324_v46, %v1118_v45 }
  0x3e   : > { %824 = vmatpush.bf16.msra.mxu1 %v1344_v26  ;;  %v1323_v51 = vld [vmem:[%s1568_s16 + $0xc] sm:$0xf]  ;;  %v1128_v52 = vld [vmem:[%s1568_s16 + $0x1c] sm:$0xf0]  ;;  %v1123_v55 = vor.u32 %v1322_v47, %v1120_v48  ;;  %v1127_v56 = vor.u32 %v1325_v50, %v1126_v49  ;;  %v1138_v61 = vld [vmem:[%s1568_s16 + $0x28] sm:$0xf] }
  0x3f   : > { %843 = vmatpush.bf16.msra.mxu2 %v1352_v27  ;;  %v1131_v57 = vor.u32 %v1323_v51, %v1128_v52  ;;  %v1369_v59 = vld [vmem:[%s1566_s15 + $0x128] sm:$0xff]  ;;  %v1368_v60 = vld [vmem:[%s1566_s15 + $0x120] sm:$0xff] }
  0x40   : > { %862 = vmatpush.bf16.msra.mxu3 %v1360_v28  ;;  %v1329_v62 = vld [vmem:[%s1568_s16 + $0x38] sm:$0xf0]  ;;  %v1327_v63 = vld [vmem:[%s1568_s16 + $0x2c] sm:$0xf]  ;;  %v1140_v0 = vld [vmem:[%s1568_s16 + $0x3c] sm:$0xf0] }
  0x41   : > { %806 = vmatpush.bf16.msra.mxu0 %v1335_v29  ;;  %v1146_v1 = vld [vmem:[%s1568_s16 + $0x30] sm:$0xf]  ;;  %v1330_v2 = vld [vmem:[%s1568_s16 + $0x40] sm:$0xf0]  ;;  %v1328_v3 = vld [vmem:[%s1568_s16 + $0x34] sm:$0xf]  ;;  %v1139_v6 = vor.u32 %v1329_v62, %v1138_v61  ;;  %v1143_v7 = vor.u32 %v1327_v63, %v1140_v0 }
  0x42   : > { %825 = vmatpush.bf16.msra.mxu1 %v1343_v30  ;;  %v1148_v4 = vld [vmem:[%s1568_s16 + $0x44] sm:$0xf0]  ;;  %v1147_v8 = vor.u32 %v1330_v2, %v1146_v1  ;;  %v1364_v12 = vld [vmem:[%s1566_s15 + $0x100] sm:$0xff]  ;;  %v1154_v15 = vld [vmem:[%s1568_s16 + $0x38] sm:$0xf] }
  0x43   : > { %844 = vmatpush.bf16.msra.mxu2 %v1351_v31  ;;  %v1151_v9 = vor.u32 %v1328_v3, %v1148_v4  ;;  %v1365_v11 = vld [vmem:[%s1566_s15 + $0x108] sm:$0xff]  ;;  %v1134_v13 = vld [vmem:[%s1568_s16 + $0x10] sm:$0xf]  ;;  %v1326_v14 = vld [vmem:[%s1568_s16 + $0x20] sm:$0xf0] }
  0x44   : > { %863 = vmatpush.bf16.msra.mxu3 %v1359_v32  ;;  %v1331_v16 = vld [vmem:[%s1568_s16 + $0x48] sm:$0xf0]  ;;  %v1135_v17 = vor.u32 %v1326_v14, %v1134_v13 }
  0x45   : > { %807 = vmatpush.bf16.msra.mxu0 %v1334_v33  ;;  %v1155_v18 = vor.u32 %v1331_v16, %v1154_v15 }
  0x46   : > { %826 = vmatpush.bf16.msra.mxu1 %v1342_v34 }
  0x47   : > { %845 = vmatpush.bf16.msra.mxu2 %v1350_v35 }
  0x48   : > { %864 = vmatpush.bf16.msra.mxu3 %v1358_v36 }
  0x49   : > { %808 = vmatpush.bf16.msra.mxu0 %v1333_v37 }
  0x4a   : > { %827 = vmatpush.bf16.msra.mxu1 %v1341_v38 }
  0x4b   : > { %846 = vmatpush.bf16.msra.mxu2 %v1349_v39 }
  0x4c   : > { %865 = vmatpush.bf16.msra.mxu3 %v1357_v40  ;;  %v414_v40 = vld [vmem:[#allocation2 + $0x10] sm:$0xff] }
  0x4d   : > { %809 = vmatpush.bf16.msra.mxu0 %v1332_v41 }
  0x4e   : > { %828 = vmatpush.bf16.msra.mxu1 %v1340_v42  ;;  %v416_v42 = vld [vmem:[#allocation2 + $0x18] sm:$0xff] }
  0x4f   : > { %847 = vmatpush.bf16.msra.mxu2 %v1348_v43 }
  0x50   : > { %866 = vmatpush.bf16.msra.mxu3 %v1356_v44  ;;  %810 = vmatmul.bf16.vlgmr.msra.gmra.mxu0 %v1119_v54 }
  0x51   : > { %878 = vmatpush.bf16.msrb.mxu0 %v1371_v53  ;;  %829 = vmatmul.bf16.vlgmr.msra.gmra.mxu1 %v1123_v55  ;;  %v415_v55 = vld [vmem:[#allocation2] sm:$0xff] }
  0x52   : > { %1392 = vmatpush.bf16.msrb.mxu1 %v1371_v53  ;;  %848 = vmatmul.bf16.vlgmr.msra.gmra.mxu2 %v1127_v56 }
  0x53   : > { %867 = vmatmul.bf16.vlgmr.msra.gmra.mxu3 %v1131_v57  ;;  %v417_v57 = vld [vmem:[#allocation2 + $0x8] sm:$0xff] }
  0x55   : > { %879 = vmatpush.bf16.msrb.mxu0 %v1370_v58 }
  0x56   : > { %1393 = vmatpush.bf16.msrb.mxu1 %v1370_v58 }
  0x59   : > { %880 = vmatpush.bf16.msrb.mxu0 %v1369_v59 }
  0x5a   : > { %1394 = vmatpush.bf16.msrb.mxu1 %v1369_v59 }
  0x5d   : > { %881 = vmatpush.bf16.msrb.mxu0 %v1368_v60 }
  0x5e   : > { %1395 = vmatpush.bf16.msrb.mxu1 %v1368_v60 }
  0x60   : > { %815 = vmatmul.bf16.gmra.mxu0 %v1139_v6 }
  0x61   : > { %882 = vmatpush.bf16.msrb.mxu0 %v1367_v5  ;;  %834 = vmatmul.bf16.gmra.mxu1 %v1143_v7 }
  0x62   : > { %1396 = vmatpush.bf16.msrb.mxu1 %v1367_v5  ;;  %853 = vmatmul.bf16.gmra.mxu2 %v1147_v8 }
  0x63   : > { %872 = vmatmul.bf16.gmra.mxu3 %v1151_v9 }
  0x65   : > { %883 = vmatpush.bf16.msrb.mxu0 %v1366_v10 }
  0x66   : > { %1397 = vmatpush.bf16.msrb.mxu1 %v1366_v10 }
  0x69   : > { %884 = vmatpush.bf16.msrb.mxu0 %v1365_v11 }
  0x6a   : > { %1398 = vmatpush.bf16.msrb.mxu1 %v1365_v11 }
  0x6d   : > { %885 = vmatpush.bf16.msrb.mxu0 %v1364_v12 }
  0x6e   : > { %1399 = vmatpush.bf16.msrb.mxu1 %v1364_v12 }
  0x70   : > { %886 = vmatmul.bf16.vlgmr.msrb.gmra.mxu0 %v1135_v17 }
  0x71   : > { %891 = vmatmul.bf16.vlgmr.msrb.gmra.mxu1 %v1155_v18 }
  0xcd   : > { %v811_v19 = vpop.f32.mrf.mxu0 }
  0xce   : > { %v830_v20 = vpop.f32.mrf.mxu1 }
  0xcf   : > { %v831_v32 = vadd.f32 %v830_v20, %v811_v19 }
  0xd5   : > { %v849_v21 = vpop.f32.mrf.mxu2  ;;  %v813_v23 = vpop.f32.mrf.mxu0 }
  0xd6   : > { %v868_v22 = vpop.f32.mrf.mxu3  ;;  %v832_v24 = vpop.f32.mrf.mxu1  ;;  %v850_v34 = vadd.f32 %v849_v21, %v831_v32 }
  0xd7   : > { %v833_v44 = vadd.f32 %v832_v24, %v813_v23 }
  0xd8   : > { %v869_v37 = vadd.f32 %v868_v22, %v850_v34 }
  0xdd   : > { %v851_v25 = vpop.f32.mrf.mxu2  ;;  %v816_v26 = vpop.f32.mrf.mxu0 }
  0xde   : > { %v835_v27 = vpop.f32.mrf.mxu1  ;;  %v870_v28 = vpop.f32.mrf.mxu3  ;;  %v852_v48 = vadd.f32 %v851_v25, %v833_v44 }
  0xdf   : > { %v836_v33 = vadd.f32 %v835_v27, %v816_v26 }
  0xe0   : > { %v871_v53 = vadd.f32 %v870_v28, %v852_v48 }
  0xe5   : > { %v854_v29 = vpop.f32.mrf.mxu2  ;;  %v818_v30 = vpop.f32.mrf.mxu0 }
  0xe6   : > { %v837_v31 = vpop.f32.mrf.mxu1  ;;  %v855_v35 = vadd.f32 %v854_v29, %v836_v33  ;;  %v873_v36 = vpop.f32.mrf.mxu3 }
  0xe7   : > { %v838_v45 = vadd.f32 %v837_v31, %v818_v30 }
  0xe8   : > { %v874_v38 = vadd.f32 %v873_v36, %v855_v35 }
  0xed   : > { %v856_v39 = vpop.f32.mrf.mxu2  ;;  %v887_v41 = vpop.f32.mrf.mxu0 }
  0xee   : > { %v892_v43 = vpop.f32.mrf.mxu1  ;;  %v888_v46 = vadd.f32 %v887_v41, %v869_v37  ;;  %v857_v49 = vadd.f32 %v856_v39, %v838_v45  ;;  %v875_v52 = vpop.f32.mrf.mxu3 }
  0xef   : > { %v893_v47 = vadd.f32 %v892_v43, %v874_v38 }
  0xf0   : > { %v897_v50 = vadd.f32 %v888_v46, %v414_v40  ;;  %v876_v54 = vadd.f32 %v875_v52, %v857_v49 }
  0xf1   : > { %v899_v51 = vadd.f32 %v893_v47, %v416_v42 }
  0xf2   : > { %901 = vst [vmem:[#allocation2 + $0x10] sm:$0xff] %v897_v50 }
  0xf3   : > { %903 = vst [vmem:[#allocation2 + $0x18] sm:$0xff] %v899_v51 }
  0xf5   : > { %v889_v56 = vpop.f32.mrf.mxu0 }
  0xf6   : > { %v894_v58 = vpop.f32.mrf.mxu1  ;;  %v890_v59 = vadd.f32 %v889_v56, %v871_v53 }
  0xf7   : > { %v895_v60 = vadd.f32 %v894_v58, %v876_v54  ;;  %908 = sbr.rel (%p1316_p11) target bundleno = 270 (0x10e), region = 74 }
  0xf8   : > { %v898_v61 = vadd.f32 %v890_v59, %v415_v55 }
  0xf9   : > { %v900_v62 = vadd.f32 %v895_v60, %v417_v57 }
  0xfa   : > { %902 = vst [vmem:[#allocation2] sm:$0xff] %v898_v61 }
  0xfb   : > { %904 = vst [vmem:[#allocation2 + $0x8] sm:$0xff] %v900_v62 }
  0xfc   : > { %v909_v63 = vld [vmem:[#allocation2 + $0x10] sm:$0xff]  ;;  %v1443_v1 = vld [vmem:[%s1667_s2] ss:$0 sm:$0xff]  ;;  %v911_v4 = vld [vmem:[#allocation2 + $0x18] sm:$0xff] }
  0xfd   : > { %v1444_v2 = vld [vmem:[%s1668_s3] ss:$0 sm:$0xff]  ;;  %v917_v6 = vmul.f32 %v1443_v1, %v909_v63  ;;  %v1390_v8 = vld [vmem:[%s1669_s4 + $0x8] sm:$0xff]   ;;  %v919_v9 = vmul.f32 %v1443_v1, %v911_v4 }
  0xfe   : > { %v1373_v3 = vld [vmem:[%s1669_s4] sm:$0xff]   ;;  %v1378_v17 = vunpack.c.l.bf16 %v1390_v8  ;;  %v1379_v18 = vunpack.c.h.bf16 %v1390_v8 }
  0xff   : > { %v925_v11 = vadd.f32 %v1444_v2, %v917_v6  ;;  %v1374_v13 = vunpack.c.l.bf16 %v1373_v3  ;;  %v1375_v14 = vunpack.c.h.bf16 %v1373_v3  ;;  %v927_v15 = vadd.f32 %v1444_v2, %v919_v9 }
 0x101   : > { %v910_v0 = vld [vmem:[#allocation2] sm:$0xff]  ;;  %v929_v19 = vmax.f32 %v925_v11, 0.0  ;;  %v931_v21 = vmax.f32 %v927_v15, 0.0 }
 0x102   : > { %v912_v5 = vld [vmem:[#allocation2 + $0x8] sm:$0xff]  ;;  %v918_v7 = vmul.f32 %v1443_v1, %v910_v0 }
 0x103   : > { %v920_v10 = vmul.f32 %v1443_v1, %v912_v5  ;;  %v941_v23 = vadd.f32 %v1374_v13, %v929_v19  ;;  %v943_v25 = vadd.f32 %v1378_v17, %v931_v21 }
 0x104   : > { %v926_v12 = vadd.f32 %v1444_v2, %v918_v7 }
 0x105   : > { %v928_v16 = vadd.f32 %v1444_v2, %v920_v10 }
 0x106   : > { %v930_v20 = vmax.f32 %v926_v12, 0.0 }
 0x107   : > { %v932_v22 = vmax.f32 %v928_v16, 0.0 }
 0x108   : > { %v942_v24 = vadd.f32 %v1375_v14, %v930_v20 }
 0x109   : > { %v944_v26 = vadd.f32 %v1379_v18, %v932_v22 }
 0x10a   : > { %v1383_v27 = vpack.c.bf16 %v942_v24, %v941_v23 }
 0x10b   : > { %v1388_v28 = vpack.c.bf16 %v944_v26, %v943_v25 }
 0x10c   : > { %1384 = vst [vmem:[%s1670_s5] sm:$0xff] %v1383_v27  }
 0x10d   : > { %1391 = vst [vmem:[%s1670_s5 + $0x8] sm:$0xff] %v1388_v28  }
 0x10e PF: > { %s15_s22 = sadd.s32 1, %s1483_s22   ;;  %s1671_s18 = smov %s1471_s19 }
 0x10f   : > { %p12_p12 = scmp.ge.s32.totalorder %s15_s22, 4   ;;  %s1672_s19 = smov %s1551_s26 }
 0x110   : > { %s1673_s20 = smov %s1479_s21  ;;  %s1674_s21 = smov %s1676_s23 }
 0x111   :  { %14 = sbr.rel (!%p12_p12) target bundleno = 3 (0x3), region = 127 }

// kernel: resnet_forward.11
= control target key start
LH: loop header
LB: loop body
LE: loop exit
PB: predicated region body
PF: predicated region fallthrough
CT: control target
= control target key end

     0   :  { %s2449_s24 = smov 0   ;;  %s2451_s25 = smov 0   ;;  %s2868_s0 = inlined_call_operand.vmem [shape: bf16[32,128], index: 0, kind: input, shape index: {}]   ;;  %s2869_s1 = inlined_call_operand.vmem [shape: bf16[32,1280], index: 1, kind: input, shape index: {}]   ;;  %s2870_s2 = inlined_call_operand.vmem [shape: bf16[1280,256], index: 2, kind: input, shape index: {}]   ;;  %s2871_s3 = inlined_call_operand.vmem [shape: bf16[128,256], index: 3, kind: input, shape index: {}]   ;;  %s2872_s4 = inlined_call_operand.vmem [shape: f32[1,256], index: 4, kind: input, shape index: {}]   ;;  %s2873_s5 = inlined_call_operand.vmem [shape: f32[1,256], index: 5, kind: input, shape index: {}]   ;;  %s2874_s6 = inlined_call_operand.vmem [shape: bf16[32,256], index: 6, kind: output, shape index: {0}]   ;;  %s2875_s7 = inlined_call_operand.vmem [shape: bf16[32,256], index: 7, kind: output, shape index: {1}]  }
   0x1   :  { %s2453_s26 = smov 0   ;;  %s2455_s27 = smov 0  }
   0x2   :  { %s2457_s28 = smov 0  }
   0x3 LB: > { %s30_s29 = sadd.s32 1, %s2402_s27  ;;  %p79_p1 = scmp.ne.s32.totalorder %s2394_s25, %s2390_s24  ;;  %s2406_s28 = sphi %s2457_s28, %s18_s28   ;;  %s2402_s27 = sphi %s2455_s27, %s2879_s27   ;;  %s2398_s26 = sphi %s2453_s26, %s2878_s26   ;;  %s2394_s25 = sphi %s2451_s25, %s2877_s25   ;;  %s2390_s24 = sphi %s2449_s24, %s2876_s24  }
   0x4   : > { %p31_p0 = scmp.ge.s32.totalorder %s30_s29, 2  ;;  %p80_p2 = scmp.eq.s32.totalorder %s2406_s28, 0 }
   0x5   : > { %s72_s8 = sadd.s32 1, %s2394_s25  ;;  %p1730_p5 = scmp.ge.s32.totalorder %s2406_s28, 2 }
   0x6   : > { %s2881_s29 = smov (%p31_p0, %s30_s29), 0  ;;  %p81_p3 = por %p80_p2, %p79_p1 }
   0x7   : > { %s68_s30 = ssub.s32 %s2402_s27, %s2881_s29  ;;  %301 = sbr.rel (%p1730_p5) target bundleno = 29 (0x1d), region = 32 }
   0x8   : > { %p70_p4 = scmp.eq.s32.totalorder %s68_s30, 0 }
   0xa   : > { %s2484_s9 = scalar_select %p70_p4, %s2394_s25, %s72_s8  }
   0xc   : > { %304 = sbr.rel (!%p81_p3) target bundleno = 29 (0x1d), region = 36  ;;  %s306_s10 = sand.u32 (%p81_p3), 1, %s2394_s25  }
   0xd   : > { %s2183_s11 = smul.u32 (%p81_p3), 20, %s2402_s27 }
   0xe   : > { %s2325_s12 = smul.u32 (%p81_p3), 80, %s306_s10 }
   0xf   : > { %s314_s15 = scalar_lea.vmem (%p81_p3), %s2869_s1, %s2183_s11 }
  0x10   : > { %v329_v0 = vld [vmem:[%s314_s15] sm:$0xff] (%p81_p3)  ;;  %v331_v1 = vld [vmem:[%s314_s15 + $0x8] sm:$0xff] (%p81_p3)  ;;  %s308_s16 = scalar_lea.vmem (%p81_p3), [#allocation3], %s2325_s12  ;;  %v335_v3 = vld [vmem:[%s314_s15 + $0x30] sm:$0xff] (%p81_p3) }
  0x11   : > { %v333_v2 = vld [vmem:[%s314_s15 + $0x28] sm:$0xff]  ;;  %330 = vst [vmem:[%s308_s16] sm:$0xff] %v329_v0  ;;  %v337_v4 = vld [vmem:[%s314_s15 + $0x50] sm:$0xff]  ;;  %v339_v5 = vld [vmem:[%s314_s15 + $0x58] sm:$0xff] }
  0x12   : > { %332 = vst [vmem:[%s308_s16 + $0x8] sm:$0xff] %v331_v1  ;;  %v341_v6 = vld [vmem:[%s314_s15 + $0x78] sm:$0xff]  ;;  %v343_v7 = vld [vmem:[%s314_s15 + $0x80] sm:$0xff]  ;;  %v1732_v8 = vld [vmem:[%s314_s15 + $0x10] sm:$0xf] }
  0x13   : > { %334 = vst [vmem:[%s308_s16 + $0x14] sm:$0xff] %v333_v2  ;;  %v1734_v9 = vld [vmem:[%s314_s15 + $0x38] sm:$0xf]  ;;  %v1736_v10 = vld [vmem:[%s314_s15 + $0x60] sm:$0xf] }
  0x14   : > { %336 = vst [vmem:[%s308_s16 + $0x1c] sm:$0xff] %v335_v3  ;;  %v1738_v11 = vld [vmem:[%s314_s15 + $0x88] sm:$0xf] }
  0x15   : > { %338 = vst [vmem:[%s308_s16 + $0x28] sm:$0xff] %v337_v4 }
  0x16   : > { %340 = vst [vmem:[%s308_s16 + $0x30] sm:$0xff] %v339_v5 }
  0x17   : > { %342 = vst [vmem:[%s308_s16 + $0x3c] sm:$0xff] %v341_v6 }
  0x18   : > { %344 = vst [vmem:[%s308_s16 + $0x44] sm:$0xff] %v343_v7 }
  0x19   : > { %1733 = vst [vmem:[%s308_s16 + $0x10] sm:$0xf] %v1732_v8 }
  0x1a   : > { %1735 = vst [vmem:[%s308_s16 + $0x24] sm:$0xf] %v1734_v9 }
  0x1b   : > { %1737 = vst [vmem:[%s308_s16 + $0x38] sm:$0xf] %v1736_v10 }
  0x1c   : > { %1739 = vst [vmem:[%s308_s16 + $0x4c] sm:$0xf] %v1738_v11 }
  0x1d PF: > { %p1740_p6 = scmp.ge.s32.totalorder %s2406_s28, 1  ;;  %p380_p7 = scmp.lt.s32.totalorder %s2406_s28, 3 }
  0x1f   : > { %p381_p8 = pnand %p1740_p6, %p380_p7 }
  0x20   : > { %s387_s17 = sand.u32 (!%p381_p8), 1, %s2390_s24   ;;  %s469_s18 = smul.u32 (!%p381_p8), 80, %s2398_s26 }
  0x21   : > { %384 = sbr.rel (%p381_p8) target bundleno = 484 (0x1e4), region = 66  ;;  %p1743_p10 = scmp.ne.s32.totalorder (!%p381_p8), %s2398_s26, 0 }
  0x22   : > { %s2326_s19 = smul.u32 (!%p381_p8), 80, %s387_s17  ;;  %p471_p9 = scmp.lt.s32.totalorder (!%p381_p8), %s469_s18, 159 }
  0x24   : > { %s2501_s30 = scalar_lea.vmem (!%p381_p8), [#allocation3], %s2326_s19 }
  0x26   : > { %s2883_s18 = smov (!%p471_p9, %s469_s18), 159  ;;  %524 = sbr.rel (%p1743_p10) target bundleno = 221 (0xdd), region = 74 }
  0x27   : > { %s2184_s20 = sshll.u32 %s2883_s18, 3 }
  0x28   : > { %s2499_s23 = scalar_lea.vmem %s2870_s2, %s2184_s20 }
  0x2b   : > { %v1810_v12 = vld [vmem:[%s2871_s3 + $0x70] sm:$0xf]  ;;  %v2202_v13 = vld [vmem:[%s2871_s3 + $0x74] sm:$0xf0]  ;;  %v2408_v14 = vmov 0.0   ;;  %v2185_v61 = vld [vmem:[%s2868_s0] sm:$0xff] }
  0x2c   : > { %525 = vst [vmem:[#allocation2 + $0x30] sm:$0xff] %v2408_v14  ;;  %v1811_v15 = vor.u32 %v2202_v13, %v1810_v12  ;;  %v2201_v16 = vld [vmem:[%s2871_s3 + $0x74] sm:$0xf]  ;;  %v1812_v17 = vld [vmem:[%s2871_s3 + $0x78] sm:$0xf0]  ;;  %v2186_v62 = vld [vmem:[%s2868_s0 + $0x8] sm:$0xff] }
  0x2d   : > { %526 = vst [vmem:[#allocation2] sm:$0xff] %v2408_v14  ;;  %v1815_v18 = vor.u32 %v2201_v16, %v1812_v17  ;;  %v1802_v19 = vld [vmem:[%s2871_s3 + $0x60] sm:$0xf]  ;;  %v2200_v20 = vld [vmem:[%s2871_s3 + $0x64] sm:$0xf0] }
  0x2e   : > { %527 = vst [vmem:[#allocation2 + $0x18] sm:$0xff] %v2408_v14  ;;  %645 = vmatpush.bf16.msra.mxu0 %v1811_v15  ;;  %2293 = vmatpush.bf16.msra.mxu2 %v1811_v15  ;;  %v1803_v21 = vor.u32 %v2200_v20, %v1802_v19  ;;  %v2199_v22 = vld [vmem:[%s2871_s3 + $0x64] sm:$0xf]  ;;  %v1804_v23 = vld [vmem:[%s2871_s3 + $0x68] sm:$0xf0] }
  0x2f   : > { %528 = vst [vmem:[#allocation2 + $0x10] sm:$0xff] %v2408_v14  ;;  %664 = vmatpush.bf16.msra.mxu1 %v1815_v18  ;;  %2301 = vmatpush.bf16.msra.mxu3 %v1815_v18  ;;  %v1807_v24 = vor.u32 %v2199_v22, %v1804_v23  ;;  %v1794_v25 = vld [vmem:[%s2871_s3 + $0x50] sm:$0xf]  ;;  %v2198_v26 = vld [vmem:[%s2871_s3 + $0x54] sm:$0xf0] }
  0x30   : > { %529 = vst [vmem:[#allocation2 + $0x8] sm:$0xff] %v2408_v14  ;;  %v2197_v27 = vld [vmem:[%s2871_s3 + $0x54] sm:$0xf]  ;;  %v1796_v28 = vld [vmem:[%s2871_s3 + $0x58] sm:$0xf0]  ;;  %v1795_v29 = vor.u32 %v2198_v26, %v1794_v25 }
  0x31   : > { %530 = vst [vmem:[#allocation2 + $0x20] sm:$0xff] %v2408_v14  ;;  %v1799_v30 = vor.u32 %v2197_v27, %v1796_v28  ;;  %v1786_v31 = vld [vmem:[%s2871_s3 + $0x40] sm:$0xf]  ;;  %v2196_v32 = vld [vmem:[%s2871_s3 + $0x44] sm:$0xf0] }
  0x32   : > { %531 = vst [vmem:[#allocation2 + $0x28] sm:$0xff] %v2408_v14  ;;  %646 = vmatpush.bf16.msra.mxu0 %v1803_v21  ;;  %2294 = vmatpush.bf16.msra.mxu2 %v1803_v21  ;;  %v2195_v33 = vld [vmem:[%s2871_s3 + $0x44] sm:$0xf]  ;;  %v1788_v34 = vld [vmem:[%s2871_s3 + $0x48] sm:$0xf0]  ;;  %v1787_v35 = vor.u32 %v2196_v32, %v1786_v31 }
  0x33   : > { %532 = vst [vmem:[#allocation2 + $0x38] sm:$0xff] %v2408_v14  ;;  %665 = vmatpush.bf16.msra.mxu1 %v1807_v24  ;;  %2302 = vmatpush.bf16.msra.mxu3 %v1807_v24  ;;  %v1791_v36 = vor.u32 %v2195_v33, %v1788_v34  ;;  %v1778_v37 = vld [vmem:[%s2871_s3 + $0x30] sm:$0xf]  ;;  %v2194_v38 = vld [vmem:[%s2871_s3 + $0x34] sm:$0xf0] }
  0x34   : > { %v2193_v39 = vld [vmem:[%s2871_s3 + $0x34] sm:$0xf]  ;;  %v1780_v40 = vld [vmem:[%s2871_s3 + $0x38] sm:$0xf0]  ;;  %v1779_v41 = vor.u32 %v2194_v38, %v1778_v37  ;;  %v1770_v43 = vld [vmem:[%s2871_s3 + $0x20] sm:$0xf] }
  0x35   : > { %v1783_v42 = vor.u32 %v2193_v39, %v1780_v40  ;;  %v2192_v44 = vld [vmem:[%s2871_s3 + $0x24] sm:$0xf0]  ;;  %v2191_v45 = vld [vmem:[%s2871_s3 + $0x24] sm:$0xf]  ;;  %v1772_v46 = vld [vmem:[%s2871_s3 + $0x28] sm:$0xf0] }
  0x36   : > { %647 = vmatpush.bf16.msra.mxu0 %v1795_v29  ;;  %2295 = vmatpush.bf16.msra.mxu2 %v1795_v29  ;;  %v1771_v47 = vor.u32 %v2192_v44, %v1770_v43  ;;  %v1775_v48 = vor.u32 %v2191_v45, %v1772_v46  ;;  %v1762_v49 = vld [vmem:[%s2871_s3 + $0x10] sm:$0xf]  ;;  %v2190_v50 = vld [vmem:[%s2871_s3 + $0x14] sm:$0xf0]  ;;  %v2189_v51 = vld [vmem:[%s2871_s3 + $0x14] sm:$0xf] }
  0x37   : > { %666 = vmatpush.bf16.msra.mxu1 %v1799_v30  ;;  %2303 = vmatpush.bf16.msra.mxu3 %v1799_v30  ;;  %v1764_v52 = vld [vmem:[%s2871_s3 + $0x18] sm:$0xf0]  ;;  %v1763_v53 = vor.u32 %v2190_v50, %v1762_v49  ;;  %v1754_v55 = vld [vmem:[%s2871_s3] sm:$0xf]  ;;  %v2188_v56 = vld [vmem:[%s2871_s3 + $0x4] sm:$0xf0] }
  0x38   : > { %v1767_v54 = vor.u32 %v2189_v51, %v1764_v52  ;;  %v2187_v57 = vld [vmem:[%s2871_s3 + $0x4] sm:$0xf]  ;;  %v1756_v58 = vld [vmem:[%s2871_s3 + $0x8] sm:$0xf0]  ;;  %v1755_v59 = vor.u32 %v2188_v56, %v1754_v55 }
  0x39   : > { %v1759_v60 = vor.u32 %v2187_v57, %v1756_v58 }
  0x3a   : > { %648 = vmatpush.bf16.msra.mxu0 %v1787_v35  ;;  %2296 = vmatpush.bf16.msra.mxu2 %v1787_v35 }
  0x3b   : > { %667 = vmatpush.bf16.msra.mxu1 %v1791_v36  ;;  %2304 = vmatpush.bf16.msra.mxu3 %v1791_v36 }
  0x3e   : > { %649 = vmatpush.bf16.msra.mxu0 %v1779_v41  ;;  %2297 = vmatpush.bf16.msra.mxu2 %v1779_v41 }
  0x3f   : > { %668 = vmatpush.bf16.msra.mxu1 %v1783_v42  ;;  %2305 = vmatpush.bf16.msra.mxu3 %v1783_v42 }
  0x42   : > { %650 = vmatpush.bf16.msra.mxu0 %v1771_v47  ;;  %2298 = vmatpush.bf16.msra.mxu2 %v1771_v47 }
  0x43   : > { %669 = vmatpush.bf16.msra.mxu1 %v1775_v48  ;;  %2306 = vmatpush.bf16.msra.mxu3 %v1775_v48 }
  0x46   : > { %651 = vmatpush.bf16.msra.mxu0 %v1763_v53  ;;  %2299 = vmatpush.bf16.msra.mxu2 %v1763_v53 }
  0x47   : > { %670 = vmatpush.bf16.msra.mxu1 %v1767_v54  ;;  %2307 = vmatpush.bf16.msra.mxu3 %v1767_v54 }
  0x4a   : > { %652 = vmatpush.bf16.msra.mxu0 %v1755_v59  ;;  %2300 = vmatpush.bf16.msra.mxu2 %v1755_v59 }
  0x4b   : > { %671 = vmatpush.bf16.msra.mxu1 %v1759_v60  ;;  %2308 = vmatpush.bf16.msra.mxu3 %v1759_v60 }
  0x4d   : > { %653 = vmatmul.bf16.vlgmr.msra.gmra.mxu0 %v2185_v61  ;;  %658 = vmatmul.bf16.vlgmr.msra.gmra.mxu2 %v2186_v62 }
  0x4e   : > { %672 = vmatmul.bf16.vlgmr.msra.gmra.mxu1 %v2185_v61  ;;  %677 = vmatmul.bf16.vlgmr.msra.gmra.mxu3 %v2186_v62 }
  0xca   : > { %v654_v63 = vpop.f32.mrf.mxu0 }
  0xcb   : > { %v673_v0 = vpop.f32.mrf.mxu1 }
  0xcc   : > { %v683_v1 = vpack.c.bf16 %v673_v0, %v654_v63 }
  0xce   : > { %687 = vst [vmem:[%s2875_s7] sm:$0xff] %v683_v1 }
  0xd0   : > { %v659_v2 = vpop.f32.mrf.mxu2 }
  0xd1   : > { %v678_v3 = vpop.f32.mrf.mxu3 }
  0xd2   : > { %v685_v4 = vpack.c.bf16 %v678_v3, %v659_v2  ;;  %v656_v5 = vpop.f32.mrf.mxu0 }
  0xd3   : > { %v675_v6 = vpop.f32.mrf.mxu1 }
  0xd4   : > { %689 = vst [vmem:[%s2875_s7 + $0x10] sm:$0xff] %v685_v4  ;;  %v684_v7 = vpack.c.bf16 %v675_v6, %v656_v5 }
  0xd6   : > { %688 = vst [vmem:[%s2875_s7 + $0x8] sm:$0xff] %v684_v7 }
  0xd8   : > { %v661_v8 = vpop.f32.mrf.mxu2 }
  0xd9   : > { %v680_v9 = vpop.f32.mrf.mxu3 }
  0xda   : > { %v686_v10 = vpack.c.bf16 %v680_v9, %v661_v8 }
  0xdc   : > { %690 = vst [vmem:[%s2875_s7 + $0x18] sm:$0xff] %v686_v10 }
  0xdd PF: > { %v1914_v11 = vld [vmem:[%s2499_s23 + $0x70] sm:$0xf]  ;;  %v2228_v12 = vld [vmem:[%s2499_s23 + $0x74] sm:$0xf0]  ;;  %v1906_v22 = vld [vmem:[%s2499_s23 + $0x60] sm:$0xf] }
  0xde   : > { %v1978_v13 = vld [vmem:[%s2499_s23 + $0xf0] sm:$0xf]  ;;  %v1915_v14 = vor.u32 %v2228_v12, %v1914_v11  ;;  %v2244_v15 = vld [vmem:[%s2499_s23 + $0xf4] sm:$0xf0]  ;;  %v2226_v24 = vld [vmem:[%s2499_s23 + $0x64] sm:$0xf0] }
  0xdf   : > { %v2042_v16 = vld [vmem:[%s2499_s23 + $0x170] sm:$0xf]  ;;  %v2260_v17 = vld [vmem:[%s2499_s23 + $0x174] sm:$0xf0]  ;;  %v1979_v18 = vor.u32 %v2244_v15, %v1978_v13  ;;  %v1970_v25 = vld [vmem:[%s2499_s23 + $0xe0] sm:$0xf]  ;;  %v1907_v27 = vor.u32 %v2226_v24, %v1906_v22 }
  0xe0   : > { %v2043_v19 = vor.u32 %v2260_v17, %v2042_v16  ;;  %v2106_v20 = vld [vmem:[%s2499_s23 + $0x1f0] sm:$0xf]  ;;  %v2276_v21 = vld [vmem:[%s2499_s23 + $0x1f4] sm:$0xf0]  ;;  %1243 = vmatpush.bf16.msra.mxu0 %v1915_v14  ;;  %v2242_v26 = vld [vmem:[%s2499_s23 + $0xe4] sm:$0xf0] }
  0xe1   : > { %v2107_v23 = vor.u32 %v2276_v21, %v2106_v20  ;;  %1262 = vmatpush.bf16.msra.mxu1 %v1979_v18  ;;  %v1971_v28 = vor.u32 %v2242_v26, %v1970_v25  ;;  %v2034_v29 = vld [vmem:[%s2499_s23 + $0x160] sm:$0xf]  ;;  %v2258_v30 = vld [vmem:[%s2499_s23 + $0x164] sm:$0xf0]  ;;  %v1898_v34 = vld [vmem:[%s2499_s23 + $0x50] sm:$0xf] }
  0xe2   : > { %1281 = vmatpush.bf16.msra.mxu2 %v2043_v19  ;;  %v2098_v31 = vld [vmem:[%s2499_s23 + $0x1e0] sm:$0xf]  ;;  %v2035_v32 = vor.u32 %v2258_v30, %v2034_v29  ;;  %v2274_v33 = vld [vmem:[%s2499_s23 + $0x1e4] sm:$0xf0]  ;;  %v2224_v35 = vld [vmem:[%s2499_s23 + $0x54] sm:$0xf0] }
  0xe3   : > { %1300 = vmatpush.bf16.msra.mxu3 %v2107_v23  ;;  %v2099_v36 = vor.u32 %v2274_v33, %v2098_v31  ;;  %v1962_v37 = vld [vmem:[%s2499_s23 + $0xd0] sm:$0xf]  ;;  %v2240_v38 = vld [vmem:[%s2499_s23 + $0xd4] sm:$0xf0]  ;;  %v1899_v40 = vor.u32 %v2224_v35, %v1898_v34  ;;  %v1890_v46 = vld [vmem:[%s2499_s23 + $0x40] sm:$0xf] }
  0xe4   : > { %v2026_v39 = vld [vmem:[%s2499_s23 + $0x150] sm:$0xf]  ;;  %1244 = vmatpush.bf16.msra.mxu0 %v1907_v27  ;;  %v2256_v41 = vld [vmem:[%s2499_s23 + $0x154] sm:$0xf0]  ;;  %v1963_v44 = vor.u32 %v2240_v38, %v1962_v37  ;;  %v2222_v47 = vld [vmem:[%s2499_s23 + $0x44] sm:$0xf0] }
  0xe5   : > { %v2090_v42 = vld [vmem:[%s2499_s23 + $0x1d0] sm:$0xf]  ;;  %v2272_v43 = vld [vmem:[%s2499_s23 + $0x1d4] sm:$0xf0]  ;;  %1263 = vmatpush.bf16.msra.mxu1 %v1971_v28  ;;  %v2027_v45 = vor.u32 %v2256_v41, %v2026_v39  ;;  %v1954_v48 = vld [vmem:[%s2499_s23 + $0xc0] sm:$0xf]  ;;  %v1891_v55 = vor.u32 %v2222_v47, %v1890_v46 }
  0xe6   : > { %1282 = vmatpush.bf16.msra.mxu2 %v2035_v32  ;;  %v2091_v49 = vor.u32 %v2272_v43, %v2090_v42  ;;  %v2238_v50 = vld [vmem:[%s2499_s23 + $0xc4] sm:$0xf0]  ;;  %v2018_v51 = vld [vmem:[%s2499_s23 + $0x140] sm:$0xf]  ;;  %v1882_v58 = vld [vmem:[%s2499_s23 + $0x30] sm:$0xf] }
  0xe7   : > { %1301 = vmatpush.bf16.msra.mxu3 %v2099_v36  ;;  %v2254_v52 = vld [vmem:[%s2499_s23 + $0x144] sm:$0xf0]  ;;  %v2082_v53 = vld [vmem:[%s2499_s23 + $0x1c0] sm:$0xf]  ;;  %v1955_v56 = vor.u32 %v2238_v50, %v1954_v48  ;;  %v2220_v59 = vld [vmem:[%s2499_s23 + $0x34] sm:$0xf0] }
  0xe8   : > { %v2270_v54 = vld [vmem:[%s2499_s23 + $0x1c4] sm:$0xf0]  ;;  %1245 = vmatpush.bf16.msra.mxu0 %v1899_v40  ;;  %v2019_v57 = vor.u32 %v2254_v52, %v2018_v51  ;;  %v1946_v60 = vld [vmem:[%s2499_s23 + $0xb0] sm:$0xf]  ;;  %v2236_v62 = vld [vmem:[%s2499_s23 + $0xb4] sm:$0xf0]  ;;  %v1883_v3 = vor.u32 %v2220_v59, %v1882_v58 }
  0xe9   : > { %1264 = vmatpush.bf16.msra.mxu1 %v1963_v44  ;;  %v2083_v61 = vor.u32 %v2270_v54, %v2082_v53  ;;  %v2010_v63 = vld [vmem:[%s2499_s23 + $0x130] sm:$0xf]  ;;  %v2252_v0 = vld [vmem:[%s2499_s23 + $0x134] sm:$0xf0]  ;;  %v1947_v4 = vor.u32 %v2236_v62, %v1946_v60  ;;  %v1874_v6 = vld [vmem:[%s2499_s23 + $0x20] sm:$0xf] }
  0xea   : > { %1283 = vmatpush.bf16.msra.mxu2 %v2027_v45  ;;  %v2074_v1 = vld [vmem:[%s2499_s23 + $0x1b0] sm:$0xf]  ;;  %v2268_v2 = vld [vmem:[%s2499_s23 + $0x1b4] sm:$0xf0]  ;;  %v2011_v5 = vor.u32 %v2252_v0, %v2010_v63  ;;  %v2218_v7 = vld [vmem:[%s2499_s23 + $0x24] sm:$0xf0] }
  0xeb   : > { %1302 = vmatpush.bf16.msra.mxu3 %v2091_v49  ;;  %v1938_v8 = vld [vmem:[%s2499_s23 + $0xa0] sm:$0xf]  ;;  %v2075_v9 = vor.u32 %v2268_v2, %v2074_v1  ;;  %v2234_v10 = vld [vmem:[%s2499_s23 + $0xa4] sm:$0xf0]  ;;  %v1875_v15 = vor.u32 %v2218_v7, %v1874_v6  ;;  %v1866_v18 = vld [vmem:[%s2499_s23 + $0x10] sm:$0xf] }
  0xec   : > { %1246 = vmatpush.bf16.msra.mxu0 %v1891_v55  ;;  %v2002_v11 = vld [vmem:[%s2499_s23 + $0x120] sm:$0xf]  ;;  %v2250_v12 = vld [vmem:[%s2499_s23 + $0x124] sm:$0xf0]  ;;  %v1939_v16 = vor.u32 %v2234_v10, %v1938_v8  ;;  %v2216_v19 = vld [vmem:[%s2499_s23 + $0x14] sm:$0xf0] }
  0xed   : > { %1265 = vmatpush.bf16.msra.mxu1 %v1955_v56  ;;  %v2066_v13 = vld [vmem:[%s2499_s23 + $0x1a0] sm:$0xf]  ;;  %v2266_v14 = vld [vmem:[%s2499_s23 + $0x1a4] sm:$0xf0]  ;;  %v2003_v17 = vor.u32 %v2250_v12, %v2002_v11  ;;  %v1930_v20 = vld [vmem:[%s2499_s23 + $0x90] sm:$0xf]  ;;  %v1867_v28 = vor.u32 %v2216_v19, %v1866_v18 }
  0xee   : > { %1284 = vmatpush.bf16.msra.mxu2 %v2019_v57  ;;  %v2067_v21 = vor.u32 %v2266_v14, %v2066_v13  ;;  %v2232_v22 = vld [vmem:[%s2499_s23 + $0x94] sm:$0xf0]  ;;  %v1994_v23 = vld [vmem:[%s2499_s23 + $0x110] sm:$0xf]  ;;  %v1858_v27 = vld [vmem:[%s2499_s23] sm:$0xf] }
  0xef   : > { %1303 = vmatpush.bf16.msra.mxu3 %v2083_v61  ;;  %v2248_v24 = vld [vmem:[%s2499_s23 + $0x114] sm:$0xf0]  ;;  %v2058_v25 = vld [vmem:[%s2499_s23 + $0x190] sm:$0xf]  ;;  %v2214_v29 = vld [vmem:[%s2499_s23 + $0x4] sm:$0xf0]  ;;  %v1931_v32 = vor.u32 %v2232_v22, %v1930_v20 }
  0xf0   : > { %1247 = vmatpush.bf16.msra.mxu0 %v1883_v3  ;;  %v2264_v26 = vld [vmem:[%s2499_s23 + $0x194] sm:$0xf0]  ;;  %v1922_v30 = vld [vmem:[%s2499_s23 + $0x80] sm:$0xf]  ;;  %v2230_v31 = vld [vmem:[%s2499_s23 + $0x84] sm:$0xf0]  ;;  %v1995_v33 = vor.u32 %v2248_v24, %v1994_v23  ;;  %v1859_v45 = vor.u32 %v2214_v29, %v1858_v27 }
  0xf1   : > { %1266 = vmatpush.bf16.msra.mxu1 %v1947_v4  ;;  %v1986_v34 = vld [vmem:[%s2499_s23 + $0x100] sm:$0xf]  ;;  %v2246_v35 = vld [vmem:[%s2499_s23 + $0x104] sm:$0xf0]  ;;  %v2059_v37 = vor.u32 %v2264_v26, %v2058_v25  ;;  %v2205_v40 = vld [vmem:[%s2501_s30 + $0x10] sm:$0xf0]  ;;  %v1923_v49 = vor.u32 %v2230_v31, %v1922_v30 }
  0xf2   : > { %1285 = vmatpush.bf16.msra.mxu2 %v2011_v5  ;;  %v2050_v36 = vld [vmem:[%s2499_s23 + $0x180] sm:$0xf]  ;;  %v2262_v38 = vld [vmem:[%s2499_s23 + $0x184] sm:$0xf0]  ;;  %v2203_v41 = vld [vmem:[%s2501_s30 + $0x4] sm:$0xf]  ;;  %v1987_v50 = vor.u32 %v2246_v35, %v1986_v34 }
  0xf3   : > { %1304 = vmatpush.bf16.msra.mxu3 %v2075_v9  ;;  %v1818_v39 = vld [vmem:[%s2501_s30] sm:$0xf]  ;;  %v1820_v42 = vld [vmem:[%s2501_s30 + $0x14] sm:$0xf0]  ;;  %v2243_v43 = vld [vmem:[%s2499_s23 + $0xf4] sm:$0xf]  ;;  %v2051_v54 = vor.u32 %v2262_v38, %v2050_v36 }
  0xf4   : > { %1248 = vmatpush.bf16.msra.mxu0 %v1875_v15  ;;  %v1980_v44 = vld [vmem:[%s2499_s23 + $0xf8] sm:$0xf0]  ;;  %v1826_v46 = vld [vmem:[%s2501_s30 + $0x8] sm:$0xf]  ;;  %v2227_v47 = vld [vmem:[%s2499_s23 + $0x74] sm:$0xf]  ;;  %v2697_v59 = vor.u32 %v2205_v40, %v1818_v39  ;;  %v2702_v0 = vor.u32 %v2203_v41, %v1820_v42 }
  0xf5   : > { %1267 = vmatpush.bf16.msra.mxu1 %v1939_v16  ;;  %v1916_v48 = vld [vmem:[%s2499_s23 + $0x78] sm:$0xf0]  ;;  %v1828_v53 = vld [vmem:[%s2501_s30 + $0x1c] sm:$0xf0]  ;;  %v1983_v55 = vor.u32 %v2243_v43, %v1980_v44  ;;  %v2292_v57 = vld [vmem:[%s2499_s23 + $0x274] sm:$0xf0] }
  0xf6   : > { %1286 = vmatpush.bf16.msra.mxu2 %v2003_v17  ;;  %v2206_v51 = vld [vmem:[%s2501_s30 + $0x18] sm:$0xf0]  ;;  %v2204_v52 = vld [vmem:[%s2501_s30 + $0xc] sm:$0xf]  ;;  %v2170_v56 = vld [vmem:[%s2499_s23 + $0x270] sm:$0xf]  ;;  %v1919_v60 = vor.u32 %v2227_v47, %v1916_v48 }
  0xf7   : > { %1305 = vmatpush.bf16.msra.mxu3 %v2067_v21  ;;  %v2259_v58 = vld [vmem:[%s2499_s23 + $0x174] sm:$0xf]  ;;  %v2044_v61 = vld [vmem:[%s2499_s23 + $0x178] sm:$0xf0]  ;;  %v2241_v62 = vld [vmem:[%s2499_s23 + $0xe4] sm:$0xf]  ;;  %v2704_v1 = vor.u32 %v2206_v51, %v1826_v46  ;;  %v2708_v4 = vor.u32 %v2204_v52, %v1828_v53  ;;  %v2171_v5 = vor.u32 %v2292_v57, %v2170_v56 }
  0xf8   : > { %1249 = vmatpush.bf16.msra.mxu0 %v1867_v28  ;;  %v1972_v63 = vld [vmem:[%s2499_s23 + $0xe8] sm:$0xf0]  ;;  %v2225_v2 = vld [vmem:[%s2499_s23 + $0x64] sm:$0xf]  ;;  %v2047_v6 = vor.u32 %v2259_v58, %v2044_v61  ;;  %v2162_v8 = vld [vmem:[%s2499_s23 + $0x260] sm:$0xf] }
  0xf9   : > { %1268 = vmatpush.bf16.msra.mxu1 %v1931_v32  ;;  %v1908_v3 = vld [vmem:[%s2499_s23 + $0x68] sm:$0xf0]  ;;  %v1975_v7 = vor.u32 %v2241_v62, %v1972_v63  ;;  %v2290_v9 = vld [vmem:[%s2499_s23 + $0x264] sm:$0xf0]  ;;  %v2257_v10 = vld [vmem:[%s2499_s23 + $0x164] sm:$0xf] }
  0xfa   : > { %1287 = vmatpush.bf16.msra.mxu2 %v1995_v33  ;;  %v1911_v11 = vor.u32 %v2225_v2, %v1908_v3  ;;  %v2036_v12 = vld [vmem:[%s2499_s23 + $0x168] sm:$0xf0]  ;;  %v2239_v13 = vld [vmem:[%s2499_s23 + $0xd4] sm:$0xf]  ;;  %v1964_v14 = vld [vmem:[%s2499_s23 + $0xd8] sm:$0xf0]  ;;  %v2163_v17 = vor.u32 %v2290_v9, %v2162_v8 }
  0xfb   : > { %1306 = vmatpush.bf16.msra.mxu3 %v2059_v37  ;;  %v2223_v15 = vld [vmem:[%s2499_s23 + $0x54] sm:$0xf]  ;;  %v1900_v16 = vld [vmem:[%s2499_s23 + $0x58] sm:$0xf0]  ;;  %v2039_v18 = vor.u32 %v2257_v10, %v2036_v12  ;;  %v1967_v19 = vor.u32 %v2239_v13, %v1964_v14  ;;  %v2154_v20 = vld [vmem:[%s2499_s23 + $0x250] sm:$0xf] }
  0xfc   : > { %1250 = vmatpush.bf16.msra.mxu0 %v1859_v45  ;;  %v2288_v21 = vld [vmem:[%s2499_s23 + $0x254] sm:$0xf0]  ;;  %v2255_v22 = vld [vmem:[%s2499_s23 + $0x154] sm:$0xf]  ;;  %v1903_v23 = vor.u32 %v2223_v15, %v1900_v16  ;;  %v2028_v24 = vld [vmem:[%s2499_s23 + $0x158] sm:$0xf0] }
  0xfd   : > { %1269 = vmatpush.bf16.msra.mxu1 %v1923_v49  ;;  %v2237_v25 = vld [vmem:[%s2499_s23 + $0xc4] sm:$0xf]  ;;  %v1956_v26 = vld [vmem:[%s2499_s23 + $0xc8] sm:$0xf0]  ;;  %v2155_v29 = vor.u32 %v2288_v21, %v2154_v20  ;;  %v2146_v30 = vld [vmem:[%s2499_s23 + $0x240] sm:$0xf]  ;;  %v2031_v33 = vor.u32 %v2255_v22, %v2028_v24 }
  0xfe   : > { %1288 = vmatpush.bf16.msra.mxu2 %v1987_v50  ;;  %v2221_v27 = vld [vmem:[%s2499_s23 + $0x44] sm:$0xf]  ;;  %v1892_v28 = vld [vmem:[%s2499_s23 + $0x48] sm:$0xf0]  ;;  %v2286_v31 = vld [vmem:[%s2499_s23 + $0x244] sm:$0xf0]  ;;  %v1959_v34 = vor.u32 %v2237_v25, %v1956_v26 }
  0xff   : > { %1307 = vmatpush.bf16.msra.mxu3 %v2051_v54  ;;  %1251 = vmatmul.bf16.vlgmr.msra.gmra.mxu0 %v2697_v59  ;;  %v2253_v32 = vld [vmem:[%s2499_s23 + $0x144] sm:$0xf]  ;;  %v2020_v35 = vld [vmem:[%s2499_s23 + $0x148] sm:$0xf0]  ;;  %v1838_v36 = vld [vmem:[%s2501_s30 + $0x28] sm:$0xf]  ;;  %v1895_v38 = vor.u32 %v2221_v27, %v1892_v28  ;;  %v2147_v46 = vor.u32 %v2286_v31, %v2146_v30 }
 0x100   : > { %1270 = vmatmul.bf16.vlgmr.msra.gmra.mxu1 %v2702_v0  ;;  %1319 = vmatpush.bf16.msrb.mxu0 %v2171_v5  ;;  %v2210_v37 = vld [vmem:[%s2501_s30 + $0x38] sm:$0xf0]  ;;  %v2208_v39 = vld [vmem:[%s2501_s30 + $0x2c] sm:$0xf]  ;;  %v1840_v40 = vld [vmem:[%s2501_s30 + $0x3c] sm:$0xf0]  ;;  %v2023_v50 = vor.u32 %v2253_v32, %v2020_v35 }
 0x101   : > { %1338 = vmatpush.bf16.msrb.mxu1 %v1919_v60  ;;  %1289 = vmatmul.bf16.vlgmr.msra.gmra.mxu2 %v2704_v1  ;;  %v2235_v41 = vld [vmem:[%s2499_s23 + $0xb4] sm:$0xf]  ;;  %v1948_v42 = vld [vmem:[%s2499_s23 + $0xb8] sm:$0xf0]  ;;  %v1846_v43 = vld [vmem:[%s2501_s30 + $0x30] sm:$0xf]  ;;  %v2754_v61 = vor.u32 %v2208_v39, %v1840_v40 }
 0x102   : > { %1357 = vmatpush.bf16.msrb.mxu2 %v1983_v55  ;;  %1308 = vmatmul.bf16.vlgmr.msra.gmra.mxu3 %v2708_v4  ;;  %v2219_v44 = vld [vmem:[%s2499_s23 + $0x34] sm:$0xf]  ;;  %v1884_v45 = vld [vmem:[%s2499_s23 + $0x38] sm:$0xf0]  ;;  %v1848_v49 = vld [vmem:[%s2501_s30 + $0x44] sm:$0xf0]  ;;  %v1951_v51 = vor.u32 %v2235_v41, %v1948_v42  ;;  %v2749_v55 = vor.u32 %v2210_v37, %v1838_v36 }
 0x103   : > { %1376 = vmatpush.bf16.msrb.mxu3 %v2047_v6  ;;  %v2211_v47 = vld [vmem:[%s2501_s30 + $0x40] sm:$0xf0]  ;;  %v2209_v48 = vld [vmem:[%s2501_s30 + $0x34] sm:$0xf]  ;;  %v2138_v52 = vld [vmem:[%s2499_s23 + $0x230] sm:$0xf]  ;;  %v1887_v56 = vor.u32 %v2219_v44, %v1884_v45 }
 0x104   : > { %1320 = vmatpush.bf16.msrb.mxu0 %v2163_v17  ;;  %v2284_v53 = vld [vmem:[%s2499_s23 + $0x234] sm:$0xf0]  ;;  %v2251_v54 = vld [vmem:[%s2499_s23 + $0x134] sm:$0xf]  ;;  %v2012_v57 = vld [vmem:[%s2499_s23 + $0x138] sm:$0xf0]  ;;  %v2756_v62 = vor.u32 %v2211_v47, %v1846_v43  ;;  %v2760_v3 = vor.u32 %v2209_v48, %v1848_v49 }
 0x105   : > { %1339 = vmatpush.bf16.msrb.mxu1 %v1911_v11  ;;  %v2233_v58 = vld [vmem:[%s2499_s23 + $0xa4] sm:$0xf]  ;;  %v1940_v60 = vld [vmem:[%s2499_s23 + $0xa8] sm:$0xf0]  ;;  %v2139_v5 = vor.u32 %v2284_v53, %v2138_v52  ;;  %v2015_v6 = vor.u32 %v2251_v54, %v2012_v57  ;;  %v2130_v8 = vld [vmem:[%s2499_s23 + $0x220] sm:$0xf] }
 0x106   : > { %1358 = vmatpush.bf16.msrb.mxu2 %v1975_v7  ;;  %v2217_v63 = vld [vmem:[%s2499_s23 + $0x24] sm:$0xf]  ;;  %v1876_v2 = vld [vmem:[%s2499_s23 + $0x28] sm:$0xf0]  ;;  %v1943_v7 = vor.u32 %v2233_v58, %v1940_v60  ;;  %v2282_v9 = vld [vmem:[%s2499_s23 + $0x224] sm:$0xf0] }
 0x107   : > { %1377 = vmatpush.bf16.msrb.mxu3 %v2039_v18  ;;  %v2249_v10 = vld [vmem:[%s2499_s23 + $0x124] sm:$0xf]  ;;  %v1879_v11 = vor.u32 %v2217_v63, %v1876_v2  ;;  %v2004_v12 = vld [vmem:[%s2499_s23 + $0x128] sm:$0xf0]  ;;  %v2231_v13 = vld [vmem:[%s2499_s23 + $0x94] sm:$0xf]  ;;  %v2131_v17 = vor.u32 %v2282_v9, %v2130_v8 }
 0x108   : > { %1321 = vmatpush.bf16.msrb.mxu0 %v2155_v29  ;;  %v1932_v14 = vld [vmem:[%s2499_s23 + $0x98] sm:$0xf0]  ;;  %v2215_v15 = vld [vmem:[%s2499_s23 + $0x14] sm:$0xf]  ;;  %v2122_v18 = vld [vmem:[%s2499_s23 + $0x210] sm:$0xf] }
 0x109   : > { %1340 = vmatpush.bf16.msrb.mxu1 %v1903_v23  ;;  %v1868_v16 = vld [vmem:[%s2499_s23 + $0x18] sm:$0xf0]  ;;  %v1935_v20 = vor.u32 %v2231_v13, %v1932_v14  ;;  %v2280_v21 = vld [vmem:[%s2499_s23 + $0x214] sm:$0xf0]  ;;  %v2247_v22 = vld [vmem:[%s2499_s23 + $0x114] sm:$0xf] }
 0x10a   : > { %1359 = vmatpush.bf16.msrb.mxu2 %v1967_v19  ;;  %v2007_v19 = vor.u32 %v2249_v10, %v2004_v12  ;;  %v1996_v23 = vld [vmem:[%s2499_s23 + $0x118] sm:$0xf0]  ;;  %v1871_v24 = vor.u32 %v2215_v15, %v1868_v16  ;;  %v2229_v25 = vld [vmem:[%s2499_s23 + $0x84] sm:$0xf]  ;;  %v1924_v26 = vld [vmem:[%s2499_s23 + $0x88] sm:$0xf0]  ;;  %v2123_v31 = vor.u32 %v2280_v21, %v2122_v18 }
 0x10b   : > { %1378 = vmatpush.bf16.msrb.mxu3 %v2031_v33  ;;  %v2213_v27 = vld [vmem:[%s2499_s23 + $0x4] sm:$0xf]  ;;  %v1860_v28 = vld [vmem:[%s2499_s23 + $0x8] sm:$0xf0]  ;;  %v2275_v29 = vld [vmem:[%s2499_s23 + $0x1f4] sm:$0xf]  ;;  %v1927_v35 = vor.u32 %v2229_v25, %v1924_v26 }
 0x10c   : > { %1322 = vmatpush.bf16.msrb.mxu0 %v2147_v46  ;;  %v2108_v30 = vld [vmem:[%s2499_s23 + $0x1f8] sm:$0xf0]  ;;  %v2291_v32 = vld [vmem:[%s2499_s23 + $0x274] sm:$0xf]  ;;  %v2114_v36 = vld [vmem:[%s2499_s23 + $0x200] sm:$0xf] }
 0x10d   : > { %1341 = vmatpush.bf16.msrb.mxu1 %v1895_v38  ;;  %v2172_v33 = vld [vmem:[%s2499_s23 + $0x278] sm:$0xf0]  ;;  %v2278_v37 = vld [vmem:[%s2499_s23 + $0x204] sm:$0xf0]  ;;  %v1863_v38 = vor.u32 %v2213_v27, %v1860_v28  ;;  %v2245_v39 = vld [vmem:[%s2499_s23 + $0x104] sm:$0xf]  ;;  %v2111_v41 = vor.u32 %v2275_v29, %v2108_v30 }
 0x10e   : > { %1360 = vmatpush.bf16.msrb.mxu2 %v1959_v34  ;;  %v1999_v34 = vor.u32 %v2247_v22, %v1996_v23  ;;  %v1988_v40 = vld [vmem:[%s2499_s23 + $0x108] sm:$0xf0]  ;;  %v2175_v42 = vor.u32 %v2291_v32, %v2172_v33  ;;  %v2273_v43 = vld [vmem:[%s2499_s23 + $0x1e4] sm:$0xf]  ;;  %v2115_v45 = vor.u32 %v2278_v37, %v2114_v36  ;;  %v1834_v46 = vld [vmem:[%s2501_s30 + $0x10] sm:$0xf] }
 0x10f   : > { %1379 = vmatpush.bf16.msrb.mxu3 %v2023_v50  ;;  %1256 = vmatmul.bf16.gmra.mxu0 %v2749_v55  ;;  %v2100_v44 = vld [vmem:[%s2499_s23 + $0x1e8] sm:$0xf0]  ;;  %v2207_v47 = vld [vmem:[%s2501_s30 + $0x20] sm:$0xf0]  ;;  %v1991_v48 = vor.u32 %v2245_v39, %v1988_v40  ;;  %v2092_v54 = vld [vmem:[%s2499_s23 + $0x1d8] sm:$0xf0] }
 0x110   : > { %1275 = vmatmul.bf16.gmra.mxu1 %v2754_v61  ;;  %1323 = vmatpush.bf16.msrb.mxu0 %v2139_v5  ;;  %v2103_v49 = vor.u32 %v2273_v43, %v2100_v44  ;;  %v2289_v50 = vld [vmem:[%s2499_s23 + $0x264] sm:$0xf]  ;;  %v2796_v52 = vor.u32 %v2207_v47, %v1834_v46  ;;  %v2271_v53 = vld [vmem:[%s2499_s23 + $0x1d4] sm:$0xf]  ;;  %v2156_v60 = vld [vmem:[%s2499_s23 + $0x258] sm:$0xf0] }
 0x111   : > { %1342 = vmatpush.bf16.msrb.mxu1 %v1887_v56  ;;  %1294 = vmatmul.bf16.gmra.mxu2 %v2756_v62  ;;  %v2095_v57 = vor.u32 %v2271_v53, %v2092_v54  ;;  %v2287_v58 = vld [vmem:[%s2499_s23 + $0x254] sm:$0xf]  ;;  %v2269_v63 = vld [vmem:[%s2499_s23 + $0x1c4] sm:$0xf]  ;;  %v2084_v2 = vld [vmem:[%s2499_s23 + $0x1c8] sm:$0xf0] }
 0x112   : > { %1361 = vmatpush.bf16.msrb.mxu2 %v1951_v51  ;;  %1313 = vmatmul.bf16.gmra.mxu3 %v2760_v3  ;;  %v2164_v51 = vld [vmem:[%s2499_s23 + $0x268] sm:$0xf0]  ;;  %v2159_v5 = vor.u32 %v2287_v58, %v2156_v60  ;;  %v2267_v8 = vld [vmem:[%s2499_s23 + $0x1b4] sm:$0xf]  ;;  %v2076_v9 = vld [vmem:[%s2499_s23 + $0x1b8] sm:$0xf0] }
 0x113   : > { %1380 = vmatpush.bf16.msrb.mxu3 %v2015_v6  ;;  %v2167_v56 = vor.u32 %v2289_v50, %v2164_v51  ;;  %v2087_v6 = vor.u32 %v2269_v63, %v2084_v2  ;;  %v2283_v10 = vld [vmem:[%s2499_s23 + $0x234] sm:$0xf]  ;;  %v2265_v12 = vld [vmem:[%s2499_s23 + $0x1a4] sm:$0xf]  ;;  %v2068_v13 = vld [vmem:[%s2499_s23 + $0x1a8] sm:$0xf0] }
 0x114   : > { %1324 = vmatpush.bf16.msrb.mxu0 %v2131_v17  ;;  %v1854_v14 = vld [vmem:[%s2501_s30 + $0x38] sm:$0xf]  ;;  %v2212_v15 = vld [vmem:[%s2501_s30 + $0x48] sm:$0xf0]  ;;  %v2071_v17 = vor.u32 %v2265_v12, %v2068_v13  ;;  %v2281_v18 = vld [vmem:[%s2499_s23 + $0x224] sm:$0xf] }
 0x115   : > { %1343 = vmatpush.bf16.msrb.mxu1 %v1879_v11  ;;  %v2140_v11 = vld [vmem:[%s2499_s23 + $0x238] sm:$0xf0]  ;;  %v2263_v21 = vld [vmem:[%s2499_s23 + $0x194] sm:$0xf]  ;;  %v2261_v27 = vld [vmem:[%s2499_s23 + $0x184] sm:$0xf] }
 0x116   : > { %1362 = vmatpush.bf16.msrb.mxu2 %v1943_v7  ;;  %v2285_v7 = vld [vmem:[%s2499_s23 + $0x244] sm:$0xf]  ;;  %v2143_v16 = vor.u32 %v2283_v10, %v2140_v11  ;;  %v2060_v22 = vld [vmem:[%s2499_s23 + $0x198] sm:$0xf0]  ;;  %v2279_v25 = vld [vmem:[%s2499_s23 + $0x214] sm:$0xf] }
 0x117   : > { %1381 = vmatpush.bf16.msrb.mxu3 %v2007_v19  ;;  %v2132_v19 = vld [vmem:[%s2499_s23 + $0x228] sm:$0xf0]  ;;  %v2124_v26 = vld [vmem:[%s2499_s23 + $0x218] sm:$0xf0]  ;;  %p2176_p11 = scmp.ne.s32.totalorder %s2398_s26, 1 }
 0x118   : > { %1325 = vmatpush.bf16.msrb.mxu0 %v2123_v31  ;;  %v2135_v23 = vor.u32 %v2281_v18, %v2132_v19  ;;  %v2052_v28 = vld [vmem:[%s2499_s23 + $0x188] sm:$0xf0]  ;;  %v2127_v29 = vor.u32 %v2279_v25, %v2124_v26  ;;  %v2277_v31 = vld [vmem:[%s2499_s23 + $0x204] sm:$0xf]  ;;  %v693_v63 = vld [vmem:[#allocation2 + $0x18] sm:$0xff] }
 0x119   : > { %1344 = vmatpush.bf16.msrb.mxu1 %v1871_v24  ;;  %v2063_v24 = vor.u32 %v2263_v21, %v2060_v22  ;;  %v2055_v30 = vor.u32 %v2261_v27, %v2052_v28  ;;  %v2116_v32 = vld [vmem:[%s2499_s23 + $0x208] sm:$0xf0] }
 0x11a   : > { %1363 = vmatpush.bf16.msrb.mxu2 %v1935_v20  ;;  %v1855_v20 = vor.u32 %v2212_v15, %v1854_v14  ;;  %v2119_v33 = vor.u32 %v2277_v31, %v2116_v32  ;;  %v697_v19 = vld [vmem:[#allocation2 + $0x28] sm:$0xff]  ;;  %v692_v32 = vld [vmem:[#allocation2] sm:$0xff] }
 0x11b   : > { %1382 = vmatpush.bf16.msrb.mxu3 %v1999_v34 }
 0x11c   : > { %1326 = vmatpush.bf16.msrb.mxu0 %v2115_v45 }
 0x11d   : > { %1345 = vmatpush.bf16.msrb.mxu1 %v1863_v38 }
 0x11e   : > { %1364 = vmatpush.bf16.msrb.mxu2 %v1927_v35 }
 0x11f   : > { %1383 = vmatpush.bf16.msrb.mxu3 %v1991_v48  ;;  %1327 = vmatmul.bf16.vlgmr.msrb.gmra.mxu0 %v2796_v52  ;;  %v691_v48 = vld [vmem:[#allocation2 + $0x30] sm:$0xff] }
 0x120   : > { %1395 = vmatpush.bf16.msra.mxu0 %v2111_v41  ;;  %1346 = vmatmul.bf16.vlgmr.msrb.gmra.mxu1 %v2697_v59  ;;  %v2148_v59 = vld [vmem:[%s2499_s23 + $0x248] sm:$0xf0] }
 0x121   : > { %1414 = vmatpush.bf16.msra.mxu1 %v2175_v42  ;;  %1365 = vmatmul.bf16.vlgmr.msrb.gmra.mxu2 %v2702_v0  ;;  %v2151_v0 = vor.u32 %v2285_v7, %v2148_v59 }
 0x122   : > { %2309 = vmatpush.bf16.msra.mxu2 %v2111_v41  ;;  %1384 = vmatmul.bf16.vlgmr.msrb.gmra.mxu3 %v2704_v1  ;;  %v2079_v1 = vor.u32 %v2267_v8, %v2076_v9 }
 0x123   : > { %2317 = vmatpush.bf16.msra.mxu3 %v2175_v42 }
 0x124   : > { %1396 = vmatpush.bf16.msra.mxu0 %v2103_v49 }
 0x125   : > { %1415 = vmatpush.bf16.msra.mxu1 %v2167_v56 }
 0x126   : > { %2310 = vmatpush.bf16.msra.mxu2 %v2103_v49 }
 0x127   : > { %2318 = vmatpush.bf16.msra.mxu3 %v2167_v56 }
 0x128   : > { %1397 = vmatpush.bf16.msra.mxu0 %v2095_v57 }
 0x129   : > { %1416 = vmatpush.bf16.msra.mxu1 %v2159_v5 }
 0x12a   : > { %2311 = vmatpush.bf16.msra.mxu2 %v2095_v57 }
 0x12b   : > { %2319 = vmatpush.bf16.msra.mxu3 %v2159_v5 }
 0x12c   : > { %1398 = vmatpush.bf16.msra.mxu0 %v2087_v6 }
 0x12d   : > { %1417 = vmatpush.bf16.msra.mxu1 %v2151_v0 }
 0x12e   : > { %2312 = vmatpush.bf16.msra.mxu2 %v2087_v6 }
 0x12f   : > { %2320 = vmatpush.bf16.msra.mxu3 %v2151_v0  ;;  %1332 = vmatmul.bf16.gmra.mxu0 %v1855_v20 }
 0x130   : > { %1399 = vmatpush.bf16.msra.mxu0 %v2079_v1  ;;  %1351 = vmatmul.bf16.gmra.mxu1 %v2749_v55 }
 0x131   : > { %1418 = vmatpush.bf16.msra.mxu1 %v2143_v16  ;;  %1370 = vmatmul.bf16.gmra.mxu2 %v2754_v61 }
 0x132   : > { %2313 = vmatpush.bf16.msra.mxu2 %v2079_v1  ;;  %1389 = vmatmul.bf16.gmra.mxu3 %v2756_v62  ;;  %v695_v1 = vld [vmem:[#allocation2 + $0x8] sm:$0xff] }
 0x133   : > { %2321 = vmatpush.bf16.msra.mxu3 %v2143_v16 }
 0x134   : > { %1400 = vmatpush.bf16.msra.mxu0 %v2071_v17 }
 0x135   : > { %1419 = vmatpush.bf16.msra.mxu1 %v2135_v23 }
 0x136   : > { %2314 = vmatpush.bf16.msra.mxu2 %v2071_v17 }
 0x137   : > { %2322 = vmatpush.bf16.msra.mxu3 %v2135_v23 }
 0x138   : > { %1401 = vmatpush.bf16.msra.mxu0 %v2063_v24 }
 0x139   : > { %1420 = vmatpush.bf16.msra.mxu1 %v2127_v29 }
 0x13a   : > { %2315 = vmatpush.bf16.msra.mxu2 %v2063_v24 }
 0x13b   : > { %2323 = vmatpush.bf16.msra.mxu3 %v2127_v29 }
 0x13c   : > { %1402 = vmatpush.bf16.msra.mxu0 %v2055_v30 }
 0x13d   : > { %1421 = vmatpush.bf16.msra.mxu1 %v2119_v33 }
 0x13e   : > { %2316 = vmatpush.bf16.msra.mxu2 %v2055_v30 }
 0x13f   : > { %2324 = vmatpush.bf16.msra.mxu3 %v2119_v33  ;;  %1403 = vmatmul.bf16.vlgmr.msra.gmra.mxu0 %v2708_v4 }
 0x140   : > { %1422 = vmatmul.bf16.vlgmr.msra.gmra.mxu1 %v2796_v52 }
 0x141   : > { %1408 = vmatmul.bf16.vlgmr.msra.gmra.mxu2 %v2760_v3 }
 0x142   : > { %1427 = vmatmul.bf16.vlgmr.msra.gmra.mxu3 %v1855_v20 }
 0x17c   : > { %v1252_v55 = vpop.f32.mrf.mxu0 }
 0x17d   : > { %v1271_v61 = vpop.f32.mrf.mxu1 }
 0x17e   : > { %v1272_v42 = vadd.f32 %v1271_v61, %v1252_v55 }
 0x184   : > { %v1290_v62 = vpop.f32.mrf.mxu2  ;;  %v1254_v35 = vpop.f32.mrf.mxu0 }
 0x185   : > { %v1309_v34 = vpop.f32.mrf.mxu3  ;;  %v1273_v36 = vpop.f32.mrf.mxu1  ;;  %v1291_v45 = vadd.f32 %v1290_v62, %v1272_v42 }
 0x186   : > { %v1274_v51 = vadd.f32 %v1273_v36, %v1254_v35 }
 0x187   : > { %v1310_v47 = vadd.f32 %v1309_v34, %v1291_v45 }
 0x18c   : > { %v1292_v37 = vpop.f32.mrf.mxu2  ;;  %v1257_v39 = vpop.f32.mrf.mxu0 }
 0x18d   : > { %v1311_v38 = vpop.f32.mrf.mxu3  ;;  %v1276_v40 = vpop.f32.mrf.mxu1  ;;  %v1293_v53 = vadd.f32 %v1292_v37, %v1274_v51 }
 0x18e   : > { %v1277_v57 = vadd.f32 %v1276_v40, %v1257_v39  ;;  %v696_v39 = vld [vmem:[#allocation2 + $0x20] sm:$0xff] }
 0x18f   : > { %v1312_v56 = vadd.f32 %v1311_v38, %v1293_v53 }
 0x194   : > { %v1295_v41 = vpop.f32.mrf.mxu2  ;;  %v1259_v44 = vpop.f32.mrf.mxu0 }
 0x195   : > { %v1314_v43 = vpop.f32.mrf.mxu3  ;;  %v1278_v4 = vpop.f32.mrf.mxu1  ;;  %v1296_v7 = vadd.f32 %v1295_v41, %v1277_v57 }
 0x196   : > { %v1279_v12 = vadd.f32 %v1278_v4, %v1259_v44 }
 0x197   : > { %v1315_v8 = vadd.f32 %v1314_v43, %v1296_v7  ;;  %v694_v43 = vld [vmem:[#allocation2 + $0x10] sm:$0xff] }
 0x19c   : > { %v1297_v46 = vpop.f32.mrf.mxu2  ;;  %v1328_v49 = vpop.f32.mrf.mxu0 }
 0x19d   : > { %v1316_v3 = vpop.f32.mrf.mxu3  ;;  %v1347_v50 = vpop.f32.mrf.mxu1  ;;  %v1329_v52 = vadd.f32 %v1328_v49, %v1310_v47  ;;  %v1298_v14 = vadd.f32 %v1297_v46, %v1279_v12  ;;  %v698_v49 = vld [vmem:[#allocation2 + $0x38] sm:$0xff] }
 0x19f   : > { %v1433_v54 = vadd.f32 %v1329_v52, %v691_v48  ;;  %v1317_v16 = vadd.f32 %v1316_v3, %v1298_v14 }
 0x1a1   : > { %1441 = vst [vmem:[#allocation2 + $0x30] sm:$0xff] %v1433_v54 }
 0x1a4   : > { %v1366_v58 = vpop.f32.mrf.mxu2  ;;  %v1330_v2 = vpop.f32.mrf.mxu0 }
 0x1a5   : > { %v1385_v60 = vpop.f32.mrf.mxu3  ;;  %v1349_v5 = vpop.f32.mrf.mxu1  ;;  %v1331_v6 = vadd.f32 %v1330_v2, %v1312_v56  ;;  %v1367_v23 = vadd.f32 %v1366_v58, %v1347_v50 }
 0x1a7   : > { %v1435_v59 = vadd.f32 %v1331_v6, %v693_v63  ;;  %v1386_v25 = vadd.f32 %v1385_v60, %v1367_v23 }
 0x1a9   : > { %1443 = vst [vmem:[#allocation2 + $0x18] sm:$0xff] %v1435_v59 }
 0x1ac   : > { %v1368_v9 = vpop.f32.mrf.mxu2  ;;  %v1333_v10 = vpop.f32.mrf.mxu0 }
 0x1ad   : > { %v1387_v0 = vpop.f32.mrf.mxu3  ;;  %v1352_v11 = vpop.f32.mrf.mxu1  ;;  %v1334_v13 = vadd.f32 %v1333_v10, %v1315_v8  ;;  %v1369_v33 = vadd.f32 %v1368_v9, %v1349_v5 }
 0x1af   : > { %v1437_v15 = vadd.f32 %v1334_v13, %v695_v1  ;;  %v1388_v34 = vadd.f32 %v1387_v0, %v1369_v33 }
 0x1b1   : > { %1445 = vst [vmem:[#allocation2 + $0x8] sm:$0xff] %v1437_v15 }
 0x1b4   : > { %v1371_v17 = vpop.f32.mrf.mxu2  ;;  %v1335_v20 = vpop.f32.mrf.mxu0 }
 0x1b5   : > { %v1390_v18 = vpop.f32.mrf.mxu3  ;;  %v1354_v21 = vpop.f32.mrf.mxu1  ;;  %v1336_v22 = vadd.f32 %v1335_v20, %v1317_v16  ;;  %v1372_v31 = vadd.f32 %v1371_v17, %v1352_v11 }
 0x1b7   : > { %v1439_v24 = vadd.f32 %v1336_v22, %v697_v19  ;;  %v1391_v62 = vadd.f32 %v1390_v18, %v1372_v31 }
 0x1b9   : > { %1447 = vst [vmem:[#allocation2 + $0x28] sm:$0xff] %v1439_v24 }
 0x1bc   : > { %v1373_v26 = vpop.f32.mrf.mxu2  ;;  %v1404_v28 = vpop.f32.mrf.mxu0 }
 0x1bd   : > { %v1392_v27 = vpop.f32.mrf.mxu3  ;;  %v1423_v29 = vpop.f32.mrf.mxu1  ;;  %v1405_v30 = vadd.f32 %v1404_v28, %v1386_v25  ;;  %v1374_v41 = vadd.f32 %v1373_v26, %v1354_v21 }
 0x1bf   : > { %v1424_v55 = vadd.f32 %v1423_v29, %v1405_v30  ;;  %v1393_v47 = vadd.f32 %v1392_v27, %v1374_v41 }
 0x1c1   : > { %v1434_v61 = vadd.f32 %v1424_v55, %v692_v32 }
 0x1c3   : > { %1442 = vst [vmem:[#allocation2] sm:$0xff] %v1434_v61 }
 0x1c4   : > { %v1409_v35 = vpop.f32.mrf.mxu2  ;;  %v1406_v38 = vpop.f32.mrf.mxu0 }
 0x1c5   : > { %v1428_v36 = vpop.f32.mrf.mxu3  ;;  %v1410_v37 = vadd.f32 %v1409_v35, %v1391_v62  ;;  %v1407_v40 = vadd.f32 %v1406_v38, %v1388_v34  ;;  %v1425_v44 = vpop.f32.mrf.mxu1 }
 0x1c7   : > { %v1429_v42 = vadd.f32 %v1428_v36, %v1410_v37  ;;  %v1426_v4 = vadd.f32 %v1425_v44, %v1407_v40 }
 0x1c9   : > { %v1438_v45 = vadd.f32 %v1429_v42, %v696_v39  ;;  %v1436_v46 = vadd.f32 %v1426_v4, %v694_v43 }
 0x1cb   : > { %1446 = vst [vmem:[#allocation2 + $0x20] sm:$0xff] %v1438_v45 }
 0x1cc   : > { %1444 = vst [vmem:[#allocation2 + $0x10] sm:$0xff] %v1436_v46  ;;  %v1411_v3 = vpop.f32.mrf.mxu2 }
 0x1cd   : > { %v1412_v48 = vadd.f32 %v1411_v3, %v1393_v47  ;;  %v1430_v50 = vpop.f32.mrf.mxu3 }
 0x1cf   : > { %v1431_v51 = vadd.f32 %v1430_v50, %v1412_v48  ;;  %1452 = sbr.rel (%p2176_p11) target bundleno = 484 (0x1e4), region = 78 }
 0x1d1   : > { %v1440_v52 = vadd.f32 %v1431_v51, %v698_v49 }
 0x1d3   : > { %1448 = vst [vmem:[#allocation2 + $0x38] sm:$0xff] %v1440_v52 }
 0x1d4   : > { %v1453_v53 = vld [vmem:[#allocation2 + $0x30] sm:$0xff]  ;;  %v1454_v54 = vld [vmem:[#allocation2] sm:$0xff]  ;;  %v1455_v63 = vld [vmem:[#allocation2 + $0x18] sm:$0xff] }
 0x1d5   : > { %v1461_v56 = vld [vmem:[%s2872_s4] sm:$0x3]  ;;  %v1456_v2 = vld [vmem:[#allocation2 + $0x10] sm:$0xff]  ;;  %v1457_v7 = vld [vmem:[#allocation2 + $0x8] sm:$0xff] }
 0x1d6   : > { %v1463_v57 = vperm.slane %v1461_v56, 0  ;;  %v1464_v58 = vperm.slane %v1461_v56, 1  ;;  %v1475_v60 = vld [vmem:[%s2873_s5] sm:$0x3]  ;;  %v1459_v8 = vld [vmem:[#allocation2 + $0x28] sm:$0xff] }
 0x1d7   : > { %v1477_v5 = vperm.slane %v1475_v60, 0  ;;  %v1478_v6 = vperm.slane %v1475_v60, 1  ;;  %v1458_v59 = vld [vmem:[#allocation2 + $0x20] sm:$0xff] }
 0x1d8   : > { %v1467_v9 = vmul.f32 %v1463_v57, %v1453_v53  ;;  %v1468_v0 = vmul.f32 %v1464_v58, %v1454_v54  ;;  %v1469_v1 = vmul.f32 %v1463_v57, %v1455_v63  ;;  %v1470_v10 = vmul.f32 %v1464_v58, %v1456_v2 }
 0x1d9   : > { %v1471_v12 = vmul.f32 %v1463_v57, %v1457_v7  ;;  %v1472_v13 = vmul.f32 %v1464_v58, %v1458_v59  ;;  %v1473_v14 = vmul.f32 %v1463_v57, %v1459_v8 }
 0x1da   : > { %v1460_v11 = vld [vmem:[#allocation2 + $0x38] sm:$0xff]  ;;  %v1481_v16 = vadd.f32 %v1477_v5, %v1467_v9  ;;  %v1482_v17 = vadd.f32 %v1478_v6, %v1468_v0  ;;  %v1483_v18 = vadd.f32 %v1477_v5, %v1469_v1  ;;  %v1484_v19 = vadd.f32 %v1478_v6, %v1470_v10 }
 0x1db   : > { %v1474_v15 = vmul.f32 %v1464_v58, %v1460_v11  ;;  %v1485_v20 = vadd.f32 %v1477_v5, %v1471_v12  ;;  %v1486_v21 = vadd.f32 %v1478_v6, %v1472_v13  ;;  %v1487_v22 = vadd.f32 %v1477_v5, %v1473_v14 }
 0x1dc   : > { %v1489_v24 = vmax.f32 %v1481_v16, 0.0  ;;  %v1490_v25 = vmax.f32 %v1482_v17, 0.0  ;;  %v1491_v26 = vmax.f32 %v1483_v18, 0.0  ;;  %v1492_v27 = vmax.f32 %v1484_v19, 0.0 }
 0x1dd   : > { %v1488_v23 = vadd.f32 %v1478_v6, %v1474_v15  ;;  %v1493_v28 = vmax.f32 %v1485_v20, 0.0  ;;  %v1494_v29 = vmax.f32 %v1486_v21, 0.0  ;;  %v1495_v30 = vmax.f32 %v1487_v22, 0.0 }
 0x1de   : > { %v1497_v32 = vpack.c.bf16 %v1490_v25, %v1489_v24  ;;  %v1498_v33 = vpack.c.bf16 %v1492_v27, %v1491_v26 }
 0x1df   : > { %v1496_v31 = vmax.f32 %v1488_v23, 0.0  ;;  %v1499_v55 = vpack.c.bf16 %v1494_v29, %v1493_v28 }
 0x1e0   : > { %1501 = vst [vmem:[%s2874_s6] sm:$0xff] %v1497_v32 }
 0x1e1   : > { %v1500_v61 = vpack.c.bf16 %v1496_v31, %v1495_v30  ;;  %1502 = vst [vmem:[%s2874_s6 + $0x8] sm:$0xff] %v1498_v33 }
 0x1e2   : > { %1503 = vst [vmem:[%s2874_s6 + $0x10] sm:$0xff] %v1499_v55 }
 0x1e3   : > { %1504 = vst [vmem:[%s2874_s6 + $0x18] sm:$0xff] %v1500_v61 }
 0x1e4 PF: > { %s18_s28 = sadd.s32 1, %s2406_s28   ;;  %s2876_s24 = smov %s2394_s25 }
 0x1e5   : > { %p15_p12 = scmp.ge.s32.totalorder %s18_s28, 4   ;;  %s2877_s25 = smov %s2484_s9 }
 0x1e6   : > { %s2878_s26 = smov %s2402_s27  ;;  %s2879_s27 = smov %s2881_s29 }
 0x1e7   :  { %17 = sbr.rel (!%p15_p12) target bundleno = 3 (0x3), region = 146 }

// kernel: resnet_forward.13
= control target key start
LH: loop header
LB: loop body
LE: loop exit
PB: predicated region body
PF: predicated region fallthrough
CT: control target
= control target key end

     0   :  { %v199_v4 = vmov 16.0   ;;  %s342_s0 = inlined_call_operand.vmem [shape: bf16[2,16,256], index: 0, kind: input, shape index: {}]   ;;  %s343_s1 = inlined_call_operand.vmem [shape: f32[256,128], index: 1, kind: input, shape index: {}]   ;;  %s344_s2 = inlined_call_operand.vmem [shape: f32[1,128], index: 2, kind: input, shape index: {}]   ;;  %s345_s3 = inlined_call_operand.hbm [shape: f32[2,128], index: 3, kind: output, shape index: {}]  }
   0x1   :  { %v81_v0 = vld [vmem:[%s343_s1 + $0x78] sm:$0xff]  ;;  %v80_v1 = vld [vmem:[%s343_s1 + $0x70] sm:$0xff]  ;;  %171 = vrcp.f32 %v199_v4  ;;  %v79_v5 = vld [vmem:[%s343_s1 + $0x68] sm:$0xff] }
   0x2   :  { %v97_v2 = vld [vmem:[%s343_s1 + $0xf8] sm:$0xff]  ;;  %111 = vmatpush.msra.mxu0 %v81_v0  ;;  %v96_v3 = vld [vmem:[%s343_s1 + $0xf0] sm:$0xff]  ;;  %v95_v6 = vld [vmem:[%s343_s1 + $0xe8] sm:$0xff] }
   0x3   :  { %131 = vmatpush.msra.mxu1 %v97_v2  ;;  %v78_v7 = vld [vmem:[%s343_s1 + $0x60] sm:$0xff]  ;;  %v77_v9 = vld [vmem:[%s343_s1 + $0x58] sm:$0xff]  ;;  %v76_v12 = vld [vmem:[%s343_s1 + $0x50] sm:$0xff] }
   0x4   :  { %112 = vmatpush.msra.mxu0 %v80_v1  ;;  %v94_v8 = vld [vmem:[%s343_s1 + $0xe0] sm:$0xff]  ;;  %v93_v10 = vld [vmem:[%s343_s1 + $0xd8] sm:$0xff]  ;;  %v92_v13 = vld [vmem:[%s343_s1 + $0xd0] sm:$0xff] }
   0x5   :  { %132 = vmatpush.msra.mxu1 %v96_v3  ;;  %v75_v15 = vld [vmem:[%s343_s1 + $0x48] sm:$0xff]  ;;  %v15_v17 = vld [vmem:[%s342_s0] sm:$0xff]  ;;  %v17_v20 = vld [vmem:[%s342_s0 + $0x10] sm:$0xff] }
   0x6   :  { %113 = vmatpush.msra.mxu0 %v79_v5  ;;  %v91_v16 = vld [vmem:[%s343_s1 + $0xc8] sm:$0xff]  ;;  %v74_v19 = vld [vmem:[%s343_s1 + $0x40] sm:$0xff]  ;;  %v18_v21 = vld [vmem:[%s342_s0 + $0x18] sm:$0xff]  ;;  %v19_v22 = vunpack.c.l.bf16 %v15_v17  ;;  %v20_v24 = vunpack.c.h.bf16 %v15_v17  ;;  %v23_v27 = vunpack.c.l.bf16 %v17_v20  ;;  %v24_v30 = vunpack.c.h.bf16 %v17_v20 }
   0x7   :  { %133 = vmatpush.msra.mxu1 %v95_v6  ;;  %v251_v11 = vpop.eup %171  ;;  %v16_v18 = vld [vmem:[%s342_s0 + $0x8] sm:$0xff]  ;;  %v90_v26 = vld [vmem:[%s343_s1 + $0xc0] sm:$0xff]  ;;  %v25_v28 = vunpack.c.l.bf16 %v18_v21 }
   0x8   :  { %114 = vmatpush.msra.mxu0 %v78_v7  ;;  %v56_v14 = vmul.f32 16.0, %v251_v11  ;;  %v21_v23 = vunpack.c.l.bf16 %v16_v18  ;;  %v22_v25 = vunpack.c.h.bf16 %v16_v18 }
   0x9   :  { %134 = vmatpush.msra.mxu1 %v94_v8 }
   0xa   :  { %115 = vmatpush.msra.mxu0 %v77_v9  ;;  %v57_v29 = vsub.f32 1.0, %v56_v14 }
   0xb   :  { %135 = vmatpush.msra.mxu1 %v93_v10 }
   0xc   :  { %116 = vmatpush.msra.mxu0 %v76_v12 }
   0xd   :  { %136 = vmatpush.msra.mxu1 %v92_v13 }
   0xe   :  { %8 = vsyncpa [#allocation3], 0  ;;  %117 = vmatpush.msra.mxu0 %v75_v15  ;;  %v27_v31 = vadd.f32 %v21_v23, %v19_v22  ;;  %v26_v32 = vunpack.c.h.bf16 %v18_v21  ;;  %v34_v33 = vadd.f32 %v22_v25, %v20_v24  ;;  %v73_v34 = vld [vmem:[%s343_s1 + $0x38] sm:$0xff]  ;;  %v41_v36 = vadd.f32 %v25_v28, %v23_v27  ;;  %v72_v40 = vld [vmem:[%s343_s1 + $0x30] sm:$0xff]  ;;  %s200_s30 = smov [#allocation2]  }
   0xf   :  { %137 = vmatpush.msra.mxu1 %v91_v16  ;;  %v89_v35 = vld [vmem:[%s343_s1 + $0xb8] sm:$0xff]  ;;  %v88_v41 = vld [vmem:[%s343_s1 + $0xb0] sm:$0xff]  ;;  %v58_v43 = vmul.f32 %v251_v11, %v57_v29  ;;  %v71_v47 = vld [vmem:[%s343_s1 + $0x28] sm:$0xff]  ;;  %vm60_vm0 = vweird.f32 %v251_v11  ;;  %vm106_vm1 = vcmask 1041409   ;;  %s157_s4 = sshll.u32 %s200_s30, 4  ;;  %s158_s4 = int_to_ptr.vmem [resolvable:$true] %s157_s4 }
  0x10   :  { %118 = vmatpush.msra.mxu0 %v74_v19  ;;  %v28_v37 = vrot.slane %v27_v31, 4  ;;  %v35_v38 = vrot.slane %v34_v33, 4  ;;  %v48_v39 = vadd.f32 %v26_v32, %v24_v30  ;;  %v42_v42 = vrot.slane %v41_v36, 4  ;;  %v87_v48 = vld [vmem:[%s343_s1 + $0xa8] sm:$0xff]  ;;  %v70_v53 = vld [vmem:[%s343_s1 + $0x20] sm:$0xff]  ;;  %v69_v60 = vld [vmem:[%s343_s1 + $0x18] sm:$0xff] }
  0x11   :  { %138 = vmatpush.msra.mxu1 %v90_v26  ;;  %v86_v54 = vld [vmem:[%s343_s1 + $0xa0] sm:$0xff]  ;;  %v59_v56 = vadd.f32 %v251_v11, %v58_v43  ;;  %v85_v61 = vld [vmem:[%s343_s1 + $0x98] sm:$0xff]  ;;  %v68_v2 = vld [vmem:[%s343_s1 + $0x10] sm:$0xff] }
  0x12   :  { %119 = vmatpush.msra.mxu0 %v73_v34  ;;  %v29_v44 = vadd.f32 %v28_v37, %v27_v31  ;;  %v36_v45 = vadd.f32 %v35_v38, %v34_v33  ;;  %v49_v46 = vrot.slane %v48_v39, 4  ;;  %v43_v49 = vadd.f32 %v42_v42, %v41_v36  ;;  %v84_v3 = vld [vmem:[%s343_s1 + $0x90] sm:$0xff]  ;;  %v67_v9 = vld [vmem:[%s343_s1 + $0x8] sm:$0xff]  ;;  %v66_v15 = vld [vmem:[%s343_s1] sm:$0xff] }
  0x13   :  { %139 = vmatpush.msra.mxu1 %v89_v35  ;;  %v61_v5 = vsel %vm60_vm0, %v251_v11, %v59_v56  ;;  %v83_v10 = vld [vmem:[%s343_s1 + $0x88] sm:$0xff]  ;;  %v82_v17 = vld [vmem:[%s343_s1 + $0x80] sm:$0xff]  ;;  %s159_s1 = sshll.u32 %s345_s3, 4  ;;  %s160_s1 = int_to_ptr.hbm [resolvable:$true] %s159_s1 }
  0x14   :  { %120 = vmatpush.msra.mxu0 %v72_v40  ;;  %v30_v50 = vrot.slane %v29_v44, 2  ;;  %v37_v51 = vrot.slane %v36_v45, 2  ;;  %v50_v52 = vadd.f32 %v49_v46, %v48_v39  ;;  %v44_v55 = vrot.slane %v43_v49, 2  ;;  %v170_v21 = vld [vmem:[%s344_s2] ss:$0 sm:$0xff] }
  0x15   :  { %140 = vmatpush.msra.mxu1 %v88_v41 }
  0x16   :  { %121 = vmatpush.msra.mxu0 %v71_v47  ;;  %v31_v57 = vadd.f32 %v30_v50, %v29_v44  ;;  %v38_v58 = vadd.f32 %v37_v51, %v36_v45  ;;  %v51_v59 = vrot.slane %v50_v52, 2  ;;  %v45_v62 = vadd.f32 %v44_v55, %v43_v49 }
  0x17   :  { %141 = vmatpush.msra.mxu1 %v87_v48 }
  0x18   :  { %122 = vmatpush.msra.mxu0 %v70_v53  ;;  %v32_v63 = vrot.slane %v31_v57, 1  ;;  %v39_v0 = vrot.slane %v38_v58, 1  ;;  %v52_v1 = vadd.f32 %v51_v59, %v50_v52  ;;  %v46_v4 = vrot.slane %v45_v62, 1 }
  0x19   :  { %142 = vmatpush.msra.mxu1 %v86_v54 }
  0x1a   :  { %123 = vmatpush.msra.mxu0 %v69_v60  ;;  %v33_v6 = vadd.f32 %v32_v63, %v31_v57  ;;  %v40_v7 = vadd.f32 %v39_v0, %v38_v58  ;;  %v53_v8 = vrot.slane %v52_v1, 1  ;;  %v47_v12 = vadd.f32 %v46_v4, %v45_v62 }
  0x1b   :  { %143 = vmatpush.msra.mxu1 %v85_v61 }
  0x1c   :  { %124 = vmatpush.msra.mxu0 %v68_v2  ;;  %v62_v13 = vmul.f32 %v61_v5, %v33_v6  ;;  %v54_v14 = vadd.f32 %v53_v8, %v52_v1  ;;  %v63_v11 = vmul.f32 %v61_v5, %v40_v7  ;;  %v64_v16 = vmul.f32 %v61_v5, %v47_v12 }
  0x1d   :  { %144 = vmatpush.msra.mxu1 %v84_v3 }
  0x1e   :  { %125 = vmatpush.msra.mxu0 %v67_v9  ;;  %v65_v18 = vmul.f32 %v61_v5, %v54_v14  ;;  %v107_v19 = vsel %vm106_vm1, %v64_v16, %v62_v13 }
  0x1f   :  { %145 = vmatpush.msra.mxu1 %v83_v10 }
  0x20   :  { %126 = vmatpush.msra.mxu0 %v66_v15  ;;  %v108_v20 = vsel %vm106_vm1, %v65_v18, %v63_v11 }
  0x21   :  { %146 = vmatpush.msra.mxu1 %v82_v17  ;;  %127 = vmatmul.f32.vlgmr.msra.gmra.mxu0 %v107_v19 }
  0x22   :  { %147 = vmatmul.f32.vlgmr.msra.gmra.mxu1 %v108_v20 }
  0x9e   :  { %v128_v22 = vpop.f32.mrf.mxu0 }
  0x9f   :  { %v148_v23 = vpop.f32.mrf.mxu1  ;;  %v129_v24 = vadd.f32 %v170_v21, %v128_v22 }
  0xa1   :  { %v149_v25 = vadd.f32 %v148_v23, %v129_v24 }
  0xa3   :  { %151 = vst [vmem:[#allocation2] sm:$0x3] %v149_v25 }
  0xa4   :  { %162 = dma.vmem_to_hbm [thread:$0]  %s158_s4, 32, %s160_s1, [#allocation3]  }
  0xa5   :  { %197 = dma.done.wait [#allocation3], 32  }
  0xa6   :  { %198 = vsyncadd [#allocation3], 4294967264 }
  0xa7   :  { %167 = vsyncpa [#allocation3], 1 }

// kernel: resnet_forward.12
= control target key start
LH: loop header
LB: loop body
LE: loop exit
PB: predicated region body
PF: predicated region fallthrough
CT: control target
= control target key end

     0   :  { %s2243_s18 = smov 0   ;;  %s2245_s19 = smov 0   ;;  %s2600_s0 = inlined_call_operand.vmem [shape: bf16[32,2304], index: 0, kind: input, shape index: {}]   ;;  %s2601_s1 = inlined_call_operand.vmem [shape: bf16[2304,256], index: 1, kind: input, shape index: {}]   ;;  %s2602_s2 = inlined_call_operand.vmem [shape: f32[1,256], index: 2, kind: input, shape index: {}]   ;;  %s2603_s3 = inlined_call_operand.vmem [shape: f32[1,256], index: 3, kind: input, shape index: {}]   ;;  %s2604_s4 = inlined_call_operand.vmem [shape: bf16[32,256], index: 4, kind: input, shape index: {}]   ;;  %s2605_s5 = inlined_call_operand.vmem [shape: bf16[32,256], index: 5, kind: output, shape index: {}]  }
   0x1   :  { %s2247_s20 = smov 0   ;;  %s2249_s21 = smov 0  }
   0x2   :  { %s2251_s22 = smov 0  }
   0x3 LB: > { %s27_s23 = sadd.s32 1, %s2206_s21  ;;  %p50_p1 = scmp.ne.s32.totalorder %s2198_s19, %s2194_s18  ;;  %s2210_s22 = sphi %s2251_s22, %s15_s22   ;;  %s2206_s21 = sphi %s2249_s21, %s2609_s21   ;;  %s2202_s20 = sphi %s2247_s20, %s2608_s20   ;;  %s2198_s19 = sphi %s2245_s19, %s2607_s19   ;;  %s2194_s18 = sphi %s2243_s18, %s2606_s18  }
   0x4   : > { %p28_p0 = scmp.ge.s32.totalorder %s27_s23, 3  ;;  %p51_p2 = scmp.eq.s32.totalorder %s2210_s22, 0 }
   0x5   : > { %s43_s25 = sadd.s32 1, %s2198_s19  ;;  %p1576_p5 = scmp.ge.s32.totalorder %s2210_s22, 3 }
   0x6   : > { %s2611_s23 = smov (%p28_p0, %s27_s23), 0  ;;  %p52_p3 = por %p51_p2, %p50_p1 }
   0x7   : > { %s39_s24 = ssub.s32 %s2206_s21, %s2611_s23  ;;  %243 = sbr.rel (%p1576_p5) target bundleno = 29 (0x1d), region = 28 }
   0x8   : > { %p41_p4 = scmp.eq.s32.totalorder %s39_s24, 0 }
   0xa   : > { %s2278_s26 = scalar_select %p41_p4, %s2198_s19, %s43_s25  }
   0xc   : > { %246 = sbr.rel (!%p52_p3) target bundleno = 29 (0x1d), region = 32  ;;  %s248_s27 = sand.u32 (%p52_p3), 1, %s2198_s19  }
   0xd   : > { %s2019_s28 = smul.u32 (%p52_p3), 24, %s2206_s21 }
   0xe   : > { %s2129_s29 = smul.u32 (%p52_p3), 96, %s248_s27 }
   0xf   : > { %s256_s7 = scalar_lea.vmem (%p52_p3), %s2600_s0, %s2019_s28 }
  0x10   : > { %v269_v0 = vld [vmem:[%s256_s7] sm:$0xff] (%p52_p3)  ;;  %v271_v1 = vld [vmem:[%s256_s7 + $0x8] sm:$0xff] (%p52_p3)  ;;  %v273_v2 = vld [vmem:[%s256_s7 + $0x10] sm:$0xff] (%p52_p3)  ;;  %s250_s8 = scalar_lea.vmem (%p52_p3), [#allocation3], %s2129_s29 }
  0x11   : > { %270 = vst [vmem:[%s250_s8] sm:$0xff] %v269_v0  ;;  %v275_v3 = vld [vmem:[%s256_s7 + $0x48] sm:$0xff]  ;;  %v277_v4 = vld [vmem:[%s256_s7 + $0x50] sm:$0xff]  ;;  %v279_v5 = vld [vmem:[%s256_s7 + $0x58] sm:$0xff] }
  0x12   : > { %272 = vst [vmem:[%s250_s8 + $0x8] sm:$0xff] %v271_v1  ;;  %v281_v6 = vld [vmem:[%s256_s7 + $0x90] sm:$0xff]  ;;  %v283_v7 = vld [vmem:[%s256_s7 + $0x98] sm:$0xff]  ;;  %v285_v8 = vld [vmem:[%s256_s7 + $0xa0] sm:$0xff] }
  0x13   : > { %274 = vst [vmem:[%s250_s8 + $0x10] sm:$0xff] %v273_v2  ;;  %v287_v9 = vld [vmem:[%s256_s7 + $0xd8] sm:$0xff]  ;;  %v289_v10 = vld [vmem:[%s256_s7 + $0xe0] sm:$0xff]  ;;  %v291_v11 = vld [vmem:[%s256_s7 + $0xe8] sm:$0xff] }
  0x14   : > { %276 = vst [vmem:[%s250_s8 + $0x18] sm:$0xff] %v275_v3 }
  0x15   : > { %278 = vst [vmem:[%s250_s8 + $0x20] sm:$0xff] %v277_v4 }
  0x16   : > { %280 = vst [vmem:[%s250_s8 + $0x28] sm:$0xff] %v279_v5 }
  0x17   : > { %282 = vst [vmem:[%s250_s8 + $0x30] sm:$0xff] %v281_v6 }
  0x18   : > { %284 = vst [vmem:[%s250_s8 + $0x38] sm:$0xff] %v283_v7 }
  0x19   : > { %286 = vst [vmem:[%s250_s8 + $0x40] sm:$0xff] %v285_v8 }
  0x1a   : > { %288 = vst [vmem:[%s250_s8 + $0x48] sm:$0xff] %v287_v9 }
  0x1b   : > { %290 = vst [vmem:[%s250_s8 + $0x50] sm:$0xff] %v289_v10 }
  0x1c   : > { %292 = vst [vmem:[%s250_s8 + $0x58] sm:$0xff] %v291_v11 }
  0x1d PF: > { %p1578_p6 = scmp.ge.s32.totalorder %s2210_s22, 1  ;;  %p312_p7 = scmp.lt.s32.totalorder %s2210_s22, 4 }
  0x1f   : > { %p313_p8 = pnand %p1578_p6, %p312_p7 }
  0x20   : > { %s319_s9 = sand.u32 (!%p313_p8), 1, %s2194_s18   ;;  %s381_s10 = smul.u32 (!%p313_p8), 96, %s2202_s20 }
  0x21   : > { %316 = sbr.rel (%p313_p8) target bundleno = 334 (0x14e), region = 59  ;;  %p1581_p10 = scmp.ne.s32.totalorder (!%p313_p8), %s2202_s20, 0 }
  0x22   : > { %s2130_s11 = smul.u32 (!%p313_p8), 96, %s319_s9  ;;  %p383_p9 = scmp.lt.s32.totalorder (!%p313_p8), %s381_s10, 287 }
  0x24   : > { %s2295_s16 = scalar_lea.vmem (!%p313_p8), [#allocation3], %s2130_s11 }
  0x26   : > { %s2613_s10 = smov (!%p383_p9, %s381_s10), 287  ;;  %430 = sbr.rel (%p1581_p10) target bundleno = 52 (0x34), region = 67 }
  0x27   : > { %s2020_s12 = sshll.u32 %s2613_s10, 3 }
  0x28   : > { %s2293_s15 = scalar_lea.vmem %s2601_s1, %s2020_s12 }
  0x2b   : > { %v2212_v12 = vmov 0.0  }
  0x2c   : > { %431 = vst [vmem:[#allocation2 + $0x30] sm:$0xff] %v2212_v12 }
  0x2d   : > { %432 = vst [vmem:[#allocation2] sm:$0xff] %v2212_v12 }
  0x2e   : > { %433 = vst [vmem:[#allocation2 + $0x18] sm:$0xff] %v2212_v12 }
  0x2f   : > { %434 = vst [vmem:[#allocation2 + $0x10] sm:$0xff] %v2212_v12 }
  0x30   : > { %435 = vst [vmem:[#allocation2 + $0x8] sm:$0xff] %v2212_v12 }
  0x31   : > { %436 = vst [vmem:[#allocation2 + $0x20] sm:$0xff] %v2212_v12 }
  0x32   : > { %437 = vst [vmem:[#allocation2 + $0x28] sm:$0xff] %v2212_v12 }
  0x33   : > { %438 = vst [vmem:[#allocation2 + $0x38] sm:$0xff] %v2212_v12 }
  0x34 PF: > { %v1688_v13 = vld [vmem:[%s2293_s15 + $0x70] sm:$0xf]  ;;  %v2048_v14 = vld [vmem:[%s2293_s15 + $0x74] sm:$0xf0]  ;;  %v1680_v24 = vld [vmem:[%s2293_s15 + $0x60] sm:$0xf] }
  0x35   : > { %v1752_v15 = vld [vmem:[%s2293_s15 + $0xf0] sm:$0xf]  ;;  %v1689_v16 = vor.u32 %v2048_v14, %v1688_v13  ;;  %v2064_v17 = vld [vmem:[%s2293_s15 + $0xf4] sm:$0xf0]  ;;  %v2046_v26 = vld [vmem:[%s2293_s15 + $0x64] sm:$0xf0] }
  0x36   : > { %v1816_v18 = vld [vmem:[%s2293_s15 + $0x170] sm:$0xf]  ;;  %v2080_v19 = vld [vmem:[%s2293_s15 + $0x174] sm:$0xf0]  ;;  %v1753_v20 = vor.u32 %v2064_v17, %v1752_v15  ;;  %v1744_v27 = vld [vmem:[%s2293_s15 + $0xe0] sm:$0xf]  ;;  %v1681_v29 = vor.u32 %v2046_v26, %v1680_v24 }
  0x37   : > { %v1817_v21 = vor.u32 %v2080_v19, %v1816_v18  ;;  %v1880_v22 = vld [vmem:[%s2293_s15 + $0x1f0] sm:$0xf]  ;;  %v2096_v23 = vld [vmem:[%s2293_s15 + $0x1f4] sm:$0xf0]  ;;  %1095 = vmatpush.bf16.msra.mxu0 %v1689_v16  ;;  %v2062_v28 = vld [vmem:[%s2293_s15 + $0xe4] sm:$0xf0] }
  0x38   : > { %v1881_v25 = vor.u32 %v2096_v23, %v1880_v22  ;;  %1114 = vmatpush.bf16.msra.mxu1 %v1753_v20  ;;  %v1745_v30 = vor.u32 %v2062_v28, %v1744_v27  ;;  %v1808_v31 = vld [vmem:[%s2293_s15 + $0x160] sm:$0xf]  ;;  %v2078_v32 = vld [vmem:[%s2293_s15 + $0x164] sm:$0xf0]  ;;  %v1672_v36 = vld [vmem:[%s2293_s15 + $0x50] sm:$0xf] }
  0x39   : > { %1133 = vmatpush.bf16.msra.mxu2 %v1817_v21  ;;  %v1872_v33 = vld [vmem:[%s2293_s15 + $0x1e0] sm:$0xf]  ;;  %v1809_v34 = vor.u32 %v2078_v32, %v1808_v31  ;;  %v2094_v35 = vld [vmem:[%s2293_s15 + $0x1e4] sm:$0xf0]  ;;  %v2044_v37 = vld [vmem:[%s2293_s15 + $0x54] sm:$0xf0] }
  0x3a   : > { %1152 = vmatpush.bf16.msra.mxu3 %v1881_v25  ;;  %v1873_v38 = vor.u32 %v2094_v35, %v1872_v33  ;;  %v1736_v39 = vld [vmem:[%s2293_s15 + $0xd0] sm:$0xf]  ;;  %v2060_v40 = vld [vmem:[%s2293_s15 + $0xd4] sm:$0xf0]  ;;  %v1673_v42 = vor.u32 %v2044_v37, %v1672_v36  ;;  %v1664_v48 = vld [vmem:[%s2293_s15 + $0x40] sm:$0xf] }
  0x3b   : > { %v1800_v41 = vld [vmem:[%s2293_s15 + $0x150] sm:$0xf]  ;;  %1096 = vmatpush.bf16.msra.mxu0 %v1681_v29  ;;  %v2076_v43 = vld [vmem:[%s2293_s15 + $0x154] sm:$0xf0]  ;;  %v1737_v46 = vor.u32 %v2060_v40, %v1736_v39  ;;  %v2042_v49 = vld [vmem:[%s2293_s15 + $0x44] sm:$0xf0] }
  0x3c   : > { %v1864_v44 = vld [vmem:[%s2293_s15 + $0x1d0] sm:$0xf]  ;;  %v2092_v45 = vld [vmem:[%s2293_s15 + $0x1d4] sm:$0xf0]  ;;  %1115 = vmatpush.bf16.msra.mxu1 %v1745_v30  ;;  %v1801_v47 = vor.u32 %v2076_v43, %v1800_v41  ;;  %v1728_v50 = vld [vmem:[%s2293_s15 + $0xc0] sm:$0xf]  ;;  %v1665_v57 = vor.u32 %v2042_v49, %v1664_v48 }
  0x3d   : > { %1134 = vmatpush.bf16.msra.mxu2 %v1809_v34  ;;  %v1865_v51 = vor.u32 %v2092_v45, %v1864_v44  ;;  %v2058_v52 = vld [vmem:[%s2293_s15 + $0xc4] sm:$0xf0]  ;;  %v1792_v53 = vld [vmem:[%s2293_s15 + $0x140] sm:$0xf]  ;;  %v1656_v60 = vld [vmem:[%s2293_s15 + $0x30] sm:$0xf] }
  0x3e   : > { %1153 = vmatpush.bf16.msra.mxu3 %v1873_v38  ;;  %v2074_v54 = vld [vmem:[%s2293_s15 + $0x144] sm:$0xf0]  ;;  %v1856_v55 = vld [vmem:[%s2293_s15 + $0x1c0] sm:$0xf]  ;;  %v1729_v58 = vor.u32 %v2058_v52, %v1728_v50  ;;  %v2040_v61 = vld [vmem:[%s2293_s15 + $0x34] sm:$0xf0] }
  0x3f   : > { %v2090_v56 = vld [vmem:[%s2293_s15 + $0x1c4] sm:$0xf0]  ;;  %1097 = vmatpush.bf16.msra.mxu0 %v1673_v42  ;;  %v1793_v59 = vor.u32 %v2074_v54, %v1792_v53  ;;  %v1720_v62 = vld [vmem:[%s2293_s15 + $0xb0] sm:$0xf]  ;;  %v2056_v0 = vld [vmem:[%s2293_s15 + $0xb4] sm:$0xf0]  ;;  %v1657_v5 = vor.u32 %v2040_v61, %v1656_v60 }
  0x40   : > { %1116 = vmatpush.bf16.msra.mxu1 %v1737_v46  ;;  %v1857_v63 = vor.u32 %v2090_v56, %v1856_v55  ;;  %v1784_v1 = vld [vmem:[%s2293_s15 + $0x130] sm:$0xf]  ;;  %v2072_v2 = vld [vmem:[%s2293_s15 + $0x134] sm:$0xf0]  ;;  %v1721_v6 = vor.u32 %v2056_v0, %v1720_v62  ;;  %v1648_v8 = vld [vmem:[%s2293_s15 + $0x20] sm:$0xf] }
  0x41   : > { %1135 = vmatpush.bf16.msra.mxu2 %v1801_v47  ;;  %v1848_v3 = vld [vmem:[%s2293_s15 + $0x1b0] sm:$0xf]  ;;  %v2088_v4 = vld [vmem:[%s2293_s15 + $0x1b4] sm:$0xf0]  ;;  %v1785_v7 = vor.u32 %v2072_v2, %v1784_v1  ;;  %v2038_v9 = vld [vmem:[%s2293_s15 + $0x24] sm:$0xf0] }
  0x42   : > { %1154 = vmatpush.bf16.msra.mxu3 %v1865_v51  ;;  %v1712_v10 = vld [vmem:[%s2293_s15 + $0xa0] sm:$0xf]  ;;  %v1849_v11 = vor.u32 %v2088_v4, %v1848_v3  ;;  %v2054_v12 = vld [vmem:[%s2293_s15 + $0xa4] sm:$0xf0]  ;;  %v1649_v17 = vor.u32 %v2038_v9, %v1648_v8  ;;  %v1640_v20 = vld [vmem:[%s2293_s15 + $0x10] sm:$0xf] }
  0x43   : > { %1098 = vmatpush.bf16.msra.mxu0 %v1665_v57  ;;  %v1776_v13 = vld [vmem:[%s2293_s15 + $0x120] sm:$0xf]  ;;  %v2070_v14 = vld [vmem:[%s2293_s15 + $0x124] sm:$0xf0]  ;;  %v1713_v18 = vor.u32 %v2054_v12, %v1712_v10  ;;  %v2036_v21 = vld [vmem:[%s2293_s15 + $0x14] sm:$0xf0] }
  0x44   : > { %1117 = vmatpush.bf16.msra.mxu1 %v1729_v58  ;;  %v1840_v15 = vld [vmem:[%s2293_s15 + $0x1a0] sm:$0xf]  ;;  %v2086_v16 = vld [vmem:[%s2293_s15 + $0x1a4] sm:$0xf0]  ;;  %v1777_v19 = vor.u32 %v2070_v14, %v1776_v13  ;;  %v1704_v22 = vld [vmem:[%s2293_s15 + $0x90] sm:$0xf]  ;;  %v1641_v30 = vor.u32 %v2036_v21, %v1640_v20 }
  0x45   : > { %1136 = vmatpush.bf16.msra.mxu2 %v1793_v59  ;;  %v1841_v23 = vor.u32 %v2086_v16, %v1840_v15  ;;  %v2052_v24 = vld [vmem:[%s2293_s15 + $0x94] sm:$0xf0]  ;;  %v1768_v25 = vld [vmem:[%s2293_s15 + $0x110] sm:$0xf]  ;;  %v1632_v29 = vld [vmem:[%s2293_s15] sm:$0xf] }
  0x46   : > { %1155 = vmatpush.bf16.msra.mxu3 %v1857_v63  ;;  %v2068_v26 = vld [vmem:[%s2293_s15 + $0x114] sm:$0xf0]  ;;  %v1832_v27 = vld [vmem:[%s2293_s15 + $0x190] sm:$0xf]  ;;  %v2034_v31 = vld [vmem:[%s2293_s15 + $0x4] sm:$0xf0]  ;;  %v1705_v34 = vor.u32 %v2052_v24, %v1704_v22 }
  0x47   : > { %1099 = vmatpush.bf16.msra.mxu0 %v1657_v5  ;;  %v2084_v28 = vld [vmem:[%s2293_s15 + $0x194] sm:$0xf0]  ;;  %v1696_v32 = vld [vmem:[%s2293_s15 + $0x80] sm:$0xf]  ;;  %v2050_v33 = vld [vmem:[%s2293_s15 + $0x84] sm:$0xf0]  ;;  %v1769_v35 = vor.u32 %v2068_v26, %v1768_v25  ;;  %v1633_v47 = vor.u32 %v2034_v31, %v1632_v29 }
  0x48   : > { %1118 = vmatpush.bf16.msra.mxu1 %v1721_v6  ;;  %v1760_v36 = vld [vmem:[%s2293_s15 + $0x100] sm:$0xf]  ;;  %v2066_v37 = vld [vmem:[%s2293_s15 + $0x104] sm:$0xf0]  ;;  %v1833_v39 = vor.u32 %v2084_v28, %v1832_v27  ;;  %v2024_v42 = vld [vmem:[%s2295_s16 + $0x14] sm:$0xf0]  ;;  %v1697_v51 = vor.u32 %v2050_v33, %v1696_v32 }
  0x49   : > { %1137 = vmatpush.bf16.msra.mxu2 %v1785_v7  ;;  %v1824_v38 = vld [vmem:[%s2293_s15 + $0x180] sm:$0xf]  ;;  %v2082_v40 = vld [vmem:[%s2293_s15 + $0x184] sm:$0xf0]  ;;  %v2021_v43 = vld [vmem:[%s2295_s16 + $0x4] sm:$0xf]  ;;  %v1761_v52 = vor.u32 %v2066_v37, %v1760_v36 }
  0x4a   : > { %1156 = vmatpush.bf16.msra.mxu3 %v1849_v11  ;;  %v1584_v41 = vld [vmem:[%s2295_s16] sm:$0xf]  ;;  %v1586_v44 = vld [vmem:[%s2295_s16 + $0x18] sm:$0xf0]  ;;  %v2047_v45 = vld [vmem:[%s2293_s15 + $0x74] sm:$0xf]  ;;  %v1825_v56 = vor.u32 %v2082_v40, %v1824_v38 }
  0x4b   : > { %1100 = vmatpush.bf16.msra.mxu0 %v1649_v17  ;;  %v1690_v46 = vld [vmem:[%s2293_s15 + $0x78] sm:$0xf0]  ;;  %v1592_v48 = vld [vmem:[%s2295_s16 + $0x8] sm:$0xf]  ;;  %v2008_v49 = vld [vmem:[%s2293_s15 + $0x2f0] sm:$0xf]  ;;  %v2377_v61 = vor.u32 %v2024_v42, %v1584_v41  ;;  %v2382_v2 = vor.u32 %v2021_v43, %v1586_v44 }
  0x4c   : > { %1119 = vmatpush.bf16.msra.mxu1 %v1713_v18  ;;  %v2128_v50 = vld [vmem:[%s2293_s15 + $0x2f4] sm:$0xf0]  ;;  %v2025_v53 = vld [vmem:[%s2295_s16 + $0x1c] sm:$0xf0]  ;;  %v2022_v54 = vld [vmem:[%s2295_s16 + $0xc] sm:$0xf]  ;;  %v1693_v57 = vor.u32 %v2047_v45, %v1690_v46 }
  0x4d   : > { %1138 = vmatpush.bf16.msra.mxu2 %v1777_v19  ;;  %v1594_v55 = vld [vmem:[%s2295_s16 + $0x20] sm:$0xf0]  ;;  %v1944_v58 = vld [vmem:[%s2293_s15 + $0x270] sm:$0xf]  ;;  %v2112_v59 = vld [vmem:[%s2293_s15 + $0x274] sm:$0xf0]  ;;  %v2009_v62 = vor.u32 %v2128_v50, %v2008_v49  ;;  %v2384_v3 = vor.u32 %v2025_v53, %v1592_v48 }
  0x4e   : > { %1157 = vmatpush.bf16.msra.mxu3 %v1841_v23  ;;  %v2063_v60 = vld [vmem:[%s2293_s15 + $0xf4] sm:$0xf]  ;;  %v1754_v63 = vld [vmem:[%s2293_s15 + $0xf8] sm:$0xf0]  ;;  %v2045_v0 = vld [vmem:[%s2293_s15 + $0x64] sm:$0xf]  ;;  %v2388_v6 = vor.u32 %v2022_v54, %v1594_v55  ;;  %v1945_v7 = vor.u32 %v2112_v59, %v1944_v58 }
  0x4f   : > { %1101 = vmatpush.bf16.msra.mxu0 %v1641_v30  ;;  %v1682_v1 = vld [vmem:[%s2293_s15 + $0x68] sm:$0xf0]  ;;  %v2000_v4 = vld [vmem:[%s2293_s15 + $0x2e0] sm:$0xf]  ;;  %v2126_v5 = vld [vmem:[%s2293_s15 + $0x2e4] sm:$0xf0]  ;;  %v1757_v8 = vor.u32 %v2063_v60, %v1754_v63 }
  0x50   : > { %1120 = vmatpush.bf16.msra.mxu1 %v1705_v34  ;;  %v1685_v9 = vor.u32 %v2045_v0, %v1682_v1  ;;  %v1936_v10 = vld [vmem:[%s2293_s15 + $0x260] sm:$0xf]  ;;  %v2110_v11 = vld [vmem:[%s2293_s15 + $0x264] sm:$0xf0]  ;;  %v2061_v12 = vld [vmem:[%s2293_s15 + $0xe4] sm:$0xf]  ;;  %v2001_v13 = vor.u32 %v2126_v5, %v2000_v4 }
  0x51   : > { %1139 = vmatpush.bf16.msra.mxu2 %v1769_v35  ;;  %v1746_v14 = vld [vmem:[%s2293_s15 + $0xe8] sm:$0xf0]  ;;  %v2043_v15 = vld [vmem:[%s2293_s15 + $0x54] sm:$0xf]  ;;  %v1674_v16 = vld [vmem:[%s2293_s15 + $0x58] sm:$0xf0]  ;;  %v1937_v19 = vor.u32 %v2110_v11, %v1936_v10 }
  0x52   : > { %1158 = vmatpush.bf16.msra.mxu3 %v1833_v39  ;;  %v1992_v17 = vld [vmem:[%s2293_s15 + $0x2d0] sm:$0xf]  ;;  %v2124_v18 = vld [vmem:[%s2293_s15 + $0x2d4] sm:$0xf0]  ;;  %v1749_v20 = vor.u32 %v2061_v12, %v1746_v14  ;;  %v1677_v21 = vor.u32 %v2043_v15, %v1674_v16  ;;  %v2059_v24 = vld [vmem:[%s2293_s15 + $0xd4] sm:$0xf] }
  0x53   : > { %1102 = vmatpush.bf16.msra.mxu0 %v1633_v47  ;;  %v1928_v22 = vld [vmem:[%s2293_s15 + $0x250] sm:$0xf]  ;;  %v2108_v23 = vld [vmem:[%s2293_s15 + $0x254] sm:$0xf0]  ;;  %v1993_v25 = vor.u32 %v2124_v18, %v1992_v17  ;;  %v1738_v26 = vld [vmem:[%s2293_s15 + $0xd8] sm:$0xf0] }
  0x54   : > { %1121 = vmatpush.bf16.msra.mxu1 %v1697_v51  ;;  %v2041_v27 = vld [vmem:[%s2293_s15 + $0x44] sm:$0xf]  ;;  %v1666_v28 = vld [vmem:[%s2293_s15 + $0x48] sm:$0xf0]  ;;  %v1984_v29 = vld [vmem:[%s2293_s15 + $0x2c0] sm:$0xf]  ;;  %v1929_v31 = vor.u32 %v2108_v23, %v1928_v22  ;;  %v1741_v35 = vor.u32 %v2059_v24, %v1738_v26 }
  0x55   : > { %1140 = vmatpush.bf16.msra.mxu2 %v1761_v52  ;;  %v2122_v30 = vld [vmem:[%s2293_s15 + $0x2c4] sm:$0xf0]  ;;  %v1920_v32 = vld [vmem:[%s2293_s15 + $0x240] sm:$0xf]  ;;  %v2057_v34 = vld [vmem:[%s2293_s15 + $0xc4] sm:$0xf]  ;;  %v1669_v36 = vor.u32 %v2041_v27, %v1666_v28 }
  0x56   : > { %1159 = vmatpush.bf16.msra.mxu3 %v1825_v56  ;;  %1103 = vmatmul.bf16.vlgmr.msra.gmra.mxu0 %v2377_v61  ;;  %v2106_v33 = vld [vmem:[%s2293_s15 + $0x244] sm:$0xf0]  ;;  %v1730_v37 = vld [vmem:[%s2293_s15 + $0xc8] sm:$0xf0]  ;;  %v1608_v38 = vld [vmem:[%s2295_s16 + $0x30] sm:$0xf]  ;;  %v1985_v40 = vor.u32 %v2122_v30, %v1984_v29 }
  0x57   : > { %1122 = vmatmul.bf16.vlgmr.msra.gmra.mxu1 %v2382_v2  ;;  %1171 = vmatpush.bf16.msrb.mxu0 %v1945_v7  ;;  %v2030_v39 = vld [vmem:[%s2295_s16 + $0x44] sm:$0xf0]  ;;  %v2027_v41 = vld [vmem:[%s2295_s16 + $0x34] sm:$0xf]  ;;  %v1610_v42 = vld [vmem:[%s2295_s16 + $0x48] sm:$0xf0]  ;;  %v1921_v48 = vor.u32 %v2106_v33, %v1920_v32  ;;  %v1733_v52 = vor.u32 %v2057_v34, %v1730_v37 }
  0x58   : > { %1190 = vmatpush.bf16.msrb.mxu1 %v2009_v62  ;;  %1141 = vmatmul.bf16.vlgmr.msra.gmra.mxu2 %v2384_v3  ;;  %v2039_v43 = vld [vmem:[%s2293_s15 + $0x34] sm:$0xf]  ;;  %v1658_v44 = vld [vmem:[%s2293_s15 + $0x38] sm:$0xf0]  ;;  %v1616_v45 = vld [vmem:[%s2295_s16 + $0x38] sm:$0xf]  ;;  %v2434_v63 = vor.u32 %v2027_v41, %v1610_v42 }
  0x59   : > { %1209 = vmatpush.bf16.msrb.mxu2 %v1693_v57  ;;  %1160 = vmatmul.bf16.vlgmr.msra.gmra.mxu3 %v2388_v6  ;;  %v1976_v46 = vld [vmem:[%s2293_s15 + $0x2b0] sm:$0xf]  ;;  %v2120_v47 = vld [vmem:[%s2293_s15 + $0x2b4] sm:$0xf0]  ;;  %v2028_v50 = vld [vmem:[%s2295_s16 + $0x3c] sm:$0xf]  ;;  %v1661_v53 = vor.u32 %v2039_v43, %v1658_v44  ;;  %v2429_v57 = vor.u32 %v2030_v39, %v1608_v38 }
  0x5a   : > { %1228 = vmatpush.bf16.msrb.mxu3 %v1757_v8  ;;  %v2031_v49 = vld [vmem:[%s2295_s16 + $0x4c] sm:$0xf0]  ;;  %v1618_v51 = vld [vmem:[%s2295_s16 + $0x50] sm:$0xf0]  ;;  %v2104_v55 = vld [vmem:[%s2293_s15 + $0x234] sm:$0xf0]  ;;  %v1977_v58 = vor.u32 %v2120_v47, %v1976_v46 }
  0x5b   : > { %1172 = vmatpush.bf16.msrb.mxu0 %v1937_v19  ;;  %v1912_v54 = vld [vmem:[%s2293_s15 + $0x230] sm:$0xf]  ;;  %v2055_v56 = vld [vmem:[%s2293_s15 + $0xb4] sm:$0xf]  ;;  %v1722_v59 = vld [vmem:[%s2293_s15 + $0xb8] sm:$0xf0]  ;;  %v2436_v0 = vor.u32 %v2031_v49, %v1616_v45  ;;  %v2440_v5 = vor.u32 %v2028_v50, %v1618_v51 }
  0x5c   : > { %1191 = vmatpush.bf16.msrb.mxu1 %v2001_v13  ;;  %v2037_v60 = vld [vmem:[%s2293_s15 + $0x24] sm:$0xf]  ;;  %v1650_v62 = vld [vmem:[%s2293_s15 + $0x28] sm:$0xf0]  ;;  %v1968_v1 = vld [vmem:[%s2293_s15 + $0x2a0] sm:$0xf]  ;;  %v1913_v7 = vor.u32 %v2104_v55, %v1912_v54  ;;  %v1725_v8 = vor.u32 %v2055_v56, %v1722_v59 }
  0x5d   : > { %1210 = vmatpush.bf16.msrb.mxu2 %v1685_v9  ;;  %v2118_v4 = vld [vmem:[%s2293_s15 + $0x2a4] sm:$0xf0]  ;;  %v1653_v9 = vor.u32 %v2037_v60, %v1650_v62  ;;  %v1904_v10 = vld [vmem:[%s2293_s15 + $0x220] sm:$0xf]  ;;  %v2053_v12 = vld [vmem:[%s2293_s15 + $0xa4] sm:$0xf] }
  0x5e   : > { %1229 = vmatpush.bf16.msrb.mxu3 %v1749_v20  ;;  %v2102_v11 = vld [vmem:[%s2293_s15 + $0x224] sm:$0xf0]  ;;  %v1969_v13 = vor.u32 %v2118_v4, %v1968_v1  ;;  %v1714_v14 = vld [vmem:[%s2293_s15 + $0xa8] sm:$0xf0]  ;;  %v2035_v15 = vld [vmem:[%s2293_s15 + $0x14] sm:$0xf] }
  0x5f   : > { %1173 = vmatpush.bf16.msrb.mxu0 %v1929_v31  ;;  %v1642_v16 = vld [vmem:[%s2293_s15 + $0x18] sm:$0xf0]  ;;  %v1960_v17 = vld [vmem:[%s2293_s15 + $0x290] sm:$0xf]  ;;  %v2116_v18 = vld [vmem:[%s2293_s15 + $0x294] sm:$0xf0]  ;;  %v1905_v19 = vor.u32 %v2102_v11, %v1904_v10 }
  0x60   : > { %1192 = vmatpush.bf16.msrb.mxu1 %v1993_v25  ;;  %v1896_v20 = vld [vmem:[%s2293_s15 + $0x210] sm:$0xf]  ;;  %v1645_v22 = vor.u32 %v2035_v15, %v1642_v16  ;;  %v2100_v23 = vld [vmem:[%s2293_s15 + $0x214] sm:$0xf0]  ;;  %v2051_v24 = vld [vmem:[%s2293_s15 + $0x94] sm:$0xf]  ;;  %v1961_v26 = vor.u32 %v2116_v18, %v1960_v17 }
  0x61   : > { %1211 = vmatpush.bf16.msrb.mxu2 %v1677_v21  ;;  %v1717_v21 = vor.u32 %v2053_v12, %v1714_v14  ;;  %v1706_v25 = vld [vmem:[%s2293_s15 + $0x98] sm:$0xf0]  ;;  %v2033_v27 = vld [vmem:[%s2293_s15 + $0x4] sm:$0xf]  ;;  %v1634_v28 = vld [vmem:[%s2293_s15 + $0x8] sm:$0xf0]  ;;  %v1897_v33 = vor.u32 %v2100_v23, %v1896_v20 }
  0x62   : > { %1230 = vmatpush.bf16.msrb.mxu3 %v1741_v35  ;;  %v1952_v29 = vld [vmem:[%s2293_s15 + $0x280] sm:$0xf]  ;;  %v2114_v30 = vld [vmem:[%s2293_s15 + $0x284] sm:$0xf0]  ;;  %v2111_v31 = vld [vmem:[%s2293_s15 + $0x274] sm:$0xf]  ;;  %v1709_v37 = vor.u32 %v2051_v24, %v1706_v25  ;;  %v1637_v38 = vor.u32 %v2033_v27, %v1634_v28 }
  0x63   : > { %1174 = vmatpush.bf16.msrb.mxu0 %v1921_v48  ;;  %v1946_v32 = vld [vmem:[%s2293_s15 + $0x278] sm:$0xf0]  ;;  %v1888_v34 = vld [vmem:[%s2293_s15 + $0x200] sm:$0xf]  ;;  %v2095_v35 = vld [vmem:[%s2293_s15 + $0x1f4] sm:$0xf]  ;;  %v1953_v42 = vor.u32 %v2114_v30, %v1952_v29 }
  0x64   : > { %1193 = vmatpush.bf16.msrb.mxu1 %v1985_v40  ;;  %v2098_v39 = vld [vmem:[%s2293_s15 + $0x204] sm:$0xf0]  ;;  %v2049_v40 = vld [vmem:[%s2293_s15 + $0x84] sm:$0xf]  ;;  %v1698_v41 = vld [vmem:[%s2293_s15 + $0x88] sm:$0xf0]  ;;  %v1949_v44 = vor.u32 %v2111_v31, %v1946_v32 }
  0x65   : > { %1212 = vmatpush.bf16.msrb.mxu2 %v1669_v36  ;;  %v1882_v36 = vld [vmem:[%s2293_s15 + $0x1f8] sm:$0xf0]  ;;  %v1600_v43 = vld [vmem:[%s2295_s16 + $0x10] sm:$0xf]  ;;  %v2079_v45 = vld [vmem:[%s2293_s15 + $0x174] sm:$0xf]  ;;  %v1701_v56 = vor.u32 %v2049_v40, %v1698_v41 }
  0x66   : > { %1231 = vmatpush.bf16.msrb.mxu3 %v1733_v52  ;;  %1108 = vmatmul.bf16.gmra.mxu0 %v2429_v57  ;;  %v1818_v46 = vld [vmem:[%s2293_s15 + $0x178] sm:$0xf0]  ;;  %v2127_v47 = vld [vmem:[%s2293_s15 + $0x2f4] sm:$0xf]  ;;  %v1885_v48 = vor.u32 %v2095_v35, %v1882_v36  ;;  %v2109_v50 = vld [vmem:[%s2293_s15 + $0x264] sm:$0xf]  ;;  %v1889_v52 = vor.u32 %v2098_v39, %v1888_v34 }
  0x67   : > { %1127 = vmatmul.bf16.gmra.mxu1 %v2434_v63  ;;  %1175 = vmatpush.bf16.msrb.mxu0 %v1913_v7  ;;  %v2010_v49 = vld [vmem:[%s2293_s15 + $0x2f8] sm:$0xf0]  ;;  %v1938_v51 = vld [vmem:[%s2293_s15 + $0x268] sm:$0xf0]  ;;  %v2023_v54 = vld [vmem:[%s2295_s16 + $0x14] sm:$0xf] }
  0x68   : > { %1194 = vmatpush.bf16.msrb.mxu1 %v1977_v58  ;;  %1146 = vmatmul.bf16.gmra.mxu2 %v2436_v0  ;;  %v1602_v55 = vld [vmem:[%s2295_s16 + $0x28] sm:$0xf0]  ;;  %v1821_v58 = vor.u32 %v2079_v45, %v1818_v46  ;;  %v2077_v59 = vld [vmem:[%s2293_s15 + $0x164] sm:$0xf]  ;;  %v2013_v62 = vor.u32 %v2127_v47, %v2010_v49  ;;  %v1941_v1 = vor.u32 %v2109_v50, %v1938_v51  ;;  %v2107_v12 = vld [vmem:[%s2293_s15 + $0x254] sm:$0xf] }
  0x69   : > { %1213 = vmatpush.bf16.msrb.mxu2 %v1661_v53  ;;  %1165 = vmatmul.bf16.gmra.mxu3 %v2440_v5  ;;  %v2026_v53 = vld [vmem:[%s2295_s16 + $0x24] sm:$0xf0]  ;;  %v1810_v60 = vld [vmem:[%s2293_s15 + $0x168] sm:$0xf0]  ;;  %v2093_v4 = vld [vmem:[%s2293_s15 + $0x1e4] sm:$0xf]  ;;  %v2487_v10 = vor.u32 %v2023_v54, %v1602_v55 }
  0x6a   : > { %1232 = vmatpush.bf16.msrb.mxu3 %v1725_v8  ;;  %v1874_v7 = vld [vmem:[%s2293_s15 + $0x1e8] sm:$0xf0]  ;;  %v2125_v8 = vld [vmem:[%s2293_s15 + $0x2e4] sm:$0xf]  ;;  %v1813_v14 = vor.u32 %v2077_v59, %v1810_v60  ;;  %v2075_v16 = vld [vmem:[%s2293_s15 + $0x154] sm:$0xf] }
  0x6b   : > { %1176 = vmatpush.bf16.msrb.mxu0 %v1905_v19  ;;  %v2002_v11 = vld [vmem:[%s2293_s15 + $0x2e8] sm:$0xf0]  ;;  %v1877_v15 = vor.u32 %v2093_v4, %v1874_v7  ;;  %v1802_v17 = vld [vmem:[%s2293_s15 + $0x158] sm:$0xf0]  ;;  %v2091_v20 = vld [vmem:[%s2293_s15 + $0x1d4] sm:$0xf] }
  0x6c   : > { %1195 = vmatpush.bf16.msrb.mxu1 %v1969_v13  ;;  %v1930_v13 = vld [vmem:[%s2293_s15 + $0x258] sm:$0xf0]  ;;  %v2005_v18 = vor.u32 %v2125_v8, %v2002_v11  ;;  %v2105_v24 = vld [vmem:[%s2293_s15 + $0x244] sm:$0xf]  ;;  %v1922_v25 = vld [vmem:[%s2293_s15 + $0x248] sm:$0xf0] }
  0x6d   : > { %1214 = vmatpush.bf16.msrb.mxu2 %v1653_v9  ;;  %v2485_v9 = vor.u32 %v2026_v53, %v1600_v43  ;;  %v1933_v19 = vor.u32 %v2107_v12, %v1930_v13  ;;  %v1994_v23 = vld [vmem:[%s2293_s15 + $0x2d8] sm:$0xf0]  ;;  %v2073_v28 = vld [vmem:[%s2293_s15 + $0x144] sm:$0xf]  ;;  %v1794_v29 = vld [vmem:[%s2293_s15 + $0x148] sm:$0xf0]  ;;  %v1925_v31 = vor.u32 %v2105_v24, %v1922_v25 }
  0x6e   : > { %1233 = vmatpush.bf16.msrb.mxu3 %v1717_v21  ;;  %v1866_v21 = vld [vmem:[%s2293_s15 + $0x1d8] sm:$0xf0]  ;;  %v2089_v32 = vld [vmem:[%s2293_s15 + $0x1c4] sm:$0xf]  ;;  %v2103_v34 = vld [vmem:[%s2293_s15 + $0x234] sm:$0xf]  ;;  %v1797_v36 = vor.u32 %v2073_v28, %v1794_v29 }
  0x6f   : > { %1177 = vmatpush.bf16.msrb.mxu0 %v1897_v33  ;;  %v1869_v27 = vor.u32 %v2091_v20, %v1866_v21  ;;  %v1858_v33 = vld [vmem:[%s2293_s15 + $0x1c8] sm:$0xf0]  ;;  %v1914_v35 = vld [vmem:[%s2293_s15 + $0x238] sm:$0xf0]  ;;  %v1624_v41 = vld [vmem:[%s2295_s16 + $0x40] sm:$0xf] }
  0x70   : > { %1196 = vmatpush.bf16.msrb.mxu1 %v1961_v26  ;;  %v1805_v26 = vor.u32 %v2075_v16, %v1802_v17  ;;  %v1786_v39 = vld [vmem:[%s2293_s15 + $0x138] sm:$0xf0]  ;;  %v2087_v43 = vld [vmem:[%s2293_s15 + $0x1b4] sm:$0xf]  ;;  %v2101_v47 = vld [vmem:[%s2293_s15 + $0x224] sm:$0xf] }
  0x71   : > { %1215 = vmatpush.bf16.msrb.mxu2 %v1645_v22  ;;  %v2123_v22 = vld [vmem:[%s2293_s15 + $0x2d4] sm:$0xf]  ;;  %v1978_v46 = vld [vmem:[%s2293_s15 + $0x2b8] sm:$0xf0]  ;;  %v2032_v49 = vld [vmem:[%s2295_s16 + $0x54] sm:$0xf0] }
  0x72   : > { %1234 = vmatpush.bf16.msrb.mxu3 %v1709_v37  ;;  %v1997_v30 = vor.u32 %v2123_v22, %v1994_v23  ;;  %v1861_v37 = vor.u32 %v2089_v32, %v1858_v33  ;;  %v2119_v45 = vld [vmem:[%s2293_s15 + $0x2b4] sm:$0xf]  ;;  %v2029_v50 = vld [vmem:[%s2295_s16 + $0x44] sm:$0xf]  ;;  %v1626_v51 = vld [vmem:[%s2295_s16 + $0x58] sm:$0xf0] }
  0x73   : > { %1178 = vmatpush.bf16.msrb.mxu0 %v1889_v52  ;;  %v2069_v54 = vld [vmem:[%s2293_s15 + $0x124] sm:$0xf]  ;;  %v1778_v55 = vld [vmem:[%s2293_s15 + $0x128] sm:$0xf0]  ;;  %v1629_v4 = vor.u32 %v2029_v50, %v1626_v51  ;;  %v2099_v8 = vld [vmem:[%s2293_s15 + $0x214] sm:$0xf] }
  0x74   : > { %1197 = vmatpush.bf16.msrb.mxu1 %v1953_v42  ;;  %v1917_v42 = vor.u32 %v2103_v34, %v1914_v35  ;;  %v2085_v59 = vld [vmem:[%s2293_s15 + $0x1a4] sm:$0xf]  ;;  %v1842_v60 = vld [vmem:[%s2293_s15 + $0x1a8] sm:$0xf0]  ;;  %v1898_v11 = vld [vmem:[%s2293_s15 + $0x218] sm:$0xf0]  ;;  %v1781_v12 = vor.u32 %v2069_v54, %v1778_v55 }
  0x75   : > { %1216 = vmatpush.bf16.msrb.mxu2 %v1637_v38  ;;  %v2071_v38 = vld [vmem:[%s2293_s15 + $0x134] sm:$0xf]  ;;  %v1970_v7 = vld [vmem:[%s2293_s15 + $0x2a8] sm:$0xf0]  ;;  %v1845_v13 = vor.u32 %v2085_v59, %v1842_v60  ;;  %v1901_v17 = vor.u32 %v2099_v8, %v1898_v11  ;;  %v1962_v21 = vld [vmem:[%s2293_s15 + $0x298] sm:$0xf0] }
  0x76   : > { %1235 = vmatpush.bf16.msrb.mxu3 %v1701_v56  ;;  %1179 = vmatmul.bf16.vlgmr.msrb.gmra.mxu0 %v2485_v9  ;;  %v1789_v52 = vor.u32 %v2071_v38, %v1786_v39  ;;  %v1981_v56 = vor.u32 %v2119_v45, %v1978_v46  ;;  %v2115_v20 = vld [vmem:[%s2293_s15 + $0x294] sm:$0xf]  ;;  %v2097_v22 = vld [vmem:[%s2293_s15 + $0x204] sm:$0xf]  ;;  %v1890_v23 = vld [vmem:[%s2293_s15 + $0x208] sm:$0xf0] }
  0x77   : > { %1247 = vmatpush.bf16.msra.mxu0 %v1821_v58  ;;  %1198 = vmatmul.bf16.vlgmr.msrb.gmra.mxu1 %v2487_v10  ;;  %v1893_v28 = vor.u32 %v2097_v22, %v1890_v23  ;;  %v1762_v29 = vld [vmem:[%s2293_s15 + $0x108] sm:$0xf0]  ;;  %v2113_v32 = vld [vmem:[%s2293_s15 + $0x284] sm:$0xf]  ;;  %v439_v50 = vld [vmem:[#allocation2 + $0x30] sm:$0xff]  ;;  %p2014_p11 = scmp.ne.s32.totalorder %s2202_s20, 2 }
  0x78   : > { %1266 = vmatpush.bf16.msra.mxu1 %v1885_v48  ;;  %1217 = vmatmul.bf16.vlgmr.msrb.gmra.mxu2 %v2377_v61  ;;  %v2121_v61 = vld [vmem:[%s2293_s15 + $0x2c4] sm:$0xf]  ;;  %v1906_v48 = vld [vmem:[%s2293_s15 + $0x228] sm:$0xf0] }
  0x79   : > { %1285 = vmatpush.bf16.msra.mxu2 %v1949_v44  ;;  %1236 = vmatmul.bf16.vlgmr.msrb.gmra.mxu3 %v2382_v2  ;;  %v1986_v2 = vld [vmem:[%s2293_s15 + $0x2c8] sm:$0xf0]  ;;  %v1850_v44 = vld [vmem:[%s2293_s15 + $0x1b8] sm:$0xf0]  ;;  %v1909_v58 = vor.u32 %v2101_v47, %v1906_v48 }
  0x7a   : > { %1304 = vmatpush.bf16.msra.mxu3 %v2013_v62  ;;  %v1989_v40 = vor.u32 %v2121_v61, %v1986_v2  ;;  %v1853_v53 = vor.u32 %v2087_v43, %v1850_v44  ;;  %v2117_v62 = vld [vmem:[%s2293_s15 + $0x2a4] sm:$0xf]  ;;  %v1954_v33 = vld [vmem:[%s2293_s15 + $0x288] sm:$0xf0] }
  0x7b   : > { %1248 = vmatpush.bf16.msra.mxu0 %v1813_v14  ;;  %v2067_v14 = vld [vmem:[%s2293_s15 + $0x114] sm:$0xf]  ;;  %v1973_v16 = vor.u32 %v2117_v62, %v1970_v7 }
  0x7c   : > { %1267 = vmatpush.bf16.msra.mxu1 %v1877_v15  ;;  %v1770_v15 = vld [vmem:[%s2293_s15 + $0x118] sm:$0xf0] }
  0x7d   : > { %1286 = vmatpush.bf16.msra.mxu2 %v1941_v1  ;;  %v1625_v1 = vor.u32 %v2032_v49, %v1624_v41  ;;  %v1773_v24 = vor.u32 %v2067_v14, %v1770_v15 }
  0x7e   : > { %1305 = vmatpush.bf16.msra.mxu3 %v2005_v18  ;;  %v2083_v18 = vld [vmem:[%s2293_s15 + $0x194] sm:$0xf] }
  0x7f   : > { %1249 = vmatpush.bf16.msra.mxu0 %v1805_v26  ;;  %v2065_v26 = vld [vmem:[%s2293_s15 + $0x104] sm:$0xf] }
  0x80   : > { %1268 = vmatpush.bf16.msra.mxu1 %v1869_v27  ;;  %v1965_v27 = vor.u32 %v2115_v20, %v1962_v21  ;;  %v1765_v61 = vor.u32 %v2065_v26, %v1762_v29 }
  0x81   : > { %1287 = vmatpush.bf16.msra.mxu2 %v1933_v19  ;;  %v1834_v19 = vld [vmem:[%s2293_s15 + $0x198] sm:$0xf0] }
  0x82   : > { %1306 = vmatpush.bf16.msra.mxu3 %v1997_v30  ;;  %v1837_v25 = vor.u32 %v2083_v18, %v1834_v19  ;;  %v2081_v30 = vld [vmem:[%s2293_s15 + $0x184] sm:$0xf]  ;;  %v443_v18 = vld [vmem:[#allocation2 + $0x8] sm:$0xff] }
  0x83   : > { %1250 = vmatpush.bf16.msra.mxu0 %v1797_v36 }
  0x84   : > { %1269 = vmatpush.bf16.msra.mxu1 %v1861_v37 }
  0x85   : > { %1288 = vmatpush.bf16.msra.mxu2 %v1925_v31  ;;  %v1826_v31 = vld [vmem:[%s2293_s15 + $0x188] sm:$0xf0] }
  0x86   : > { %1307 = vmatpush.bf16.msra.mxu3 %v1989_v40  ;;  %1184 = vmatmul.bf16.gmra.mxu0 %v1625_v1 }
  0x87   : > { %1251 = vmatpush.bf16.msra.mxu0 %v1789_v52  ;;  %1203 = vmatmul.bf16.gmra.mxu1 %v1629_v4 }
  0x88   : > { %1270 = vmatpush.bf16.msra.mxu1 %v1853_v53  ;;  %1222 = vmatmul.bf16.gmra.mxu2 %v2429_v57  ;;  %v1829_v57 = vor.u32 %v2081_v30, %v1826_v31 }
  0x89   : > { %1289 = vmatpush.bf16.msra.mxu2 %v1917_v42  ;;  %1241 = vmatmul.bf16.gmra.mxu3 %v2434_v63  ;;  %v1957_v63 = vor.u32 %v2113_v32, %v1954_v33 }
  0x8a   : > { %1308 = vmatpush.bf16.msra.mxu3 %v1981_v56 }
  0x8b   : > { %1252 = vmatpush.bf16.msra.mxu0 %v1781_v12 }
  0x8c   : > { %1271 = vmatpush.bf16.msra.mxu1 %v1845_v13 }
  0x8d   : > { %1290 = vmatpush.bf16.msra.mxu2 %v1909_v58 }
  0x8e   : > { %1309 = vmatpush.bf16.msra.mxu3 %v1973_v16 }
  0x8f   : > { %1253 = vmatpush.bf16.msra.mxu0 %v1773_v24 }
  0x90   : > { %1272 = vmatpush.bf16.msra.mxu1 %v1837_v25 }
  0x91   : > { %1291 = vmatpush.bf16.msra.mxu2 %v1901_v17 }
  0x92   : > { %1310 = vmatpush.bf16.msra.mxu3 %v1965_v27 }
  0x93   : > { %1254 = vmatpush.bf16.msra.mxu0 %v1765_v61 }
  0x94   : > { %1273 = vmatpush.bf16.msra.mxu1 %v1829_v57 }
  0x95   : > { %1292 = vmatpush.bf16.msra.mxu2 %v1893_v28  ;;  %v445_v28 = vld [vmem:[#allocation2 + $0x28] sm:$0xff] }
  0x96   : > { %1311 = vmatpush.bf16.msra.mxu3 %v1957_v63  ;;  %1255 = vmatmul.bf16.vlgmr.msra.gmra.mxu0 %v2384_v3 }
  0x97   : > { %1274 = vmatmul.bf16.vlgmr.msra.gmra.mxu1 %v2388_v6 }
  0x98   : > { %1293 = vmatmul.bf16.vlgmr.msra.gmra.mxu2 %v2485_v9 }
  0x99   : > { %1312 = vmatmul.bf16.vlgmr.msra.gmra.mxu3 %v2487_v10 }
  0xa6   : > { %1260 = vmatmul.bf16.gmra.mxu0 %v2436_v0 }
  0xa7   : > { %1279 = vmatmul.bf16.gmra.mxu1 %v2440_v5 }
  0xa8   : > { %1298 = vmatmul.bf16.gmra.mxu2 %v1625_v1  ;;  %v441_v1 = vld [vmem:[#allocation2 + $0x18] sm:$0xff] }
  0xa9   : > { %1317 = vmatmul.bf16.gmra.mxu3 %v1629_v4 }
  0xd3   : > { %v1104_v2 = vpop.f32.mrf.mxu0 }
  0xd4   : > { %v1123_v34 = vpop.f32.mrf.mxu1 }
  0xd5   : > { %v1124_v43 = vadd.f32 %v1123_v34, %v1104_v2 }
  0xdb   : > { %v1142_v35 = vpop.f32.mrf.mxu2  ;;  %v1106_v37 = vpop.f32.mrf.mxu0 }
  0xdc   : > { %v1161_v36 = vpop.f32.mrf.mxu3  ;;  %v1125_v38 = vpop.f32.mrf.mxu1  ;;  %v1143_v0 = vadd.f32 %v1142_v35, %v1124_v43 }
  0xdd   : > { %v1126_v48 = vadd.f32 %v1125_v38, %v1106_v37 }
  0xde   : > { %v1162_v5 = vadd.f32 %v1161_v36, %v1143_v0 }
  0xe3   : > { %v1144_v39 = vpop.f32.mrf.mxu2  ;;  %v1109_v40 = vpop.f32.mrf.mxu0 }
  0xe4   : > { %v1163_v3 = vpop.f32.mrf.mxu3  ;;  %v1128_v6 = vpop.f32.mrf.mxu1  ;;  %v1145_v51 = vadd.f32 %v1144_v39, %v1126_v48  ;;  %v440_v39 = vld [vmem:[#allocation2] sm:$0xff] }
  0xe5   : > { %v1129_v60 = vadd.f32 %v1128_v6, %v1109_v40 }
  0xe6   : > { %v1164_v54 = vadd.f32 %v1163_v3, %v1145_v51 }
  0xeb   : > { %v1147_v41 = vpop.f32.mrf.mxu2  ;;  %v1111_v42 = vpop.f32.mrf.mxu0 }
  0xec   : > { %v1166_v9 = vpop.f32.mrf.mxu3  ;;  %v1130_v10 = vpop.f32.mrf.mxu1  ;;  %v1148_v4 = vadd.f32 %v1147_v41, %v1129_v60 }
  0xed   : > { %v1131_v16 = vadd.f32 %v1130_v10, %v1111_v42 }
  0xee   : > { %v1167_v11 = vadd.f32 %v1166_v9, %v1148_v4 }
  0xf3   : > { %v1149_v44 = vpop.f32.mrf.mxu2  ;;  %v1180_v46 = vpop.f32.mrf.mxu0 }
  0xf4   : > { %v1168_v45 = vpop.f32.mrf.mxu3  ;;  %v1199_v47 = vpop.f32.mrf.mxu1  ;;  %v1181_v49 = vadd.f32 %v1180_v46, %v1162_v5  ;;  %v1150_v19 = vadd.f32 %v1149_v44, %v1131_v16  ;;  %v442_v5 = vld [vmem:[#allocation2 + $0x10] sm:$0xff] }
  0xf6   : > { %v1200_v52 = vadd.f32 %v1199_v47, %v1181_v49  ;;  %v1169_v22 = vadd.f32 %v1168_v45, %v1150_v19 }
  0xf8   : > { %v1323_v53 = vadd.f32 %v1200_v52, %v439_v50 }
  0xfa   : > { %1331 = vst [vmem:[#allocation2 + $0x30] sm:$0xff] %v1323_v53 }
  0xfb   : > { %v1218_v55 = vpop.f32.mrf.mxu2  ;;  %v1182_v58 = vpop.f32.mrf.mxu0 }
  0xfc   : > { %v1237_v56 = vpop.f32.mrf.mxu3  ;;  %v1201_v59 = vpop.f32.mrf.mxu1  ;;  %v1183_v62 = vadd.f32 %v1182_v58, %v1164_v54 }
  0xfd   : > { %v1238_v33 = vadd.f32 %v1237_v56, %v1218_v55  ;;  %v444_v55 = vld [vmem:[#allocation2 + $0x20] sm:$0xff] }
  0xfe   : > { %v1202_v7 = vadd.f32 %v1201_v59, %v1183_v62 }
 0x100   : > { %v1325_v8 = vadd.f32 %v1202_v7, %v441_v1  ;;  %v446_v7 = vld [vmem:[#allocation2 + $0x38] sm:$0xff] }
 0x102   : > { %1333 = vst [vmem:[#allocation2 + $0x18] sm:$0xff] %v1325_v8 }
 0x103   : > { %v1220_v12 = vpop.f32.mrf.mxu2  ;;  %v1185_v14 = vpop.f32.mrf.mxu0 }
 0x104   : > { %v1239_v13 = vpop.f32.mrf.mxu3  ;;  %v1204_v15 = vpop.f32.mrf.mxu1  ;;  %v1186_v17 = vadd.f32 %v1185_v14, %v1167_v11 }
 0x105   : > { %v1240_v36 = vadd.f32 %v1239_v13, %v1220_v12 }
 0x106   : > { %v1205_v20 = vadd.f32 %v1204_v15, %v1186_v17 }
 0x108   : > { %v1327_v21 = vadd.f32 %v1205_v20, %v443_v18 }
 0x10a   : > { %1335 = vst [vmem:[#allocation2 + $0x8] sm:$0xff] %v1327_v21 }
 0x10b   : > { %v1223_v23 = vpop.f32.mrf.mxu2  ;;  %v1187_v25 = vpop.f32.mrf.mxu0 }
 0x10c   : > { %v1242_v24 = vpop.f32.mrf.mxu3  ;;  %v1206_v26 = vpop.f32.mrf.mxu1  ;;  %v1188_v27 = vadd.f32 %v1187_v25, %v1169_v22 }
 0x10d   : > { %v1243_v43 = vadd.f32 %v1242_v24, %v1223_v23 }
 0x10e   : > { %v1207_v29 = vadd.f32 %v1206_v26, %v1188_v27 }
 0x110   : > { %v1329_v30 = vadd.f32 %v1207_v29, %v445_v28 }
 0x112   : > { %1337 = vst [vmem:[#allocation2 + $0x28] sm:$0xff] %v1329_v30 }
 0x113   : > { %v1225_v31 = vpop.f32.mrf.mxu2  ;;  %v1256_v61 = vpop.f32.mrf.mxu0 }
 0x114   : > { %v1244_v32 = vpop.f32.mrf.mxu3  ;;  %v1275_v57 = vpop.f32.mrf.mxu1  ;;  %v1257_v63 = vadd.f32 %v1256_v61, %v1238_v33 }
 0x115   : > { %v1245_v52 = vadd.f32 %v1244_v32, %v1225_v31 }
 0x116   : > { %v1276_v2 = vadd.f32 %v1275_v57, %v1257_v63 }
 0x11b   : > { %v1294_v34 = vpop.f32.mrf.mxu2  ;;  %v1258_v38 = vpop.f32.mrf.mxu0 }
 0x11c   : > { %v1313_v35 = vpop.f32.mrf.mxu3  ;;  %v1295_v37 = vadd.f32 %v1294_v34, %v1276_v2  ;;  %v1277_v3 = vpop.f32.mrf.mxu1  ;;  %v1259_v6 = vadd.f32 %v1258_v38, %v1240_v36 }
 0x11e   : > { %v1314_v40 = vadd.f32 %v1313_v35, %v1295_v37  ;;  %v1278_v9 = vadd.f32 %v1277_v3, %v1259_v6 }
 0x120   : > { %v1324_v41 = vadd.f32 %v1314_v40, %v440_v39 }
 0x122   : > { %1332 = vst [vmem:[#allocation2] sm:$0xff] %v1324_v41 }
 0x123   : > { %v1296_v42 = vpop.f32.mrf.mxu2  ;;  %v1261_v44 = vpop.f32.mrf.mxu0 }
 0x124   : > { %v1315_v10 = vpop.f32.mrf.mxu3  ;;  %v1297_v0 = vadd.f32 %v1296_v42, %v1278_v9  ;;  %v1262_v46 = vadd.f32 %v1261_v44, %v1243_v43  ;;  %v1280_v47 = vpop.f32.mrf.mxu1 }
 0x126   : > { %v1316_v45 = vadd.f32 %v1315_v10, %v1297_v0  ;;  %v1281_v49 = vadd.f32 %v1280_v47, %v1262_v46 }
 0x128   : > { %v1326_v48 = vadd.f32 %v1316_v45, %v442_v5 }
 0x12a   : > { %1334 = vst [vmem:[#allocation2 + $0x10] sm:$0xff] %v1326_v48 }
 0x12b   : > { %v1299_v50 = vpop.f32.mrf.mxu2  ;;  %v1263_v54 = vpop.f32.mrf.mxu0 }
 0x12c   : > { %v1318_v51 = vpop.f32.mrf.mxu3  ;;  %v1300_v53 = vadd.f32 %v1299_v50, %v1281_v49  ;;  %v1264_v58 = vadd.f32 %v1263_v54, %v1245_v52  ;;  %v1282_v60 = vpop.f32.mrf.mxu1 }
 0x12e   : > { %v1319_v56 = vadd.f32 %v1318_v51, %v1300_v53  ;;  %v1283_v62 = vadd.f32 %v1282_v60, %v1264_v58 }
 0x130   : > { %v1328_v59 = vadd.f32 %v1319_v56, %v444_v55 }
 0x132   : > { %1336 = vst [vmem:[#allocation2 + $0x20] sm:$0xff] %v1328_v59 }
 0x133   : > { %v1301_v1 = vpop.f32.mrf.mxu2 }
 0x134   : > { %v1302_v4 = vadd.f32 %v1301_v1, %v1283_v62  ;;  %v1320_v8 = vpop.f32.mrf.mxu3 }
 0x136   : > { %v1321_v11 = vadd.f32 %v1320_v8, %v1302_v4  ;;  %1342 = sbr.rel (%p2014_p11) target bundleno = 334 (0x14e), region = 71 }
 0x138   : > { %v1330_v12 = vadd.f32 %v1321_v11, %v446_v7 }
 0x13a   : > { %1338 = vst [vmem:[#allocation2 + $0x38] sm:$0xff] %v1330_v12 }
 0x13b   : > { %v1343_v13 = vld [vmem:[#allocation2 + $0x30] sm:$0xff]  ;;  %v1344_v14 = vld [vmem:[#allocation2] sm:$0xff]  ;;  %v1345_v20 = vld [vmem:[#allocation2 + $0x18] sm:$0xff] }
 0x13c   : > { %v1351_v15 = vld [vmem:[%s2602_s2] sm:$0x3]  ;;  %v1346_v25 = vld [vmem:[#allocation2 + $0x10] sm:$0xff]  ;;  %v1388_v26 = vld [vmem:[%s2604_s4 + $0x8] sm:$0xff] }
 0x13d   : > { %v1353_v16 = vperm.slane %v1351_v15, 0  ;;  %v1354_v17 = vperm.slane %v1351_v15, 1  ;;  %v1365_v18 = vld [vmem:[%s2603_s3] sm:$0x3]  ;;  %v1347_v27 = vld [vmem:[#allocation2 + $0x8] sm:$0xff]  ;;  %v1389_v33 = vld [vmem:[%s2604_s4 + $0x10] sm:$0xff]  ;;  %v1393_v61 = vunpack.c.l.bf16 %v1388_v26  ;;  %v1394_v57 = vunpack.c.h.bf16 %v1388_v26 }
 0x13e   : > { %v1387_v19 = vld [vmem:[%s2604_s4] sm:$0xff]  ;;  %v1367_v21 = vperm.slane %v1365_v18, 0  ;;  %v1368_v22 = vperm.slane %v1365_v18, 1  ;;  %v1349_v38 = vld [vmem:[#allocation2 + $0x28] sm:$0xff]  ;;  %v1395_v6 = vunpack.c.l.bf16 %v1389_v33  ;;  %v1396_v41 = vunpack.c.h.bf16 %v1389_v33  ;;  %v1390_v46 = vld [vmem:[%s2604_s4 + $0x18] sm:$0xff] }
 0x13f   : > { %v1391_v23 = vunpack.c.l.bf16 %v1387_v19  ;;  %v1392_v24 = vunpack.c.h.bf16 %v1387_v19  ;;  %v1357_v28 = vmul.f32 %v1353_v16, %v1343_v13  ;;  %v1358_v29 = vmul.f32 %v1354_v17, %v1344_v14  ;;  %v1348_v32 = vld [vmem:[#allocation2 + $0x20] sm:$0xff] }
 0x140   : > { %v1359_v30 = vmul.f32 %v1353_v16, %v1345_v20  ;;  %v1360_v31 = vmul.f32 %v1354_v17, %v1346_v25  ;;  %v1361_v63 = vmul.f32 %v1353_v16, %v1347_v27  ;;  %v1362_v2 = vmul.f32 %v1354_v17, %v1348_v32 }
 0x141   : > { %v1371_v34 = vadd.f32 %v1367_v21, %v1357_v28  ;;  %v1372_v35 = vadd.f32 %v1368_v22, %v1358_v29  ;;  %v1350_v39 = vld [vmem:[#allocation2 + $0x38] sm:$0xff]  ;;  %v1363_v5 = vmul.f32 %v1353_v16, %v1349_v38  ;;  %v1397_v58 = vunpack.c.l.bf16 %v1390_v46 }
 0x142   : > { %v1373_v36 = vadd.f32 %v1367_v21, %v1359_v30  ;;  %v1374_v37 = vadd.f32 %v1368_v22, %v1360_v31  ;;  %v1375_v3 = vadd.f32 %v1367_v21, %v1361_v63  ;;  %v1376_v40 = vadd.f32 %v1368_v22, %v1362_v2 }
 0x143   : > { %v1379_v9 = vmax.f32 %v1371_v34, 0.0  ;;  %v1380_v42 = vmax.f32 %v1372_v35, 0.0  ;;  %v1364_v45 = vmul.f32 %v1354_v17, %v1350_v39  ;;  %v1377_v53 = vadd.f32 %v1367_v21, %v1363_v5 }
 0x144   : > { %v1381_v10 = vmax.f32 %v1373_v36, 0.0  ;;  %v1382_v43 = vmax.f32 %v1374_v37, 0.0  ;;  %v1383_v0 = vmax.f32 %v1375_v3, 0.0  ;;  %v1384_v44 = vmax.f32 %v1376_v40, 0.0 }
 0x145   : > { %v1399_v47 = vadd.f32 %v1391_v23, %v1379_v9  ;;  %v1400_v48 = vadd.f32 %v1392_v24, %v1380_v42  ;;  %v1378_v54 = vadd.f32 %v1368_v22, %v1364_v45  ;;  %v1398_v59 = vunpack.c.h.bf16 %v1390_v46 }
 0x146   : > { %v1401_v49 = vadd.f32 %v1393_v61, %v1381_v10  ;;  %v1402_v50 = vadd.f32 %v1394_v57, %v1382_v43  ;;  %v1403_v51 = vadd.f32 %v1395_v6, %v1383_v0  ;;  %v1404_v52 = vadd.f32 %v1396_v41, %v1384_v44 }
 0x147   : > { %v1407_v55 = vpack.c.bf16 %v1400_v48, %v1399_v47  ;;  %v1385_v62 = vmax.f32 %v1377_v53, 0.0  ;;  %v1386_v1 = vmax.f32 %v1378_v54, 0.0 }
 0x148   : > { %v1408_v56 = vpack.c.bf16 %v1402_v50, %v1401_v49  ;;  %v1409_v60 = vpack.c.bf16 %v1404_v52, %v1403_v51 }
 0x149   : > { %1411 = vst [vmem:[%s2605_s5] sm:$0xff] %v1407_v55  ;;  %v1405_v4 = vadd.f32 %v1397_v58, %v1385_v62  ;;  %v1406_v7 = vadd.f32 %v1398_v59, %v1386_v1 }
 0x14a   : > { %1412 = vst [vmem:[%s2605_s5 + $0x8] sm:$0xff] %v1408_v56 }
 0x14b   : > { %1413 = vst [vmem:[%s2605_s5 + $0x10] sm:$0xff] %v1409_v60  ;;  %v1410_v8 = vpack.c.bf16 %v1406_v7, %v1405_v4 }
 0x14d   : > { %1414 = vst [vmem:[%s2605_s5 + $0x18] sm:$0xff] %v1410_v8 }
 0x14e PF: > { %s15_s22 = sadd.s32 1, %s2210_s22   ;;  %s2606_s18 = smov %s2198_s19 }
 0x14f   : > { %p12_p12 = scmp.ge.s32.totalorder %s15_s22, 5   ;;  %s2607_s19 = smov %s2278_s26 }
 0x150   : > { %s2608_s20 = smov %s2206_s21  ;;  %s2609_s21 = smov %s2611_s23 }
 0x151   :  { %14 = sbr.rel (!%p12_p12) target bundleno = 3 (0x3), region = 118 }

</bundles_post_ra>
